<compile_context>
chip_gen: v7x
topology: tpu7x:2x2x1
jax: 0.10.0
libtpu: 0.0.40
codegen_flags: <defaults>
</compile_context>

<pallas_src>
import functools

import jax
import jax.numpy as jnp
import numpy as np
from jax.experimental import pallas as pl
from jax.experimental.pallas import tpu as pltpu

KSIZE = 7
PAD = 3


def _round_up(v, m):
    return (v + m - 1) // m * m


def _pick_c_chunk(C, H, W, itemsize, budget_bytes=8 * 1024 * 1024):
    """Largest divisor of C whose (TC, H, W) block — with (8,128) tile padding
    and double-buffering — stays under `budget_bytes` of VMEM."""
    per_c = _round_up(H, 8) * _round_up(W, 128) * itemsize
    max_tc = max(1, budget_bytes // (2 * per_c))     # 2 = double buffering
    tc = 1
    for d in range(1, C + 1):
        if C % d == 0 and d <= max_tc:
            tc = d
    return tc


def _vmem_bytes_needed(tc, H, W, Hp, Wp, in_itemsize, out_itemsize):
    """Tile-padded VMEM footprint: double-buffered in/out blocks + scratch."""
    in_blk = tc * _round_up(H, 8) * _round_up(W, 128) * in_itemsize
    out_blk = _round_up(H, 8) * _round_up(W, 128) * out_itemsize
    scratch = 2 * _round_up(Hp, 8) * _round_up(Wp, 128) * 4
    return 2 * in_blk + 2 * out_blk + scratch


def _spatial_attn_kernel(w_ref, x_ref, o_ref, red_ref, *, C, H, W):
    """Grid: (N, C // TC) — batch parallel, channel chunks as reduction axis.

    w_ref   : SMEM (2*7*7,) f32 conv weights, flat [cin, ky, kx] (OIHW order).
    x_ref   : VMEM (TC, H, W) unpadded input chunk.
    o_ref   : VMEM (1, H, W) output block (written on the last C chunk only).
    red_ref : VMEM (2, H+6, W+6) f32 scratch: [0] running channel sum,
              [1] running channel max; zero border acts as conv zero padding.
    """
    c_blk = pl.program_id(1)
    n_cblk = pl.num_programs(1)

    x = x_ref[...].astype(jnp.float32)            # (TC, H, W)
    part_sum = jnp.sum(x, axis=0)                 # (H, W)
    part_max = jnp.max(x, axis=0)                 # (H, W)

    @pl.when(c_blk == 0)
    def _init():
        red_ref[...] = jnp.zeros_like(red_ref)    # zero border = conv padding
        red_ref[0, pl.ds(PAD, H), pl.ds(PAD, W)] = part_sum
        red_ref[1, pl.ds(PAD, H), pl.ds(PAD, W)] = part_max

    @pl.when(c_blk > 0)
    def _accumulate():
        red_ref[0, pl.ds(PAD, H), pl.ds(PAD, W)] += part_sum
        red_ref[1, pl.ds(PAD, H), pl.ds(PAD, W)] = jnp.maximum(
            red_ref[1, pl.ds(PAD, H), pl.ds(PAD, W)], part_max)

    @pl.when(c_blk == n_cblk - 1)
    def _finalize():
        inv_c = 1.0 / C
        # Hoist all 98 scalar SMEM weight reads out of the FMA chain.
        nw = 2 * KSIZE * KSIZE
        w = [w_ref[i] for i in range(nw)]
        # Four independent accumulator chains (input channel x ky parity)
        # so the unrolled 98-tap FMA loop isn't one serial dependency chain.
        accs = [jnp.zeros((H, W), jnp.float32) for _ in range(4)]
        for c in range(2):
            for ky in range(KSIZE):
                for kx in range(KSIZE):
                    wv = w[c * KSIZE * KSIZE + ky * KSIZE + kx]
                    if c == 0:
                        wv = wv * inv_c           # fold mean's 1/C into the tap
                    # Static-offset VMEM re-load (vld) instead of slicing a
                    # live (Hp, Wp) value 98 times.
                    tap = red_ref[c, pl.ds(ky, H), pl.ds(kx, W)]
                    a = c * 2 + (ky & 1)
                    accs[a] = accs[a] + wv * tap
        acc = (accs[0] + accs[1]) + (accs[2] + accs[3])
        o_ref[0, :, :] = jax.nn.sigmoid(acc).astype(o_ref.dtype)


def spatial_attention(x, weight, *, c_chunk=None):
    """x: (N, C, H, W) float32/bfloat16. weight: (1, 2, 7, 7) OIHW, no bias."""
    N, C, H, W = x.shape
    Hp, Wp = H + 2 * PAD, W + 2 * PAD

    w_flat = weight.reshape(-1).astype(jnp.float32)            # (98,)

    in_itemsize = jnp.dtype(x.dtype).itemsize
    out_dtype = x.dtype
    out_itemsize = jnp.dtype(out_dtype).itemsize

    if c_chunk is None:
        tc = _pick_c_chunk(C, H, W, in_itemsize)
    else:
        assert C % c_chunk == 0
        tc = c_chunk
    n_cblk = C // tc

    kernel = functools.partial(_spatial_attn_kernel, C=C, H=H, W=W)

    needed = _vmem_bytes_needed(tc, H, W, Hp, Wp, in_itemsize, out_itemsize)
    vmem_limit = int(min(64 * 1024 * 1024,
                         max(32 * 1024 * 1024, needed + 4 * 1024 * 1024)))

    cost = pl.CostEstimate(
        flops=int(N * H * W * (2 * C + 4 * KSIZE * KSIZE)),
        transcendentals=int(N * H * W),
        bytes_accessed=int(N * C * H * W * in_itemsize
                           + N * H * W * out_itemsize
                           + w_flat.size * 4),
    )

    return pl.pallas_call(
        kernel,
        out_shape=jax.ShapeDtypeStruct((N, 1, H, W), out_dtype),
        grid=(N, n_cblk),
        in_specs=[
            pl.BlockSpec(memory_space=pltpu.MemorySpace.SMEM),           # weights
            pl.BlockSpec((None, tc, H, W), lambda n, c: (n, c, 0, 0)),   # x chunk
        ],
        out_specs=pl.BlockSpec((None, 1, H, W), lambda n, c: (n, 0, 0, 0)),
        scratch_shapes=[pltpu.VMEM((2, Hp, Wp), jnp.float32)],
        compiler_params=pltpu.CompilerParams(
            dimension_semantics=("parallel", "arbitrary"),
            vmem_limit_bytes=vmem_limit,
        ),
        cost_estimate=cost,
    )(w_flat, x)


def _reference(x, weight):
    xf = x.astype(jnp.float32)
    avg = jnp.mean(xf, axis=1, keepdims=True)
    mx = jnp.max(xf, axis=1, keepdims=True)
    cat = jnp.concatenate([avg, mx], axis=1)                   # (N, 2, H, W)
    y = jax.lax.conv_general_dilated(
        cat, weight.astype(jnp.float32),
        window_strides=(1, 1),
        padding=((PAD, PAD), (PAD, PAD)),
        dimension_numbers=("NCHW", "OIHW", "NCHW"))
    return jax.nn.sigmoid(y)


if __name__ == "__main__":
    key = jax.random.PRNGKey(0)
    kx, kw = jax.random.split(key)

    N, C, H, W = 2, 4, 16, 16
    x = jax.random.normal(kx, (N, C, H, W), dtype=jnp.float32)

    # Deterministic weight init (PyTorch default-style uniform, fan_in = 2*7*7).
    fan_in = 2 * KSIZE * KSIZE
    bound = 1.0 / np.sqrt(fan_in)
    weight = jax.random.uniform(kw, (1, 2, KSIZE, KSIZE),
                                minval=-bound, maxval=bound, dtype=jnp.float32)

    ref = jax.block_until_ready(_reference(x, weight))

    # 1) Default chunking (single channel chunk at these sizes).
    out = jax.block_until_ready(spatial_attention(x, weight))
    np.testing.assert_allclose(np.asarray(out), np.asarray(ref),
                               rtol=1e-5, atol=1e-5)

    # 2) Forced multi-chunk channel reduction (exercises the accumulate path).
    out2 = jax.block_until_ready(spatial_attention(x, weight, c_chunk=2))
    np.testing.assert_allclose(np.asarray(out2), np.asarray(ref),
                               rtol=1e-5, atol=1e-5)

    print("KERNEL_OK")
</pallas_src>

<mosaic_0001>
module attributes {stable_mosaic.version = 11 : i64} {
  func.func @_spatial_attn_kernel(%arg0: i32, %arg1: i32, %arg2: memref<98xf32, #tpu.memory_space<smem>>, %arg3: memref<1x4x16x16xf32, #tpu.memory_space<vmem>>, %arg4: memref<1x1x16x16xf32, #tpu.memory_space<vmem>>, %arg5: memref<2x22x22xf32, #tpu.memory_space<vmem>>) attributes {dimension_semantics = [#tpu.dimension_semantics<parallel>, #tpu.dimension_semantics<arbitrary>], iteration_bounds = array<i64: 2, 1>, scalar_prefetch = 0 : i64, scratch_operands = 1 : i64, tpu.core_type = #tpu.core_type<tc>, window_params = [{transform_indices = @transform_0, window_bounds = array<i64: 98>}, {transform_indices = @transform_1, window_bounds = array<i64: 1, 4, 16, 16>}, {transform_indices = @transform_2, window_bounds = array<i64: 1, 1, 16, 16>}]} {
    %c0 = arith.constant 0 : index
    %c0_0 = arith.constant 0 : index
    %c0_1 = arith.constant 0 : index
    %c0_2 = arith.constant 0 : index
    %0 = vector.load %arg3[%c0, %c0_0, %c0_1, %c0_2] : memref<1x4x16x16xf32, #tpu.memory_space<vmem>>, vector<1x4x16x16xf32>
    %1 = vector.shape_cast %0 : vector<1x4x16x16xf32> to vector<4x16x16xf32>
    %cst = arith.constant dense<0.000000e+00> : vector<16x16xf32>
    %2 = vector.multi_reduction <add>, %1, %cst [0] : vector<4x16x16xf32> to vector<16x16xf32>
    %cst_3 = arith.constant dense<0xFF800000> : vector<16x16xf32>
    %3 = vector.multi_reduction <maximumf>, %1, %cst_3 [0] : vector<4x16x16xf32> to vector<16x16xf32>
    %c0_i32 = arith.constant 0 : i32
    %4 = arith.cmpi eq, %arg1, %c0_i32 : i32
    %5 = arith.extui %4 : i1 to i32
    %c0_i32_4 = arith.constant 0 : i32
    %6 = arith.cmpi ne, %5, %c0_i32_4 : i32
    scf.if %6 {
      %cst_9 = arith.constant 0.000000e+00 : f32
      %13 = vector.broadcast %cst_9 : f32 to vector<2x22x22xf32>
      %c0_10 = arith.constant 0 : index
      %c0_11 = arith.constant 0 : index
      %c0_12 = arith.constant 0 : index
      %14 = vector.load %arg5[%c0_10, %c0_11, %c0_12] : memref<2x22x22xf32, #tpu.memory_space<vmem>>, vector<2x22x22xf32>
      tpu.vector_store %arg5[%c0_10, %c0_11, %c0_12], %13 {strides = array<i32>} : memref<2x22x22xf32, #tpu.memory_space<vmem>>, vector<2x22x22xf32>,
      %c0_13 = arith.constant 0 : index
      %c3 = arith.constant 3 : index
      %c3_14 = arith.constant 3 : index
      %15 = vector.load %arg5[%c0_13, %c3, %c3_14] : memref<2x22x22xf32, #tpu.memory_space<vmem>>, vector<1x16x16xf32>
      %16 = vector.shape_cast %15 : vector<1x16x16xf32> to vector<16x16xf32>
      %17 = vector.shape_cast %2 : vector<16x16xf32> to vector<1x16x16xf32>
      tpu.vector_store %arg5[%c0_13, %c3, %c3_14], %17 {strides = array<i32>} : memref<2x22x22xf32, #tpu.memory_space<vmem>>, vector<1x16x16xf32>,
      %c1 = arith.constant 1 : index
      %c3_15 = arith.constant 3 : index
      %c3_16 = arith.constant 3 : index
      %18 = vector.load %arg5[%c1, %c3_15, %c3_16] : memref<2x22x22xf32, #tpu.memory_space<vmem>>, vector<1x16x16xf32>
      %19 = vector.shape_cast %18 : vector<1x16x16xf32> to vector<16x16xf32>
      %20 = vector.shape_cast %3 : vector<16x16xf32> to vector<1x16x16xf32>
      tpu.vector_store %arg5[%c1, %c3_15, %c3_16], %20 {strides = array<i32>} : memref<2x22x22xf32, #tpu.memory_space<vmem>>, vector<1x16x16xf32>,
    } else {
    }
    %c0_i32_5 = arith.constant 0 : i32
    %7 = arith.cmpi sgt, %arg1, %c0_i32_5 : i32
    %8 = arith.extui %7 : i1 to i32
    %c0_i32_6 = arith.constant 0 : i32
    %9 = arith.cmpi ne, %8, %c0_i32_6 : i32
    scf.if %9 {
      %c0_9 = arith.constant 0 : index
      %c3 = arith.constant 3 : index
      %c3_10 = arith.constant 3 : index
      %13 = vector.load %arg5[%c0_9, %c3, %c3_10] : memref<2x22x22xf32, #tpu.memory_space<vmem>>, vector<1x16x16xf32>
      %14 = vector.shape_cast %13 : vector<1x16x16xf32> to vector<16x16xf32>
      %15 = arith.addf %14, %2 : vector<16x16xf32>
      %c0_11 = arith.constant 0 : index
      %c3_12 = arith.constant 3 : index
      %c3_13 = arith.constant 3 : index
      %16 = vector.load %arg5[%c0_11, %c3_12, %c3_13] : memref<2x22x22xf32, #tpu.memory_space<vmem>>, vector<1x16x16xf32>
      %17 = vector.shape_cast %16 : vector<1x16x16xf32> to vector<16x16xf32>
      %18 = vector.shape_cast %15 : vector<16x16xf32> to vector<1x16x16xf32>
      tpu.vector_store %arg5[%c0_11, %c3_12, %c3_13], %18 {strides = array<i32>} : memref<2x22x22xf32, #tpu.memory_space<vmem>>, vector<1x16x16xf32>,
      %c1 = arith.constant 1 : index
      %c3_14 = arith.constant 3 : index
      %c3_15 = arith.constant 3 : index
      %19 = vector.load %arg5[%c1, %c3_14, %c3_15] : memref<2x22x22xf32, #tpu.memory_space<vmem>>, vector<1x16x16xf32>
      %20 = vector.shape_cast %19 : vector<1x16x16xf32> to vector<16x16xf32>
      %21 = arith.maximumf %20, %3 : vector<16x16xf32>
      %c1_16 = arith.constant 1 : index
      %c3_17 = arith.constant 3 : index
      %c3_18 = arith.constant 3 : index
      %22 = vector.load %arg5[%c1_16, %c3_17, %c3_18] : memref<2x22x22xf32, #tpu.memory_space<vmem>>, vector<1x16x16xf32>
      %23 = vector.shape_cast %22 : vector<1x16x16xf32> to vector<16x16xf32>
      %24 = vector.shape_cast %21 : vector<16x16xf32> to vector<1x16x16xf32>
      tpu.vector_store %arg5[%c1_16, %c3_17, %c3_18], %24 {strides = array<i32>} : memref<2x22x22xf32, #tpu.memory_space<vmem>>, vector<1x16x16xf32>,
    } else {
    }
    %c0_i32_7 = arith.constant 0 : i32
    %10 = arith.cmpi eq, %arg1, %c0_i32_7 : i32
    %11 = arith.extui %10 : i1 to i32
    %c0_i32_8 = arith.constant 0 : i32
    %12 = arith.cmpi ne, %11, %c0_i32_8 : i32
    scf.if %12 {
      %c0_9 = arith.constant 0 : index
      %13 = memref.load %arg2[%c0_9] : memref<98xf32, #tpu.memory_space<smem>>
      %c1 = arith.constant 1 : index
      %14 = memref.load %arg2[%c1] : memref<98xf32, #tpu.memory_space<smem>>
      %c2 = arith.constant 2 : index
      %15 = memref.load %arg2[%c2] : memref<98xf32, #tpu.memory_space<smem>>
      %c3 = arith.constant 3 : index
      %16 = memref.load %arg2[%c3] : memref<98xf32, #tpu.memory_space<smem>>
      %c4 = arith.constant 4 : index
      %17 = memref.load %arg2[%c4] : memref<98xf32, #tpu.memory_space<smem>>
      %c5 = arith.constant 5 : index
      %18 = memref.load %arg2[%c5] : memref<98xf32, #tpu.memory_space<smem>>
      %c6 = arith.constant 6 : index
      %19 = memref.load %arg2[%c6] : memref<98xf32, #tpu.memory_space<smem>>
      %c7 = arith.constant 7 : index
      %20 = memref.load %arg2[%c7] : memref<98xf32, #tpu.memory_space<smem>>
      %c8 = arith.constant 8 : index
      %21 = memref.load %arg2[%c8] : memref<98xf32, #tpu.memory_space<smem>>
      %c9 = arith.constant 9 : index
      %22 = memref.load %arg2[%c9] : memref<98xf32, #tpu.memory_space<smem>>
      %c10 = arith.constant 10 : index
      %23 = memref.load %arg2[%c10] : memref<98xf32, #tpu.memory_space<smem>>
      %c11 = arith.constant 11 : index
      %24 = memref.load %arg2[%c11] : memref<98xf32, #tpu.memory_space<smem>>
      %c12 = arith.constant 12 : index
      %25 = memref.load %arg2[%c12] : memref<98xf32, #tpu.memory_space<smem>>
      %c13 = arith.constant 13 : index
      %26 = memref.load %arg2[%c13] : memref<98xf32, #tpu.memory_space<smem>>
      %c14 = arith.constant 14 : index
      %27 = memref.load %arg2[%c14] : memref<98xf32, #tpu.memory_space<smem>>
      %c15 = arith.constant 15 : index
      %28 = memref.load %arg2[%c15] : memref<98xf32, #tpu.memory_space<smem>>
      %c16 = arith.constant 16 : index
      %29 = memref.load %arg2[%c16] : memref<98xf32, #tpu.memory_space<smem>>
      %c17 = arith.constant 17 : index
      %30 = memref.load %arg2[%c17] : memref<98xf32, #tpu.memory_space<smem>>
      %c18 = arith.constant 18 : index
      %31 = memref.load %arg2[%c18] : memref<98xf32, #tpu.memory_space<smem>>
      %c19 = arith.constant 19 : index
      %32 = memref.load %arg2[%c19] : memref<98xf32, #tpu.memory_space<smem>>
      %c20 = arith.constant 20 : index
      %33 = memref.load %arg2[%c20] : memref<98xf32, #tpu.memory_space<smem>>
      %c21 = arith.constant 21 : index
      %34 = memref.load %arg2[%c21] : memref<98xf32, #tpu.memory_space<smem>>
      %c22 = arith.constant 22 : index
      %35 = memref.load %arg2[%c22] : memref<98xf32, #tpu.memory_space<smem>>
      %c23 = arith.constant 23 : index
      %36 = memref.load %arg2[%c23] : memref<98xf32, #tpu.memory_space<smem>>
      %c24 = arith.constant 24 : index
      %37 = memref.load %arg2[%c24] : memref<98xf32, #tpu.memory_space<smem>>
      %c25 = arith.constant 25 : index
      %38 = memref.load %arg2[%c25] : memref<98xf32, #tpu.memory_space<smem>>
      %c26 = arith.constant 26 : index
      %39 = memref.load %arg2[%c26] : memref<98xf32, #tpu.memory_space<smem>>
      %c27 = arith.constant 27 : index
      %40 = memref.load %arg2[%c27] : memref<98xf32, #tpu.memory_space<smem>>
      %c28 = arith.constant 28 : index
      %41 = memref.load %arg2[%c28] : memref<98xf32, #tpu.memory_space<smem>>
      %c29 = arith.constant 29 : index
      %42 = memref.load %arg2[%c29] : memref<98xf32, #tpu.memory_space<smem>>
      %c30 = arith.constant 30 : index
      %43 = memref.load %arg2[%c30] : memref<98xf32, #tpu.memory_space<smem>>
      %c31 = arith.constant 31 : index
      %44 = memref.load %arg2[%c31] : memref<98xf32, #tpu.memory_space<smem>>
      %c32 = arith.constant 32 : index
      %45 = memref.load %arg2[%c32] : memref<98xf32, #tpu.memory_space<smem>>
      %c33 = arith.constant 33 : index
      %46 = memref.load %arg2[%c33] : memref<98xf32, #tpu.memory_space<smem>>
      %c34 = arith.constant 34 : index
      %47 = memref.load %arg2[%c34] : memref<98xf32, #tpu.memory_space<smem>>
      %c35 = arith.constant 35 : index
      %48 = memref.load %arg2[%c35] : memref<98xf32, #tpu.memory_space<smem>>
      %c36 = arith.constant 36 : index
      %49 = memref.load %arg2[%c36] : memref<98xf32, #tpu.memory_space<smem>>
      %c37 = arith.constant 37 : index
      %50 = memref.load %arg2[%c37] : memref<98xf32, #tpu.memory_space<smem>>
      %c38 = arith.constant 38 : index
      %51 = memref.load %arg2[%c38] : memref<98xf32, #tpu.memory_space<smem>>
      %c39 = arith.constant 39 : index
      %52 = memref.load %arg2[%c39] : memref<98xf32, #tpu.memory_space<smem>>
      %c40 = arith.constant 40 : index
      %53 = memref.load %arg2[%c40] : memref<98xf32, #tpu.memory_space<smem>>
      %c41 = arith.constant 41 : index
      %54 = memref.load %arg2[%c41] : memref<98xf32, #tpu.memory_space<smem>>
      %c42 = arith.constant 42 : index
      %55 = memref.load %arg2[%c42] : memref<98xf32, #tpu.memory_space<smem>>
      %c43 = arith.constant 43 : index
      %56 = memref.load %arg2[%c43] : memref<98xf32, #tpu.memory_space<smem>>
      %c44 = arith.constant 44 : index
      %57 = memref.load %arg2[%c44] : memref<98xf32, #tpu.memory_space<smem>>
      %c45 = arith.constant 45 : index
      %58 = memref.load %arg2[%c45] : memref<98xf32, #tpu.memory_space<smem>>
      %c46 = arith.constant 46 : index
      %59 = memref.load %arg2[%c46] : memref<98xf32, #tpu.memory_space<smem>>
      %c47 = arith.constant 47 : index
      %60 = memref.load %arg2[%c47] : memref<98xf32, #tpu.memory_space<smem>>
      %c48 = arith.constant 48 : index
      %61 = memref.load %arg2[%c48] : memref<98xf32, #tpu.memory_space<smem>>
      %c49 = arith.constant 49 : index
      %62 = memref.load %arg2[%c49] : memref<98xf32, #tpu.memory_space<smem>>
      %c50 = arith.constant 50 : index
      %63 = memref.load %arg2[%c50] : memref<98xf32, #tpu.memory_space<smem>>
      %c51 = arith.constant 51 : index
      %64 = memref.load %arg2[%c51] : memref<98xf32, #tpu.memory_space<smem>>
      %c52 = arith.constant 52 : index
      %65 = memref.load %arg2[%c52] : memref<98xf32, #tpu.memory_space<smem>>
      %c53 = arith.constant 53 : index
      %66 = memref.load %arg2[%c53] : memref<98xf32, #tpu.memory_space<smem>>
      %c54 = arith.constant 54 : index
      %67 = memref.load %arg2[%c54] : memref<98xf32, #tpu.memory_space<smem>>
      %c55 = arith.constant 55 : index
      %68 = memref.load %arg2[%c55] : memref<98xf32, #tpu.memory_space<smem>>
      %c56 = arith.constant 56 : index
      %69 = memref.load %arg2[%c56] : memref<98xf32, #tpu.memory_space<smem>>
      %c57 = arith.constant 57 : index
      %70 = memref.load %arg2[%c57] : memref<98xf32, #tpu.memory_space<smem>>
      %c58 = arith.constant 58 : index
      %71 = memref.load %arg2[%c58] : memref<98xf32, #tpu.memory_space<smem>>
      %c59 = arith.constant 59 : index
      %72 = memref.load %arg2[%c59] : memref<98xf32, #tpu.memory_space<smem>>
      %c60 = arith.constant 60 : index
      %73 = memref.load %arg2[%c60] : memref<98xf32, #tpu.memory_space<smem>>
      %c61 = arith.constant 61 : index
      %74 = memref.load %arg2[%c61] : memref<98xf32, #tpu.memory_space<smem>>
      %c62 = arith.constant 62 : index
      %75 = memref.load %arg2[%c62] : memref<98xf32, #tpu.memory_space<smem>>
      %c63 = arith.constant 63 : index
      %76 = memref.load %arg2[%c63] : memref<98xf32, #tpu.memory_space<smem>>
      %c64 = arith.constant 64 : index
      %77 = memref.load %arg2[%c64] : memref<98xf32, #tpu.memory_space<smem>>
      %c65 = arith.constant 65 : index
      %78 = memref.load %arg2[%c65] : memref<98xf32, #tpu.memory_space<smem>>
      %c66 = arith.constant 66 : index
      %79 = memref.load %arg2[%c66] : memref<98xf32, #tpu.memory_space<smem>>
      %c67 = arith.constant 67 : index
      %80 = memref.load %arg2[%c67] : memref<98xf32, #tpu.memory_space<smem>>
      %c68 = arith.constant 68 : index
      %81 = memref.load %arg2[%c68] : memref<98xf32, #tpu.memory_space<smem>>
      %c69 = arith.constant 69 : index
      %82 = memref.load %arg2[%c69] : memref<98xf32, #tpu.memory_space<smem>>
      %c70 = arith.constant 70 : index
      %83 = memref.load %arg2[%c70] : memref<98xf32, #tpu.memory_space<smem>>
      %c71 = arith.constant 71 : index
      %84 = memref.load %arg2[%c71] : memref<98xf32, #tpu.memory_space<smem>>
      %c72 = arith.constant 72 : index
      %85 = memref.load %arg2[%c72] : memref<98xf32, #tpu.memory_space<smem>>
      %c73 = arith.constant 73 : index
      %86 = memref.load %arg2[%c73] : memref<98xf32, #tpu.memory_space<smem>>
      %c74 = arith.constant 74 : index
      %87 = memref.load %arg2[%c74] : memref<98xf32, #tpu.memory_space<smem>>
      %c75 = arith.constant 75 : index
      %88 = memref.load %arg2[%c75] : memref<98xf32, #tpu.memory_space<smem>>
      %c76 = arith.constant 76 : index
      %89 = memref.load %arg2[%c76] : memref<98xf32, #tpu.memory_space<smem>>
      %c77 = arith.constant 77 : index
      %90 = memref.load %arg2[%c77] : memref<98xf32, #tpu.memory_space<smem>>
      %c78 = arith.constant 78 : index
      %91 = memref.load %arg2[%c78] : memref<98xf32, #tpu.memory_space<smem>>
      %c79 = arith.constant 79 : index
      %92 = memref.load %arg2[%c79] : memref<98xf32, #tpu.memory_space<smem>>
      %c80 = arith.constant 80 : index
      %93 = memref.load %arg2[%c80] : memref<98xf32, #tpu.memory_space<smem>>
      %c81 = arith.constant 81 : index
      %94 = memref.load %arg2[%c81] : memref<98xf32, #tpu.memory_space<smem>>
      %c82 = arith.constant 82 : index
      %95 = memref.load %arg2[%c82] : memref<98xf32, #tpu.memory_space<smem>>
      %c83 = arith.constant 83 : index
      %96 = memref.load %arg2[%c83] : memref<98xf32, #tpu.memory_space<smem>>
      %c84 = arith.constant 84 : index
      %97 = memref.load %arg2[%c84] : memref<98xf32, #tpu.memory_space<smem>>
      %c85 = arith.constant 85 : index
      %98 = memref.load %arg2[%c85] : memref<98xf32, #tpu.memory_space<smem>>
      %c86 = arith.constant 86 : index
      %99 = memref.load %arg2[%c86] : memref<98xf32, #tpu.memory_space<smem>>
      %c87 = arith.constant 87 : index
      %100 = memref.load %arg2[%c87] : memref<98xf32, #tpu.memory_space<smem>>
      %c88 = arith.constant 88 : index
      %101 = memref.load %arg2[%c88] : memref<98xf32, #tpu.memory_space<smem>>
      %c89 = arith.constant 89 : index
      %102 = memref.load %arg2[%c89] : memref<98xf32, #tpu.memory_space<smem>>
      %c90 = arith.constant 90 : index
      %103 = memref.load %arg2[%c90] : memref<98xf32, #tpu.memory_space<smem>>
      %c91 = arith.constant 91 : index
      %104 = memref.load %arg2[%c91] : memref<98xf32, #tpu.memory_space<smem>>
      %c92 = arith.constant 92 : index
      %105 = memref.load %arg2[%c92] : memref<98xf32, #tpu.memory_space<smem>>
      %c93 = arith.constant 93 : index
      %106 = memref.load %arg2[%c93] : memref<98xf32, #tpu.memory_space<smem>>
      %c94 = arith.constant 94 : index
      %107 = memref.load %arg2[%c94] : memref<98xf32, #tpu.memory_space<smem>>
      %c95 = arith.constant 95 : index
      %108 = memref.load %arg2[%c95] : memref<98xf32, #tpu.memory_space<smem>>
      %c96 = arith.constant 96 : index
      %109 = memref.load %arg2[%c96] : memref<98xf32, #tpu.memory_space<smem>>
      %c97 = arith.constant 97 : index
      %110 = memref.load %arg2[%c97] : memref<98xf32, #tpu.memory_space<smem>>
      %cst_10 = arith.constant 0.000000e+00 : f32
      %111 = vector.broadcast %cst_10 : f32 to vector<16x16xf32>
      %cst_11 = arith.constant 0.000000e+00 : f32
      %112 = vector.broadcast %cst_11 : f32 to vector<16x16xf32>
      %cst_12 = arith.constant 0.000000e+00 : f32
      %113 = vector.broadcast %cst_12 : f32 to vector<16x16xf32>
      %cst_13 = arith.constant 0.000000e+00 : f32
      %114 = vector.broadcast %cst_13 : f32 to vector<16x16xf32>
      %cst_14 = arith.constant 2.500000e-01 : f32
      %115 = arith.mulf %13, %cst_14 : f32
      %c0_15 = arith.constant 0 : index
      %c0_16 = arith.constant 0 : index
      %c0_17 = arith.constant 0 : index
      %116 = vector.load %arg5[%c0_15, %c0_16, %c0_17] : memref<2x22x22xf32, #tpu.memory_space<vmem>>, vector<1x16x16xf32>
      %117 = vector.shape_cast %116 : vector<1x16x16xf32> to vector<16x16xf32>
      %118 = vector.broadcast %115 : f32 to vector<16x16xf32>
      %119 = arith.mulf %118, %117 : vector<16x16xf32>
      %120 = arith.addf %111, %119 : vector<16x16xf32>
      %cst_18 = arith.constant 2.500000e-01 : f32
      %121 = arith.mulf %14, %cst_18 : f32
      %c0_19 = arith.constant 0 : index
      %c0_20 = arith.constant 0 : index
      %c1_21 = arith.constant 1 : index
      %122 = vector.load %arg5[%c0_19, %c0_20, %c1_21] : memref<2x22x22xf32, #tpu.memory_space<vmem>>, vector<1x16x16xf32>
      %123 = vector.shape_cast %122 : vector<1x16x16xf32> to vector<16x16xf32>
      %124 = vector.broadcast %121 : f32 to vector<16x16xf32>
      %125 = arith.mulf %124, %123 : vector<16x16xf32>
      %126 = arith.addf %120, %125 : vector<16x16xf32>
      %cst_22 = arith.constant 2.500000e-01 : f32
      %127 = arith.mulf %15, %cst_22 : f32
      %c0_23 = arith.constant 0 : index
      %c0_24 = arith.constant 0 : index
      %c2_25 = arith.constant 2 : index
      %128 = vector.load %arg5[%c0_23, %c0_24, %c2_25] : memref<2x22x22xf32, #tpu.memory_space<vmem>>, vector<1x16x16xf32>
      %129 = vector.shape_cast %128 : vector<1x16x16xf32> to vector<16x16xf32>
      %130 = vector.broadcast %127 : f32 to vector<16x16xf32>
      %131 = arith.mulf %130, %129 : vector<16x16xf32>
      %132 = arith.addf %126, %131 : vector<16x16xf32>
      %cst_26 = arith.constant 2.500000e-01 : f32
      %133 = arith.mulf %16, %cst_26 : f32
      %c0_27 = arith.constant 0 : index
      %c0_28 = arith.constant 0 : index
      %c3_29 = arith.constant 3 : index
      %134 = vector.load %arg5[%c0_27, %c0_28, %c3_29] : memref<2x22x22xf32, #tpu.memory_space<vmem>>, vector<1x16x16xf32>
      %135 = vector.shape_cast %134 : vector<1x16x16xf32> to vector<16x16xf32>
      %136 = vector.broadcast %133 : f32 to vector<16x16xf32>
      %137 = arith.mulf %136, %135 : vector<16x16xf32>
      %138 = arith.addf %132, %137 : vector<16x16xf32>
      %cst_30 = arith.constant 2.500000e-01 : f32
      %139 = arith.mulf %17, %cst_30 : f32
      %c0_31 = arith.constant 0 : index
      %c0_32 = arith.constant 0 : index
      %c4_33 = arith.constant 4 : index
      %140 = vector.load %arg5[%c0_31, %c0_32, %c4_33] : memref<2x22x22xf32, #tpu.memory_space<vmem>>, vector<1x16x16xf32>
      %141 = vector.shape_cast %140 : vector<1x16x16xf32> to vector<16x16xf32>
      %142 = vector.broadcast %139 : f32 to vector<16x16xf32>
      %143 = arith.mulf %142, %141 : vector<16x16xf32>
      %144 = arith.addf %138, %143 : vector<16x16xf32>
      %cst_34 = arith.constant 2.500000e-01 : f32
      %145 = arith.mulf %18, %cst_34 : f32
      %c0_35 = arith.constant 0 : index
      %c0_36 = arith.constant 0 : index
      %c5_37 = arith.constant 5 : index
      %146 = vector.load %arg5[%c0_35, %c0_36, %c5_37] : memref<2x22x22xf32, #tpu.memory_space<vmem>>, vector<1x16x16xf32>
      %147 = vector.shape_cast %146 : vector<1x16x16xf32> to vector<16x16xf32>
      %148 = vector.broadcast %145 : f32 to vector<16x16xf32>
      %149 = arith.mulf %148, %147 : vector<16x16xf32>
      %150 = arith.addf %144, %149 : vector<16x16xf32>
      %cst_38 = arith.constant 2.500000e-01 : f32
      %151 = arith.mulf %19, %cst_38 : f32
      %c0_39 = arith.constant 0 : index
      %c0_40 = arith.constant 0 : index
      %c6_41 = arith.constant 6 : index
      %152 = vector.load %arg5[%c0_39, %c0_40, %c6_41] : memref<2x22x22xf32, #tpu.memory_space<vmem>>, vector<1x16x16xf32>
      %153 = vector.shape_cast %152 : vector<1x16x16xf32> to vector<16x16xf32>
      %154 = vector.broadcast %151 : f32 to vector<16x16xf32>
      %155 = arith.mulf %154, %153 : vector<16x16xf32>
      %156 = arith.addf %150, %155 : vector<16x16xf32>
      %cst_42 = arith.constant 2.500000e-01 : f32
      %157 = arith.mulf %20, %cst_42 : f32
      %c0_43 = arith.constant 0 : index
      %c1_44 = arith.constant 1 : index
      %c0_45 = arith.constant 0 : index
      %158 = vector.load %arg5[%c0_43, %c1_44, %c0_45] : memref<2x22x22xf32, #tpu.memory_space<vmem>>, vector<1x16x16xf32>
      %159 = vector.shape_cast %158 : vector<1x16x16xf32> to vector<16x16xf32>
      %160 = vector.broadcast %157 : f32 to vector<16x16xf32>
      %161 = arith.mulf %160, %159 : vector<16x16xf32>
      %162 = arith.addf %112, %161 : vector<16x16xf32>
      %cst_46 = arith.constant 2.500000e-01 : f32
      %163 = arith.mulf %21, %cst_46 : f32
      %c0_47 = arith.constant 0 : index
      %c1_48 = arith.constant 1 : index
      %c1_49 = arith.constant 1 : index
      %164 = vector.load %arg5[%c0_47, %c1_48, %c1_49] : memref<2x22x22xf32, #tpu.memory_space<vmem>>, vector<1x16x16xf32>
      %165 = vector.shape_cast %164 : vector<1x16x16xf32> to vector<16x16xf32>
      %166 = vector.broadcast %163 : f32 to vector<16x16xf32>
      %167 = arith.mulf %166, %165 : vector<16x16xf32>
      %168 = arith.addf %162, %167 : vector<16x16xf32>
      %cst_50 = arith.constant 2.500000e-01 : f32
      %169 = arith.mulf %22, %cst_50 : f32
      %c0_51 = arith.constant 0 : index
      %c1_52 = arith.constant 1 : index
      %c2_53 = arith.constant 2 : index
      %170 = vector.load %arg5[%c0_51, %c1_52, %c2_53] : memref<2x22x22xf32, #tpu.memory_space<vmem>>, vector<1x16x16xf32>
      %171 = vector.shape_cast %170 : vector<1x16x16xf32> to vector<16x16xf32>
      %172 = vector.broadcast %169 : f32 to vector<16x16xf32>
      %173 = arith.mulf %172, %171 : vector<16x16xf32>
      %174 = arith.addf %168, %173 : vector<16x16xf32>
      %cst_54 = arith.constant 2.500000e-01 : f32
      %175 = arith.mulf %23, %cst_54 : f32
      %c0_55 = arith.constant 0 : index
      %c1_56 = arith.constant 1 : index
      %c3_57 = arith.constant 3 : index
      %176 = vector.load %arg5[%c0_55, %c1_56, %c3_57] : memref<2x22x22xf32, #tpu.memory_space<vmem>>, vector<1x16x16xf32>
      %177 = vector.shape_cast %176 : vector<1x16x16xf32> to vector<16x16xf32>
      %178 = vector.broadcast %175 : f32 to vector<16x16xf32>
      %179 = arith.mulf %178, %177 : vector<16x16xf32>
      %180 = arith.addf %174, %179 : vector<16x16xf32>
      %cst_58 = arith.constant 2.500000e-01 : f32
      %181 = arith.mulf %24, %cst_58 : f32
      %c0_59 = arith.constant 0 : index
      %c1_60 = arith.constant 1 : index
      %c4_61 = arith.constant 4 : index
      %182 = vector.load %arg5[%c0_59, %c1_60, %c4_61] : memref<2x22x22xf32, #tpu.memory_space<vmem>>, vector<1x16x16xf32>
      %183 = vector.shape_cast %182 : vector<1x16x16xf32> to vector<16x16xf32>
      %184 = vector.broadcast %181 : f32 to vector<16x16xf32>
      %185 = arith.mulf %184, %183 : vector<16x16xf32>
      %186 = arith.addf %180, %185 : vector<16x16xf32>
      %cst_62 = arith.constant 2.500000e-01 : f32
      %187 = arith.mulf %25, %cst_62 : f32
      %c0_63 = arith.constant 0 : index
      %c1_64 = arith.constant 1 : index
      %c5_65 = arith.constant 5 : index
      %188 = vector.load %arg5[%c0_63, %c1_64, %c5_65] : memref<2x22x22xf32, #tpu.memory_space<vmem>>, vector<1x16x16xf32>
      %189 = vector.shape_cast %188 : vector<1x16x16xf32> to vector<16x16xf32>
      %190 = vector.broadcast %187 : f32 to vector<16x16xf32>
      %191 = arith.mulf %190, %189 : vector<16x16xf32>
      %192 = arith.addf %186, %191 : vector<16x16xf32>
      %cst_66 = arith.constant 2.500000e-01 : f32
      %193 = arith.mulf %26, %cst_66 : f32
      %c0_67 = arith.constant 0 : index
      %c1_68 = arith.constant 1 : index
      %c6_69 = arith.constant 6 : index
      %194 = vector.load %arg5[%c0_67, %c1_68, %c6_69] : memref<2x22x22xf32, #tpu.memory_space<vmem>>, vector<1x16x16xf32>
      %195 = vector.shape_cast %194 : vector<1x16x16xf32> to vector<16x16xf32>
      %196 = vector.broadcast %193 : f32 to vector<16x16xf32>
      %197 = arith.mulf %196, %195 : vector<16x16xf32>
      %198 = arith.addf %192, %197 : vector<16x16xf32>
      %cst_70 = arith.constant 2.500000e-01 : f32
      %199 = arith.mulf %27, %cst_70 : f32
      %c0_71 = arith.constant 0 : index
      %c2_72 = arith.constant 2 : index
      %c0_73 = arith.constant 0 : index
      %200 = vector.load %arg5[%c0_71, %c2_72, %c0_73] : memref<2x22x22xf32, #tpu.memory_space<vmem>>, vector<1x16x16xf32>
      %201 = vector.shape_cast %200 : vector<1x16x16xf32> to vector<16x16xf32>
      %202 = vector.broadcast %199 : f32 to vector<16x16xf32>
      %203 = arith.mulf %202, %201 : vector<16x16xf32>
      %204 = arith.addf %156, %203 : vector<16x16xf32>
      %cst_74 = arith.constant 2.500000e-01 : f32
      %205 = arith.mulf %28, %cst_74 : f32
      %c0_75 = arith.constant 0 : index
      %c2_76 = arith.constant 2 : index
      %c1_77 = arith.constant 1 : index
      %206 = vector.load %arg5[%c0_75, %c2_76, %c1_77] : memref<2x22x22xf32, #tpu.memory_space<vmem>>, vector<1x16x16xf32>
      %207 = vector.shape_cast %206 : vector<1x16x16xf32> to vector<16x16xf32>
      %208 = vector.broadcast %205 : f32 to vector<16x16xf32>
      %209 = arith.mulf %208, %207 : vector<16x16xf32>
      %210 = arith.addf %204, %209 : vector<16x16xf32>
      %cst_78 = arith.constant 2.500000e-01 : f32
      %211 = arith.mulf %29, %cst_78 : f32
      %c0_79 = arith.constant 0 : index
      %c2_80 = arith.constant 2 : index
      %c2_81 = arith.constant 2 : index
      %212 = vector.load %arg5[%c0_79, %c2_80, %c2_81] : memref<2x22x22xf32, #tpu.memory_space<vmem>>, vector<1x16x16xf32>
      %213 = vector.shape_cast %212 : vector<1x16x16xf32> to vector<16x16xf32>
      %214 = vector.broadcast %211 : f32 to vector<16x16xf32>
      %215 = arith.mulf %214, %213 : vector<16x16xf32>
      %216 = arith.addf %210, %215 : vector<16x16xf32>
      %cst_82 = arith.constant 2.500000e-01 : f32
      %217 = arith.mulf %30, %cst_82 : f32
      %c0_83 = arith.constant 0 : index
      %c2_84 = arith.constant 2 : index
      %c3_85 = arith.constant 3 : index
      %218 = vector.load %arg5[%c0_83, %c2_84, %c3_85] : memref<2x22x22xf32, #tpu.memory_space<vmem>>, vector<1x16x16xf32>
      %219 = vector.shape_cast %218 : vector<1x16x16xf32> to vector<16x16xf32>
      %220 = vector.broadcast %217 : f32 to vector<16x16xf32>
      %221 = arith.mulf %220, %219 : vector<16x16xf32>
      %222 = arith.addf %216, %221 : vector<16x16xf32>
      %cst_86 = arith.constant 2.500000e-01 : f32
      %223 = arith.mulf %31, %cst_86 : f32
      %c0_87 = arith.constant 0 : index
      %c2_88 = arith.constant 2 : index
      %c4_89 = arith.constant 4 : index
      %224 = vector.load %arg5[%c0_87, %c2_88, %c4_89] : memref<2x22x22xf32, #tpu.memory_space<vmem>>, vector<1x16x16xf32>
      %225 = vector.shape_cast %224 : vector<1x16x16xf32> to vector<16x16xf32>
      %226 = vector.broadcast %223 : f32 to vector<16x16xf32>
      %227 = arith.mulf %226, %225 : vector<16x16xf32>
      %228 = arith.addf %222, %227 : vector<16x16xf32>
      %cst_90 = arith.constant 2.500000e-01 : f32
      %229 = arith.mulf %32, %cst_90 : f32
      %c0_91 = arith.constant 0 : index
      %c2_92 = arith.constant 2 : index
      %c5_93 = arith.constant 5 : index
      %230 = vector.load %arg5[%c0_91, %c2_92, %c5_93] : memref<2x22x22xf32, #tpu.memory_space<vmem>>, vector<1x16x16xf32>
      %231 = vector.shape_cast %230 : vector<1x16x16xf32> to vector<16x16xf32>
      %232 = vector.broadcast %229 : f32 to vector<16x16xf32>
      %233 = arith.mulf %232, %231 : vector<16x16xf32>
      %234 = arith.addf %228, %233 : vector<16x16xf32>
      %cst_94 = arith.constant 2.500000e-01 : f32
      %235 = arith.mulf %33, %cst_94 : f32
      %c0_95 = arith.constant 0 : index
      %c2_96 = arith.constant 2 : index
      %c6_97 = arith.constant 6 : index
      %236 = vector.load %arg5[%c0_95, %c2_96, %c6_97] : memref<2x22x22xf32, #tpu.memory_space<vmem>>, vector<1x16x16xf32>
      %237 = vector.shape_cast %236 : vector<1x16x16xf32> to vector<16x16xf32>
      %238 = vector.broadcast %235 : f32 to vector<16x16xf32>
      %239 = arith.mulf %238, %237 : vector<16x16xf32>
      %240 = arith.addf %234, %239 : vector<16x16xf32>
      %cst_98 = arith.constant 2.500000e-01 : f32
      %241 = arith.mulf %34, %cst_98 : f32
      %c0_99 = arith.constant 0 : index
      %c3_100 = arith.constant 3 : index
      %c0_101 = arith.constant 0 : index
      %242 = vector.load %arg5[%c0_99, %c3_100, %c0_101] : memref<2x22x22xf32, #tpu.memory_space<vmem>>, vector<1x16x16xf32>
      %243 = vector.shape_cast %242 : vector<1x16x16xf32> to vector<16x16xf32>
      %244 = vector.broadcast %241 : f32 to vector<16x16xf32>
      %245 = arith.mulf %244, %243 : vector<16x16xf32>
      %246 = arith.addf %198, %245 : vector<16x16xf32>
      %cst_102 = arith.constant 2.500000e-01 : f32
      %247 = arith.mulf %35, %cst_102 : f32
      %c0_103 = arith.constant 0 : index
      %c3_104 = arith.constant 3 : index
      %c1_105 = arith.constant 1 : index
      %248 = vector.load %arg5[%c0_103, %c3_104, %c1_105] : memref<2x22x22xf32, #tpu.memory_space<vmem>>, vector<1x16x16xf32>
      %249 = vector.shape_cast %248 : vector<1x16x16xf32> to vector<16x16xf32>
      %250 = vector.broadcast %247 : f32 to vector<16x16xf32>
      %251 = arith.mulf %250, %249 : vector<16x16xf32>
      %252 = arith.addf %246, %251 : vector<16x16xf32>
      %cst_106 = arith.constant 2.500000e-01 : f32
      %253 = arith.mulf %36, %cst_106 : f32
      %c0_107 = arith.constant 0 : index
      %c3_108 = arith.constant 3 : index
      %c2_109 = arith.constant 2 : index
      %254 = vector.load %arg5[%c0_107, %c3_108, %c2_109] : memref<2x22x22xf32, #tpu.memory_space<vmem>>, vector<1x16x16xf32>
      %255 = vector.shape_cast %254 : vector<1x16x16xf32> to vector<16x16xf32>
      %256 = vector.broadcast %253 : f32 to vector<16x16xf32>
      %257 = arith.mulf %256, %255 : vector<16x16xf32>
      %258 = arith.addf %252, %257 : vector<16x16xf32>
      %cst_110 = arith.constant 2.500000e-01 : f32
      %259 = arith.mulf %37, %cst_110 : f32
      %c0_111 = arith.constant 0 : index
      %c3_112 = arith.constant 3 : index
      %c3_113 = arith.constant 3 : index
      %260 = vector.load %arg5[%c0_111, %c3_112, %c3_113] : memref<2x22x22xf32, #tpu.memory_space<vmem>>, vector<1x16x16xf32>
      %261 = vector.shape_cast %260 : vector<1x16x16xf32> to vector<16x16xf32>
      %262 = vector.broadcast %259 : f32 to vector<16x16xf32>
      %263 = arith.mulf %262, %261 : vector<16x16xf32>
      %264 = arith.addf %258, %263 : vector<16x16xf32>
      %cst_114 = arith.constant 2.500000e-01 : f32
      %265 = arith.mulf %38, %cst_114 : f32
      %c0_115 = arith.constant 0 : index
      %c3_116 = arith.constant 3 : index
      %c4_117 = arith.constant 4 : index
      %266 = vector.load %arg5[%c0_115, %c3_116, %c4_117] : memref<2x22x22xf32, #tpu.memory_space<vmem>>, vector<1x16x16xf32>
      %267 = vector.shape_cast %266 : vector<1x16x16xf32> to vector<16x16xf32>
      %268 = vector.broadcast %265 : f32 to vector<16x16xf32>
      %269 = arith.mulf %268, %267 : vector<16x16xf32>
      %270 = arith.addf %264, %269 : vector<16x16xf32>
      %cst_118 = arith.constant 2.500000e-01 : f32
      %271 = arith.mulf %39, %cst_118 : f32
      %c0_119 = arith.constant 0 : index
      %c3_120 = arith.constant 3 : index
      %c5_121 = arith.constant 5 : index
      %272 = vector.load %arg5[%c0_119, %c3_120, %c5_121] : memref<2x22x22xf32, #tpu.memory_space<vmem>>, vector<1x16x16xf32>
      %273 = vector.shape_cast %272 : vector<1x16x16xf32> to vector<16x16xf32>
      %274 = vector.broadcast %271 : f32 to vector<16x16xf32>
      %275 = arith.mulf %274, %273 : vector<16x16xf32>
      %276 = arith.addf %270, %275 : vector<16x16xf32>
      %cst_122 = arith.constant 2.500000e-01 : f32
      %277 = arith.mulf %40, %cst_122 : f32
      %c0_123 = arith.constant 0 : index
      %c3_124 = arith.constant 3 : index
      %c6_125 = arith.constant 6 : index
      %278 = vector.load %arg5[%c0_123, %c3_124, %c6_125] : memref<2x22x22xf32, #tpu.memory_space<vmem>>, vector<1x16x16xf32>
      %279 = vector.shape_cast %278 : vector<1x16x16xf32> to vector<16x16xf32>
      %280 = vector.broadcast %277 : f32 to vector<16x16xf32>
      %281 = arith.mulf %280, %279 : vector<16x16xf32>
      %282 = arith.addf %276, %281 : vector<16x16xf32>
      %cst_126 = arith.constant 2.500000e-01 : f32
      %283 = arith.mulf %41, %cst_126 : f32
      %c0_127 = arith.constant 0 : index
      %c4_128 = arith.constant 4 : index
      %c0_129 = arith.constant 0 : index
      %284 = vector.load %arg5[%c0_127, %c4_128, %c0_129] : memref<2x22x22xf32, #tpu.memory_space<vmem>>, vector<1x16x16xf32>
      %285 = vector.shape_cast %284 : vector<1x16x16xf32> to vector<16x16xf32>
      %286 = vector.broadcast %283 : f32 to vector<16x16xf32>
      %287 = arith.mulf %286, %285 : vector<16x16xf32>
      %288 = arith.addf %240, %287 : vector<16x16xf32>
      %cst_130 = arith.constant 2.500000e-01 : f32
      %289 = arith.mulf %42, %cst_130 : f32
      %c0_131 = arith.constant 0 : index
      %c4_132 = arith.constant 4 : index
      %c1_133 = arith.constant 1 : index
      %290 = vector.load %arg5[%c0_131, %c4_132, %c1_133] : memref<2x22x22xf32, #tpu.memory_space<vmem>>, vector<1x16x16xf32>
      %291 = vector.shape_cast %290 : vector<1x16x16xf32> to vector<16x16xf32>
      %292 = vector.broadcast %289 : f32 to vector<16x16xf32>
      %293 = arith.mulf %292, %291 : vector<16x16xf32>
      %294 = arith.addf %288, %293 : vector<16x16xf32>
      %cst_134 = arith.constant 2.500000e-01 : f32
      %295 = arith.mulf %43, %cst_134 : f32
      %c0_135 = arith.constant 0 : index
      %c4_136 = arith.constant 4 : index
      %c2_137 = arith.constant 2 : index
      %296 = vector.load %arg5[%c0_135, %c4_136, %c2_137] : memref<2x22x22xf32, #tpu.memory_space<vmem>>, vector<1x16x16xf32>
      %297 = vector.shape_cast %296 : vector<1x16x16xf32> to vector<16x16xf32>
      %298 = vector.broadcast %295 : f32 to vector<16x16xf32>
      %299 = arith.mulf %298, %297 : vector<16x16xf32>
      %300 = arith.addf %294, %299 : vector<16x16xf32>
      %cst_138 = arith.constant 2.500000e-01 : f32
      %301 = arith.mulf %44, %cst_138 : f32
      %c0_139 = arith.constant 0 : index
      %c4_140 = arith.constant 4 : index
      %c3_141 = arith.constant 3 : index
      %302 = vector.load %arg5[%c0_139, %c4_140, %c3_141] : memref<2x22x22xf32, #tpu.memory_space<vmem>>, vector<1x16x16xf32>
      %303 = vector.shape_cast %302 : vector<1x16x16xf32> to vector<16x16xf32>
      %304 = vector.broadcast %301 : f32 to vector<16x16xf32>
      %305 = arith.mulf %304, %303 : vector<16x16xf32>
      %306 = arith.addf %300, %305 : vector<16x16xf32>
      %cst_142 = arith.constant 2.500000e-01 : f32
      %307 = arith.mulf %45, %cst_142 : f32
      %c0_143 = arith.constant 0 : index
      %c4_144 = arith.constant 4 : index
      %c4_145 = arith.constant 4 : index
      %308 = vector.load %arg5[%c0_143, %c4_144, %c4_145] : memref<2x22x22xf32, #tpu.memory_space<vmem>>, vector<1x16x16xf32>
      %309 = vector.shape_cast %308 : vector<1x16x16xf32> to vector<16x16xf32>
      %310 = vector.broadcast %307 : f32 to vector<16x16xf32>
      %311 = arith.mulf %310, %309 : vector<16x16xf32>
      %312 = arith.addf %306, %311 : vector<16x16xf32>
      %cst_146 = arith.constant 2.500000e-01 : f32
      %313 = arith.mulf %46, %cst_146 : f32
      %c0_147 = arith.constant 0 : index
      %c4_148 = arith.constant 4 : index
      %c5_149 = arith.constant 5 : index
      %314 = vector.load %arg5[%c0_147, %c4_148, %c5_149] : memref<2x22x22xf32, #tpu.memory_space<vmem>>, vector<1x16x16xf32>
      %315 = vector.shape_cast %314 : vector<1x16x16xf32> to vector<16x16xf32>
      %316 = vector.broadcast %313 : f32 to vector<16x16xf32>
      %317 = arith.mulf %316, %315 : vector<16x16xf32>
      %318 = arith.addf %312, %317 : vector<16x16xf32>
      %cst_150 = arith.constant 2.500000e-01 : f32
      %319 = arith.mulf %47, %cst_150 : f32
      %c0_151 = arith.constant 0 : index
      %c4_152 = arith.constant 4 : index
      %c6_153 = arith.constant 6 : index
      %320 = vector.load %arg5[%c0_151, %c4_152, %c6_153] : memref<2x22x22xf32, #tpu.memory_space<vmem>>, vector<1x16x16xf32>
      %321 = vector.shape_cast %320 : vector<1x16x16xf32> to vector<16x16xf32>
      %322 = vector.broadcast %319 : f32 to vector<16x16xf32>
      %323 = arith.mulf %322, %321 : vector<16x16xf32>
      %324 = arith.addf %318, %323 : vector<16x16xf32>
      %cst_154 = arith.constant 2.500000e-01 : f32
      %325 = arith.mulf %48, %cst_154 : f32
      %c0_155 = arith.constant 0 : index
      %c5_156 = arith.constant 5 : index
      %c0_157 = arith.constant 0 : index
      %326 = vector.load %arg5[%c0_155, %c5_156, %c0_157] : memref<2x22x22xf32, #tpu.memory_space<vmem>>, vector<1x16x16xf32>
      %327 = vector.shape_cast %326 : vector<1x16x16xf32> to vector<16x16xf32>
      %328 = vector.broadcast %325 : f32 to vector<16x16xf32>
      %329 = arith.mulf %328, %327 : vector<16x16xf32>
      %330 = arith.addf %282, %329 : vector<16x16xf32>
      %cst_158 = arith.constant 2.500000e-01 : f32
      %331 = arith.mulf %49, %cst_158 : f32
      %c0_159 = arith.constant 0 : index
      %c5_160 = arith.constant 5 : index
      %c1_161 = arith.constant 1 : index
      %332 = vector.load %arg5[%c0_159, %c5_160, %c1_161] : memref<2x22x22xf32, #tpu.memory_space<vmem>>, vector<1x16x16xf32>
      %333 = vector.shape_cast %332 : vector<1x16x16xf32> to vector<16x16xf32>
      %334 = vector.broadcast %331 : f32 to vector<16x16xf32>
      %335 = arith.mulf %334, %333 : vector<16x16xf32>
      %336 = arith.addf %330, %335 : vector<16x16xf32>
      %cst_162 = arith.constant 2.500000e-01 : f32
      %337 = arith.mulf %50, %cst_162 : f32
      %c0_163 = arith.constant 0 : index
      %c5_164 = arith.constant 5 : index
      %c2_165 = arith.constant 2 : index
      %338 = vector.load %arg5[%c0_163, %c5_164, %c2_165] : memref<2x22x22xf32, #tpu.memory_space<vmem>>, vector<1x16x16xf32>
      %339 = vector.shape_cast %338 : vector<1x16x16xf32> to vector<16x16xf32>
      %340 = vector.broadcast %337 : f32 to vector<16x16xf32>
      %341 = arith.mulf %340, %339 : vector<16x16xf32>
      %342 = arith.addf %336, %341 : vector<16x16xf32>
      %cst_166 = arith.constant 2.500000e-01 : f32
      %343 = arith.mulf %51, %cst_166 : f32
      %c0_167 = arith.constant 0 : index
      %c5_168 = arith.constant 5 : index
      %c3_169 = arith.constant 3 : index
      %344 = vector.load %arg5[%c0_167, %c5_168, %c3_169] : memref<2x22x22xf32, #tpu.memory_space<vmem>>, vector<1x16x16xf32>
      %345 = vector.shape_cast %344 : vector<1x16x16xf32> to vector<16x16xf32>
      %346 = vector.broadcast %343 : f32 to vector<16x16xf32>
      %347 = arith.mulf %346, %345 : vector<16x16xf32>
      %348 = arith.addf %342, %347 : vector<16x16xf32>
      %cst_170 = arith.constant 2.500000e-01 : f32
      %349 = arith.mulf %52, %cst_170 : f32
      %c0_171 = arith.constant 0 : index
      %c5_172 = arith.constant 5 : index
      %c4_173 = arith.constant 4 : index
      %350 = vector.load %arg5[%c0_171, %c5_172, %c4_173] : memref<2x22x22xf32, #tpu.memory_space<vmem>>, vector<1x16x16xf32>
      %351 = vector.shape_cast %350 : vector<1x16x16xf32> to vector<16x16xf32>
      %352 = vector.broadcast %349 : f32 to vector<16x16xf32>
      %353 = arith.mulf %352, %351 : vector<16x16xf32>
      %354 = arith.addf %348, %353 : vector<16x16xf32>
      %cst_174 = arith.constant 2.500000e-01 : f32
      %355 = arith.mulf %53, %cst_174 : f32
      %c0_175 = arith.constant 0 : index
      %c5_176 = arith.constant 5 : index
      %c5_177 = arith.constant 5 : index
      %356 = vector.load %arg5[%c0_175, %c5_176, %c5_177] : memref<2x22x22xf32, #tpu.memory_space<vmem>>, vector<1x16x16xf32>
      %357 = vector.shape_cast %356 : vector<1x16x16xf32> to vector<16x16xf32>
      %358 = vector.broadcast %355 : f32 to vector<16x16xf32>
      %359 = arith.mulf %358, %357 : vector<16x16xf32>
      %360 = arith.addf %354, %359 : vector<16x16xf32>
      %cst_178 = arith.constant 2.500000e-01 : f32
      %361 = arith.mulf %54, %cst_178 : f32
      %c0_179 = arith.constant 0 : index
      %c5_180 = arith.constant 5 : index
      %c6_181 = arith.constant 6 : index
      %362 = vector.load %arg5[%c0_179, %c5_180, %c6_181] : memref<2x22x22xf32, #tpu.memory_space<vmem>>, vector<1x16x16xf32>
      %363 = vector.shape_cast %362 : vector<1x16x16xf32> to vector<16x16xf32>
      %364 = vector.broadcast %361 : f32 to vector<16x16xf32>
      %365 = arith.mulf %364, %363 : vector<16x16xf32>
      %366 = arith.addf %360, %365 : vector<16x16xf32>
      %cst_182 = arith.constant 2.500000e-01 : f32
      %367 = arith.mulf %55, %cst_182 : f32
      %c0_183 = arith.constant 0 : index
      %c6_184 = arith.constant 6 : index
      %c0_185 = arith.constant 0 : index
      %368 = vector.load %arg5[%c0_183, %c6_184, %c0_185] : memref<2x22x22xf32, #tpu.memory_space<vmem>>, vector<1x16x16xf32>
      %369 = vector.shape_cast %368 : vector<1x16x16xf32> to vector<16x16xf32>
      %370 = vector.broadcast %367 : f32 to vector<16x16xf32>
      %371 = arith.mulf %370, %369 : vector<16x16xf32>
      %372 = arith.addf %324, %371 : vector<16x16xf32>
      %cst_186 = arith.constant 2.500000e-01 : f32
      %373 = arith.mulf %56, %cst_186 : f32
      %c0_187 = arith.constant 0 : index
      %c6_188 = arith.constant 6 : index
      %c1_189 = arith.constant 1 : index
      %374 = vector.load %arg5[%c0_187, %c6_188, %c1_189] : memref<2x22x22xf32, #tpu.memory_space<vmem>>, vector<1x16x16xf32>
      %375 = vector.shape_cast %374 : vector<1x16x16xf32> to vector<16x16xf32>
      %376 = vector.broadcast %373 : f32 to vector<16x16xf32>
      %377 = arith.mulf %376, %375 : vector<16x16xf32>
      %378 = arith.addf %372, %377 : vector<16x16xf32>
      %cst_190 = arith.constant 2.500000e-01 : f32
      %379 = arith.mulf %57, %cst_190 : f32
      %c0_191 = arith.constant 0 : index
      %c6_192 = arith.constant 6 : index
      %c2_193 = arith.constant 2 : index
      %380 = vector.load %arg5[%c0_191, %c6_192, %c2_193] : memref<2x22x22xf32, #tpu.memory_space<vmem>>, vector<1x16x16xf32>
      %381 = vector.shape_cast %380 : vector<1x16x16xf32> to vector<16x16xf32>
      %382 = vector.broadcast %379 : f32 to vector<16x16xf32>
      %383 = arith.mulf %382, %381 : vector<16x16xf32>
      %384 = arith.addf %378, %383 : vector<16x16xf32>
      %cst_194 = arith.constant 2.500000e-01 : f32
      %385 = arith.mulf %58, %cst_194 : f32
      %c0_195 = arith.constant 0 : index
      %c6_196 = arith.constant 6 : index
      %c3_197 = arith.constant 3 : index
      %386 = vector.load %arg5[%c0_195, %c6_196, %c3_197] : memref<2x22x22xf32, #tpu.memory_space<vmem>>, vector<1x16x16xf32>
      %387 = vector.shape_cast %386 : vector<1x16x16xf32> to vector<16x16xf32>
      %388 = vector.broadcast %385 : f32 to vector<16x16xf32>
      %389 = arith.mulf %388, %387 : vector<16x16xf32>
      %390 = arith.addf %384, %389 : vector<16x16xf32>
      %cst_198 = arith.constant 2.500000e-01 : f32
      %391 = arith.mulf %59, %cst_198 : f32
      %c0_199 = arith.constant 0 : index
      %c6_200 = arith.constant 6 : index
      %c4_201 = arith.constant 4 : index
      %392 = vector.load %arg5[%c0_199, %c6_200, %c4_201] : memref<2x22x22xf32, #tpu.memory_space<vmem>>, vector<1x16x16xf32>
      %393 = vector.shape_cast %392 : vector<1x16x16xf32> to vector<16x16xf32>
      %394 = vector.broadcast %391 : f32 to vector<16x16xf32>
      %395 = arith.mulf %394, %393 : vector<16x16xf32>
      %396 = arith.addf %390, %395 : vector<16x16xf32>
      %cst_202 = arith.constant 2.500000e-01 : f32
      %397 = arith.mulf %60, %cst_202 : f32
      %c0_203 = arith.constant 0 : index
      %c6_204 = arith.constant 6 : index
      %c5_205 = arith.constant 5 : index
      %398 = vector.load %arg5[%c0_203, %c6_204, %c5_205] : memref<2x22x22xf32, #tpu.memory_space<vmem>>, vector<1x16x16xf32>
      %399 = vector.shape_cast %398 : vector<1x16x16xf32> to vector<16x16xf32>
      %400 = vector.broadcast %397 : f32 to vector<16x16xf32>
      %401 = arith.mulf %400, %399 : vector<16x16xf32>
      %402 = arith.addf %396, %401 : vector<16x16xf32>
      %cst_206 = arith.constant 2.500000e-01 : f32
      %403 = arith.mulf %61, %cst_206 : f32
      %c0_207 = arith.constant 0 : index
      %c6_208 = arith.constant 6 : index
      %c6_209 = arith.constant 6 : index
      %404 = vector.load %arg5[%c0_207, %c6_208, %c6_209] : memref<2x22x22xf32, #tpu.memory_space<vmem>>, vector<1x16x16xf32>
      %405 = vector.shape_cast %404 : vector<1x16x16xf32> to vector<16x16xf32>
      %406 = vector.broadcast %403 : f32 to vector<16x16xf32>
      %407 = arith.mulf %406, %405 : vector<16x16xf32>
      %408 = arith.addf %402, %407 : vector<16x16xf32>
      %c1_210 = arith.constant 1 : index
      %c0_211 = arith.constant 0 : index
      %c0_212 = arith.constant 0 : index
      %409 = vector.load %arg5[%c1_210, %c0_211, %c0_212] : memref<2x22x22xf32, #tpu.memory_space<vmem>>, vector<1x16x16xf32>
      %410 = vector.shape_cast %409 : vector<1x16x16xf32> to vector<16x16xf32>
      %411 = vector.broadcast %62 : f32 to vector<16x16xf32>
      %412 = arith.mulf %411, %410 : vector<16x16xf32>
      %413 = arith.addf %113, %412 : vector<16x16xf32>
      %c1_213 = arith.constant 1 : index
      %c0_214 = arith.constant 0 : index
      %c1_215 = arith.constant 1 : index
      %414 = vector.load %arg5[%c1_213, %c0_214, %c1_215] : memref<2x22x22xf32, #tpu.memory_space<vmem>>, vector<1x16x16xf32>
      %415 = vector.shape_cast %414 : vector<1x16x16xf32> to vector<16x16xf32>
      %416 = vector.broadcast %63 : f32 to vector<16x16xf32>
      %417 = arith.mulf %416, %415 : vector<16x16xf32>
      %418 = arith.addf %413, %417 : vector<16x16xf32>
      %c1_216 = arith.constant 1 : index
      %c0_217 = arith.constant 0 : index
      %c2_218 = arith.constant 2 : index
      %419 = vector.load %arg5[%c1_216, %c0_217, %c2_218] : memref<2x22x22xf32, #tpu.memory_space<vmem>>, vector<1x16x16xf32>
      %420 = vector.shape_cast %419 : vector<1x16x16xf32> to vector<16x16xf32>
      %421 = vector.broadcast %64 : f32 to vector<16x16xf32>
      %422 = arith.mulf %421, %420 : vector<16x16xf32>
      %423 = arith.addf %418, %422 : vector<16x16xf32>
      %c1_219 = arith.constant 1 : index
      %c0_220 = arith.constant 0 : index
      %c3_221 = arith.constant 3 : index
      %424 = vector.load %arg5[%c1_219, %c0_220, %c3_221] : memref<2x22x22xf32, #tpu.memory_space<vmem>>, vector<1x16x16xf32>
      %425 = vector.shape_cast %424 : vector<1x16x16xf32> to vector<16x16xf32>
      %426 = vector.broadcast %65 : f32 to vector<16x16xf32>
      %427 = arith.mulf %426, %425 : vector<16x16xf32>
      %428 = arith.addf %423, %427 : vector<16x16xf32>
      %c1_222 = arith.constant 1 : index
      %c0_223 = arith.constant 0 : index
      %c4_224 = arith.constant 4 : index
      %429 = vector.load %arg5[%c1_222, %c0_223, %c4_224] : memref<2x22x22xf32, #tpu.memory_space<vmem>>, vector<1x16x16xf32>
      %430 = vector.shape_cast %429 : vector<1x16x16xf32> to vector<16x16xf32>
      %431 = vector.broadcast %66 : f32 to vector<16x16xf32>
      %432 = arith.mulf %431, %430 : vector<16x16xf32>
      %433 = arith.addf %428, %432 : vector<16x16xf32>
      %c1_225 = arith.constant 1 : index
      %c0_226 = arith.constant 0 : index
      %c5_227 = arith.constant 5 : index
      %434 = vector.load %arg5[%c1_225, %c0_226, %c5_227] : memref<2x22x22xf32, #tpu.memory_space<vmem>>, vector<1x16x16xf32>
      %435 = vector.shape_cast %434 : vector<1x16x16xf32> to vector<16x16xf32>
      %436 = vector.broadcast %67 : f32 to vector<16x16xf32>
      %437 = arith.mulf %436, %435 : vector<16x16xf32>
      %438 = arith.addf %433, %437 : vector<16x16xf32>
      %c1_228 = arith.constant 1 : index
      %c0_229 = arith.constant 0 : index
      %c6_230 = arith.constant 6 : index
      %439 = vector.load %arg5[%c1_228, %c0_229, %c6_230] : memref<2x22x22xf32, #tpu.memory_space<vmem>>, vector<1x16x16xf32>
      %440 = vector.shape_cast %439 : vector<1x16x16xf32> to vector<16x16xf32>
      %441 = vector.broadcast %68 : f32 to vector<16x16xf32>
      %442 = arith.mulf %441, %440 : vector<16x16xf32>
      %443 = arith.addf %438, %442 : vector<16x16xf32>
      %c1_231 = arith.constant 1 : index
      %c1_232 = arith.constant 1 : index
      %c0_233 = arith.constant 0 : index
      %444 = vector.load %arg5[%c1_231, %c1_232, %c0_233] : memref<2x22x22xf32, #tpu.memory_space<vmem>>, vector<1x16x16xf32>
      %445 = vector.shape_cast %444 : vector<1x16x16xf32> to vector<16x16xf32>
      %446 = vector.broadcast %69 : f32 to vector<16x16xf32>
      %447 = arith.mulf %446, %445 : vector<16x16xf32>
      %448 = arith.addf %114, %447 : vector<16x16xf32>
      %c1_234 = arith.constant 1 : index
      %c1_235 = arith.constant 1 : index
      %c1_236 = arith.constant 1 : index
      %449 = vector.load %arg5[%c1_234, %c1_235, %c1_236] : memref<2x22x22xf32, #tpu.memory_space<vmem>>, vector<1x16x16xf32>
      %450 = vector.shape_cast %449 : vector<1x16x16xf32> to vector<16x16xf32>
      %451 = vector.broadcast %70 : f32 to vector<16x16xf32>
      %452 = arith.mulf %451, %450 : vector<16x16xf32>
      %453 = arith.addf %448, %452 : vector<16x16xf32>
      %c1_237 = arith.constant 1 : index
      %c1_238 = arith.constant 1 : index
      %c2_239 = arith.constant 2 : index
      %454 = vector.load %arg5[%c1_237, %c1_238, %c2_239] : memref<2x22x22xf32, #tpu.memory_space<vmem>>, vector<1x16x16xf32>
      %455 = vector.shape_cast %454 : vector<1x16x16xf32> to vector<16x16xf32>
      %456 = vector.broadcast %71 : f32 to vector<16x16xf32>
      %457 = arith.mulf %456, %455 : vector<16x16xf32>
      %458 = arith.addf %453, %457 : vector<16x16xf32>
      %c1_240 = arith.constant 1 : index
      %c1_241 = arith.constant 1 : index
      %c3_242 = arith.constant 3 : index
      %459 = vector.load %arg5[%c1_240, %c1_241, %c3_242] : memref<2x22x22xf32, #tpu.memory_space<vmem>>, vector<1x16x16xf32>
      %460 = vector.shape_cast %459 : vector<1x16x16xf32> to vector<16x16xf32>
      %461 = vector.broadcast %72 : f32 to vector<16x16xf32>
      %462 = arith.mulf %461, %460 : vector<16x16xf32>
      %463 = arith.addf %458, %462 : vector<16x16xf32>
      %c1_243 = arith.constant 1 : index
      %c1_244 = arith.constant 1 : index
      %c4_245 = arith.constant 4 : index
      %464 = vector.load %arg5[%c1_243, %c1_244, %c4_245] : memref<2x22x22xf32, #tpu.memory_space<vmem>>, vector<1x16x16xf32>
      %465 = vector.shape_cast %464 : vector<1x16x16xf32> to vector<16x16xf32>
      %466 = vector.broadcast %73 : f32 to vector<16x16xf32>
      %467 = arith.mulf %466, %465 : vector<16x16xf32>
      %468 = arith.addf %463, %467 : vector<16x16xf32>
      %c1_246 = arith.constant 1 : index
      %c1_247 = arith.constant 1 : index
      %c5_248 = arith.constant 5 : index
      %469 = vector.load %arg5[%c1_246, %c1_247, %c5_248] : memref<2x22x22xf32, #tpu.memory_space<vmem>>, vector<1x16x16xf32>
      %470 = vector.shape_cast %469 : vector<1x16x16xf32> to vector<16x16xf32>
      %471 = vector.broadcast %74 : f32 to vector<16x16xf32>
      %472 = arith.mulf %471, %470 : vector<16x16xf32>
      %473 = arith.addf %468, %472 : vector<16x16xf32>
      %c1_249 = arith.constant 1 : index
      %c1_250 = arith.constant 1 : index
      %c6_251 = arith.constant 6 : index
      %474 = vector.load %arg5[%c1_249, %c1_250, %c6_251] : memref<2x22x22xf32, #tpu.memory_space<vmem>>, vector<1x16x16xf32>
      %475 = vector.shape_cast %474 : vector<1x16x16xf32> to vector<16x16xf32>
      %476 = vector.broadcast %75 : f32 to vector<16x16xf32>
      %477 = arith.mulf %476, %475 : vector<16x16xf32>
      %478 = arith.addf %473, %477 : vector<16x16xf32>
      %c1_252 = arith.constant 1 : index
      %c2_253 = arith.constant 2 : index
      %c0_254 = arith.constant 0 : index
      %479 = vector.load %arg5[%c1_252, %c2_253, %c0_254] : memref<2x22x22xf32, #tpu.memory_space<vmem>>, vector<1x16x16xf32>
      %480 = vector.shape_cast %479 : vector<1x16x16xf32> to vector<16x16xf32>
      %481 = vector.broadcast %76 : f32 to vector<16x16xf32>
      %482 = arith.mulf %481, %480 : vector<16x16xf32>
      %483 = arith.addf %443, %482 : vector<16x16xf32>
      %c1_255 = arith.constant 1 : index
      %c2_256 = arith.constant 2 : index
      %c1_257 = arith.constant 1 : index
      %484 = vector.load %arg5[%c1_255, %c2_256, %c1_257] : memref<2x22x22xf32, #tpu.memory_space<vmem>>, vector<1x16x16xf32>
      %485 = vector.shape_cast %484 : vector<1x16x16xf32> to vector<16x16xf32>
      %486 = vector.broadcast %77 : f32 to vector<16x16xf32>
      %487 = arith.mulf %486, %485 : vector<16x16xf32>
      %488 = arith.addf %483, %487 : vector<16x16xf32>
      %c1_258 = arith.constant 1 : index
      %c2_259 = arith.constant 2 : index
      %c2_260 = arith.constant 2 : index
      %489 = vector.load %arg5[%c1_258, %c2_259, %c2_260] : memref<2x22x22xf32, #tpu.memory_space<vmem>>, vector<1x16x16xf32>
      %490 = vector.shape_cast %489 : vector<1x16x16xf32> to vector<16x16xf32>
      %491 = vector.broadcast %78 : f32 to vector<16x16xf32>
      %492 = arith.mulf %491, %490 : vector<16x16xf32>
      %493 = arith.addf %488, %492 : vector<16x16xf32>
      %c1_261 = arith.constant 1 : index
      %c2_262 = arith.constant 2 : index
      %c3_263 = arith.constant 3 : index
      %494 = vector.load %arg5[%c1_261, %c2_262, %c3_263] : memref<2x22x22xf32, #tpu.memory_space<vmem>>, vector<1x16x16xf32>
      %495 = vector.shape_cast %494 : vector<1x16x16xf32> to vector<16x16xf32>
      %496 = vector.broadcast %79 : f32 to vector<16x16xf32>
      %497 = arith.mulf %496, %495 : vector<16x16xf32>
      %498 = arith.addf %493, %497 : vector<16x16xf32>
      %c1_264 = arith.constant 1 : index
      %c2_265 = arith.constant 2 : index
      %c4_266 = arith.constant 4 : index
      %499 = vector.load %arg5[%c1_264, %c2_265, %c4_266] : memref<2x22x22xf32, #tpu.memory_space<vmem>>, vector<1x16x16xf32>
      %500 = vector.shape_cast %499 : vector<1x16x16xf32> to vector<16x16xf32>
      %501 = vector.broadcast %80 : f32 to vector<16x16xf32>
      %502 = arith.mulf %501, %500 : vector<16x16xf32>
      %503 = arith.addf %498, %502 : vector<16x16xf32>
      %c1_267 = arith.constant 1 : index
      %c2_268 = arith.constant 2 : index
      %c5_269 = arith.constant 5 : index
      %504 = vector.load %arg5[%c1_267, %c2_268, %c5_269] : memref<2x22x22xf32, #tpu.memory_space<vmem>>, vector<1x16x16xf32>
      %505 = vector.shape_cast %504 : vector<1x16x16xf32> to vector<16x16xf32>
      %506 = vector.broadcast %81 : f32 to vector<16x16xf32>
      %507 = arith.mulf %506, %505 : vector<16x16xf32>
      %508 = arith.addf %503, %507 : vector<16x16xf32>
      %c1_270 = arith.constant 1 : index
      %c2_271 = arith.constant 2 : index
      %c6_272 = arith.constant 6 : index
      %509 = vector.load %arg5[%c1_270, %c2_271, %c6_272] : memref<2x22x22xf32, #tpu.memory_space<vmem>>, vector<1x16x16xf32>
      %510 = vector.shape_cast %509 : vector<1x16x16xf32> to vector<16x16xf32>
      %511 = vector.broadcast %82 : f32 to vector<16x16xf32>
      %512 = arith.mulf %511, %510 : vector<16x16xf32>
      %513 = arith.addf %508, %512 : vector<16x16xf32>
      %c1_273 = arith.constant 1 : index
      %c3_274 = arith.constant 3 : index
      %c0_275 = arith.constant 0 : index
      %514 = vector.load %arg5[%c1_273, %c3_274, %c0_275] : memref<2x22x22xf32, #tpu.memory_space<vmem>>, vector<1x16x16xf32>
      %515 = vector.shape_cast %514 : vector<1x16x16xf32> to vector<16x16xf32>
      %516 = vector.broadcast %83 : f32 to vector<16x16xf32>
      %517 = arith.mulf %516, %515 : vector<16x16xf32>
      %518 = arith.addf %478, %517 : vector<16x16xf32>
      %c1_276 = arith.constant 1 : index
      %c3_277 = arith.constant 3 : index
      %c1_278 = arith.constant 1 : index
      %519 = vector.load %arg5[%c1_276, %c3_277, %c1_278] : memref<2x22x22xf32, #tpu.memory_space<vmem>>, vector<1x16x16xf32>
      %520 = vector.shape_cast %519 : vector<1x16x16xf32> to vector<16x16xf32>
      %521 = vector.broadcast %84 : f32 to vector<16x16xf32>
      %522 = arith.mulf %521, %520 : vector<16x16xf32>
      %523 = arith.addf %518, %522 : vector<16x16xf32>
      %c1_279 = arith.constant 1 : index
      %c3_280 = arith.constant 3 : index
      %c2_281 = arith.constant 2 : index
      %524 = vector.load %arg5[%c1_279, %c3_280, %c2_281] : memref<2x22x22xf32, #tpu.memory_space<vmem>>, vector<1x16x16xf32>
      %525 = vector.shape_cast %524 : vector<1x16x16xf32> to vector<16x16xf32>
      %526 = vector.broadcast %85 : f32 to vector<16x16xf32>
      %527 = arith.mulf %526, %525 : vector<16x16xf32>
      %528 = arith.addf %523, %527 : vector<16x16xf32>
      %c1_282 = arith.constant 1 : index
      %c3_283 = arith.constant 3 : index
      %c3_284 = arith.constant 3 : index
      %529 = vector.load %arg5[%c1_282, %c3_283, %c3_284] : memref<2x22x22xf32, #tpu.memory_space<vmem>>, vector<1x16x16xf32>
      %530 = vector.shape_cast %529 : vector<1x16x16xf32> to vector<16x16xf32>
      %531 = vector.broadcast %86 : f32 to vector<16x16xf32>
      %532 = arith.mulf %531, %530 : vector<16x16xf32>
      %533 = arith.addf %528, %532 : vector<16x16xf32>
      %c1_285 = arith.constant 1 : index
      %c3_286 = arith.constant 3 : index
      %c4_287 = arith.constant 4 : index
      %534 = vector.load %arg5[%c1_285, %c3_286, %c4_287] : memref<2x22x22xf32, #tpu.memory_space<vmem>>, vector<1x16x16xf32>
      %535 = vector.shape_cast %534 : vector<1x16x16xf32> to vector<16x16xf32>
      %536 = vector.broadcast %87 : f32 to vector<16x16xf32>
      %537 = arith.mulf %536, %535 : vector<16x16xf32>
      %538 = arith.addf %533, %537 : vector<16x16xf32>
      %c1_288 = arith.constant 1 : index
      %c3_289 = arith.constant 3 : index
      %c5_290 = arith.constant 5 : index
      %539 = vector.load %arg5[%c1_288, %c3_289, %c5_290] : memref<2x22x22xf32, #tpu.memory_space<vmem>>, vector<1x16x16xf32>
      %540 = vector.shape_cast %539 : vector<1x16x16xf32> to vector<16x16xf32>
      %541 = vector.broadcast %88 : f32 to vector<16x16xf32>
      %542 = arith.mulf %541, %540 : vector<16x16xf32>
      %543 = arith.addf %538, %542 : vector<16x16xf32>
      %c1_291 = arith.constant 1 : index
      %c3_292 = arith.constant 3 : index
      %c6_293 = arith.constant 6 : index
      %544 = vector.load %arg5[%c1_291, %c3_292, %c6_293] : memref<2x22x22xf32, #tpu.memory_space<vmem>>, vector<1x16x16xf32>
      %545 = vector.shape_cast %544 : vector<1x16x16xf32> to vector<16x16xf32>
      %546 = vector.broadcast %89 : f32 to vector<16x16xf32>
      %547 = arith.mulf %546, %545 : vector<16x16xf32>
      %548 = arith.addf %543, %547 : vector<16x16xf32>
      %c1_294 = arith.constant 1 : index
      %c4_295 = arith.constant 4 : index
      %c0_296 = arith.constant 0 : index
      %549 = vector.load %arg5[%c1_294, %c4_295, %c0_296] : memref<2x22x22xf32, #tpu.memory_space<vmem>>, vector<1x16x16xf32>
      %550 = vector.shape_cast %549 : vector<1x16x16xf32> to vector<16x16xf32>
      %551 = vector.broadcast %90 : f32 to vector<16x16xf32>
      %552 = arith.mulf %551, %550 : vector<16x16xf32>
      %553 = arith.addf %513, %552 : vector<16x16xf32>
      %c1_297 = arith.constant 1 : index
      %c4_298 = arith.constant 4 : index
      %c1_299 = arith.constant 1 : index
      %554 = vector.load %arg5[%c1_297, %c4_298, %c1_299] : memref<2x22x22xf32, #tpu.memory_space<vmem>>, vector<1x16x16xf32>
      %555 = vector.shape_cast %554 : vector<1x16x16xf32> to vector<16x16xf32>
      %556 = vector.broadcast %91 : f32 to vector<16x16xf32>
      %557 = arith.mulf %556, %555 : vector<16x16xf32>
      %558 = arith.addf %553, %557 : vector<16x16xf32>
      %c1_300 = arith.constant 1 : index
      %c4_301 = arith.constant 4 : index
      %c2_302 = arith.constant 2 : index
      %559 = vector.load %arg5[%c1_300, %c4_301, %c2_302] : memref<2x22x22xf32, #tpu.memory_space<vmem>>, vector<1x16x16xf32>
      %560 = vector.shape_cast %559 : vector<1x16x16xf32> to vector<16x16xf32>
      %561 = vector.broadcast %92 : f32 to vector<16x16xf32>
      %562 = arith.mulf %561, %560 : vector<16x16xf32>
      %563 = arith.addf %558, %562 : vector<16x16xf32>
      %c1_303 = arith.constant 1 : index
      %c4_304 = arith.constant 4 : index
      %c3_305 = arith.constant 3 : index
      %564 = vector.load %arg5[%c1_303, %c4_304, %c3_305] : memref<2x22x22xf32, #tpu.memory_space<vmem>>, vector<1x16x16xf32>
      %565 = vector.shape_cast %564 : vector<1x16x16xf32> to vector<16x16xf32>
      %566 = vector.broadcast %93 : f32 to vector<16x16xf32>
      %567 = arith.mulf %566, %565 : vector<16x16xf32>
      %568 = arith.addf %563, %567 : vector<16x16xf32>
      %c1_306 = arith.constant 1 : index
      %c4_307 = arith.constant 4 : index
      %c4_308 = arith.constant 4 : index
      %569 = vector.load %arg5[%c1_306, %c4_307, %c4_308] : memref<2x22x22xf32, #tpu.memory_space<vmem>>, vector<1x16x16xf32>
      %570 = vector.shape_cast %569 : vector<1x16x16xf32> to vector<16x16xf32>
      %571 = vector.broadcast %94 : f32 to vector<16x16xf32>
      %572 = arith.mulf %571, %570 : vector<16x16xf32>
      %573 = arith.addf %568, %572 : vector<16x16xf32>
      %c1_309 = arith.constant 1 : index
      %c4_310 = arith.constant 4 : index
      %c5_311 = arith.constant 5 : index
      %574 = vector.load %arg5[%c1_309, %c4_310, %c5_311] : memref<2x22x22xf32, #tpu.memory_space<vmem>>, vector<1x16x16xf32>
      %575 = vector.shape_cast %574 : vector<1x16x16xf32> to vector<16x16xf32>
      %576 = vector.broadcast %95 : f32 to vector<16x16xf32>
      %577 = arith.mulf %576, %575 : vector<16x16xf32>
      %578 = arith.addf %573, %577 : vector<16x16xf32>
      %c1_312 = arith.constant 1 : index
      %c4_313 = arith.constant 4 : index
      %c6_314 = arith.constant 6 : index
      %579 = vector.load %arg5[%c1_312, %c4_313, %c6_314] : memref<2x22x22xf32, #tpu.memory_space<vmem>>, vector<1x16x16xf32>
      %580 = vector.shape_cast %579 : vector<1x16x16xf32> to vector<16x16xf32>
      %581 = vector.broadcast %96 : f32 to vector<16x16xf32>
      %582 = arith.mulf %581, %580 : vector<16x16xf32>
      %583 = arith.addf %578, %582 : vector<16x16xf32>
      %c1_315 = arith.constant 1 : index
      %c5_316 = arith.constant 5 : index
      %c0_317 = arith.constant 0 : index
      %584 = vector.load %arg5[%c1_315, %c5_316, %c0_317] : memref<2x22x22xf32, #tpu.memory_space<vmem>>, vector<1x16x16xf32>
      %585 = vector.shape_cast %584 : vector<1x16x16xf32> to vector<16x16xf32>
      %586 = vector.broadcast %97 : f32 to vector<16x16xf32>
      %587 = arith.mulf %586, %585 : vector<16x16xf32>
      %588 = arith.addf %548, %587 : vector<16x16xf32>
      %c1_318 = arith.constant 1 : index
      %c5_319 = arith.constant 5 : index
      %c1_320 = arith.constant 1 : index
      %589 = vector.load %arg5[%c1_318, %c5_319, %c1_320] : memref<2x22x22xf32, #tpu.memory_space<vmem>>, vector<1x16x16xf32>
      %590 = vector.shape_cast %589 : vector<1x16x16xf32> to vector<16x16xf32>
      %591 = vector.broadcast %98 : f32 to vector<16x16xf32>
      %592 = arith.mulf %591, %590 : vector<16x16xf32>
      %593 = arith.addf %588, %592 : vector<16x16xf32>
      %c1_321 = arith.constant 1 : index
      %c5_322 = arith.constant 5 : index
      %c2_323 = arith.constant 2 : index
      %594 = vector.load %arg5[%c1_321, %c5_322, %c2_323] : memref<2x22x22xf32, #tpu.memory_space<vmem>>, vector<1x16x16xf32>
      %595 = vector.shape_cast %594 : vector<1x16x16xf32> to vector<16x16xf32>
      %596 = vector.broadcast %99 : f32 to vector<16x16xf32>
      %597 = arith.mulf %596, %595 : vector<16x16xf32>
      %598 = arith.addf %593, %597 : vector<16x16xf32>
      %c1_324 = arith.constant 1 : index
      %c5_325 = arith.constant 5 : index
      %c3_326 = arith.constant 3 : index
      %599 = vector.load %arg5[%c1_324, %c5_325, %c3_326] : memref<2x22x22xf32, #tpu.memory_space<vmem>>, vector<1x16x16xf32>
      %600 = vector.shape_cast %599 : vector<1x16x16xf32> to vector<16x16xf32>
      %601 = vector.broadcast %100 : f32 to vector<16x16xf32>
      %602 = arith.mulf %601, %600 : vector<16x16xf32>
      %603 = arith.addf %598, %602 : vector<16x16xf32>
      %c1_327 = arith.constant 1 : index
      %c5_328 = arith.constant 5 : index
      %c4_329 = arith.constant 4 : index
      %604 = vector.load %arg5[%c1_327, %c5_328, %c4_329] : memref<2x22x22xf32, #tpu.memory_space<vmem>>, vector<1x16x16xf32>
      %605 = vector.shape_cast %604 : vector<1x16x16xf32> to vector<16x16xf32>
      %606 = vector.broadcast %101 : f32 to vector<16x16xf32>
      %607 = arith.mulf %606, %605 : vector<16x16xf32>
      %608 = arith.addf %603, %607 : vector<16x16xf32>
      %c1_330 = arith.constant 1 : index
      %c5_331 = arith.constant 5 : index
      %c5_332 = arith.constant 5 : index
      %609 = vector.load %arg5[%c1_330, %c5_331, %c5_332] : memref<2x22x22xf32, #tpu.memory_space<vmem>>, vector<1x16x16xf32>
      %610 = vector.shape_cast %609 : vector<1x16x16xf32> to vector<16x16xf32>
      %611 = vector.broadcast %102 : f32 to vector<16x16xf32>
      %612 = arith.mulf %611, %610 : vector<16x16xf32>
      %613 = arith.addf %608, %612 : vector<16x16xf32>
      %c1_333 = arith.constant 1 : index
      %c5_334 = arith.constant 5 : index
      %c6_335 = arith.constant 6 : index
      %614 = vector.load %arg5[%c1_333, %c5_334, %c6_335] : memref<2x22x22xf32, #tpu.memory_space<vmem>>, vector<1x16x16xf32>
      %615 = vector.shape_cast %614 : vector<1x16x16xf32> to vector<16x16xf32>
      %616 = vector.broadcast %103 : f32 to vector<16x16xf32>
      %617 = arith.mulf %616, %615 : vector<16x16xf32>
      %618 = arith.addf %613, %617 : vector<16x16xf32>
      %c1_336 = arith.constant 1 : index
      %c6_337 = arith.constant 6 : index
      %c0_338 = arith.constant 0 : index
      %619 = vector.load %arg5[%c1_336, %c6_337, %c0_338] : memref<2x22x22xf32, #tpu.memory_space<vmem>>, vector<1x16x16xf32>
      %620 = vector.shape_cast %619 : vector<1x16x16xf32> to vector<16x16xf32>
      %621 = vector.broadcast %104 : f32 to vector<16x16xf32>
      %622 = arith.mulf %621, %620 : vector<16x16xf32>
      %623 = arith.addf %583, %622 : vector<16x16xf32>
      %c1_339 = arith.constant 1 : index
      %c6_340 = arith.constant 6 : index
      %c1_341 = arith.constant 1 : index
      %624 = vector.load %arg5[%c1_339, %c6_340, %c1_341] : memref<2x22x22xf32, #tpu.memory_space<vmem>>, vector<1x16x16xf32>
      %625 = vector.shape_cast %624 : vector<1x16x16xf32> to vector<16x16xf32>
      %626 = vector.broadcast %105 : f32 to vector<16x16xf32>
      %627 = arith.mulf %626, %625 : vector<16x16xf32>
      %628 = arith.addf %623, %627 : vector<16x16xf32>
      %c1_342 = arith.constant 1 : index
      %c6_343 = arith.constant 6 : index
      %c2_344 = arith.constant 2 : index
      %629 = vector.load %arg5[%c1_342, %c6_343, %c2_344] : memref<2x22x22xf32, #tpu.memory_space<vmem>>, vector<1x16x16xf32>
      %630 = vector.shape_cast %629 : vector<1x16x16xf32> to vector<16x16xf32>
      %631 = vector.broadcast %106 : f32 to vector<16x16xf32>
      %632 = arith.mulf %631, %630 : vector<16x16xf32>
      %633 = arith.addf %628, %632 : vector<16x16xf32>
      %c1_345 = arith.constant 1 : index
      %c6_346 = arith.constant 6 : index
      %c3_347 = arith.constant 3 : index
      %634 = vector.load %arg5[%c1_345, %c6_346, %c3_347] : memref<2x22x22xf32, #tpu.memory_space<vmem>>, vector<1x16x16xf32>
      %635 = vector.shape_cast %634 : vector<1x16x16xf32> to vector<16x16xf32>
      %636 = vector.broadcast %107 : f32 to vector<16x16xf32>
      %637 = arith.mulf %636, %635 : vector<16x16xf32>
      %638 = arith.addf %633, %637 : vector<16x16xf32>
      %c1_348 = arith.constant 1 : index
      %c6_349 = arith.constant 6 : index
      %c4_350 = arith.constant 4 : index
      %639 = vector.load %arg5[%c1_348, %c6_349, %c4_350] : memref<2x22x22xf32, #tpu.memory_space<vmem>>, vector<1x16x16xf32>
      %640 = vector.shape_cast %639 : vector<1x16x16xf32> to vector<16x16xf32>
      %641 = vector.broadcast %108 : f32 to vector<16x16xf32>
      %642 = arith.mulf %641, %640 : vector<16x16xf32>
      %643 = arith.addf %638, %642 : vector<16x16xf32>
      %c1_351 = arith.constant 1 : index
      %c6_352 = arith.constant 6 : index
      %c5_353 = arith.constant 5 : index
      %644 = vector.load %arg5[%c1_351, %c6_352, %c5_353] : memref<2x22x22xf32, #tpu.memory_space<vmem>>, vector<1x16x16xf32>
      %645 = vector.shape_cast %644 : vector<1x16x16xf32> to vector<16x16xf32>
      %646 = vector.broadcast %109 : f32 to vector<16x16xf32>
      %647 = arith.mulf %646, %645 : vector<16x16xf32>
      %648 = arith.addf %643, %647 : vector<16x16xf32>
      %c1_354 = arith.constant 1 : index
      %c6_355 = arith.constant 6 : index
      %c6_356 = arith.constant 6 : index
      %649 = vector.load %arg5[%c1_354, %c6_355, %c6_356] : memref<2x22x22xf32, #tpu.memory_space<vmem>>, vector<1x16x16xf32>
      %650 = vector.shape_cast %649 : vector<1x16x16xf32> to vector<16x16xf32>
      %651 = vector.broadcast %110 : f32 to vector<16x16xf32>
      %652 = arith.mulf %651, %650 : vector<16x16xf32>
      %653 = arith.addf %648, %652 : vector<16x16xf32>
      %654 = arith.addf %408, %366 : vector<16x16xf32>
      %655 = arith.addf %653, %618 : vector<16x16xf32>
      %656 = arith.addf %654, %655 : vector<16x16xf32>
      %657 = arith.negf %656 : vector<16x16xf32>
      %658 = math.exp %657 : vector<16x16xf32>
      %cst_357 = arith.constant 1.000000e+00 : f32
      %659 = vector.broadcast %cst_357 : f32 to vector<16x16xf32>
      %660 = arith.addf %659, %658 : vector<16x16xf32>
      %661 = arith.divf %659, %660 : vector<16x16xf32>
      %c0_358 = arith.constant 0 : index
      %c0_359 = arith.constant 0 : index
      %c0_360 = arith.constant 0 : index
      %c0_361 = arith.constant 0 : index
      %662 = vector.load %arg4[%c0_358, %c0_359, %c0_360, %c0_361] : memref<1x1x16x16xf32, #tpu.memory_space<vmem>>, vector<1x1x16x16xf32>
      %663 = vector.shape_cast %662 : vector<1x1x16x16xf32> to vector<16x16xf32>
      %664 = vector.shape_cast %661 : vector<16x16xf32> to vector<1x1x16x16xf32>
      tpu.vector_store %arg4[%c0_358, %c0_359, %c0_360, %c0_361], %664 {strides = array<i32>} : memref<1x1x16x16xf32, #tpu.memory_space<vmem>>, vector<1x1x16x16xf32>,
    } else {
    }
    return
  }
  func.func @transform_0(%arg0: i32, %arg1: i32) -> i32 {
    %c0_i32 = arith.constant 0 : i32
    %c0_i32_0 = arith.constant 0 : i32
    return %c0_i32 : i32
  }
  func.func @transform_1(%arg0: i32, %arg1: i32) -> (i32, i32, i32, i32) {
    %c0_i32 = arith.constant 0 : i32
    %c0_i32_0 = arith.constant 0 : i32
    %c0_i32_1 = arith.constant 0 : i32
    return %arg0, %arg1, %c0_i32, %c0_i32_0 : i32, i32, i32, i32
  }
  func.func @transform_2(%arg0: i32, %arg1: i32) -> (i32, i32, i32, i32) {
    %c0_i32 = arith.constant 0 : i32
    %c0_i32_0 = arith.constant 0 : i32
    %c0_i32_1 = arith.constant 0 : i32
    %c0_i32_2 = arith.constant 0 : i32
    return %arg0, %c0_i32, %c0_i32_0, %c0_i32_1 : i32, i32, i32, i32
  }
}

</mosaic_0001>

<bundles_post_ra>
// kernel: tpu_custom_call.1
= control target key start
LH: loop header
LB: loop body
LE: loop exit
PB: predicated region body
PF: predicated region fallthrough
CT: control target
= control target key end

     0   :  { %7 = vsyncpa [#allocation6], 0  ;;  %s3012_s0 = inlined_call_operand.hbm [shape: f32[98], index: 0, kind: input, shape index: {}]   ;;  %s3013_s1 = inlined_call_operand.hbm [shape: f32[2,4,16,16], index: 1, kind: input, shape index: {}]   ;;  %s3014_s2 = inlined_call_operand.hbm [shape: f32[2,1,16,16], index: 2, kind: output, shape index: {}]  }
   0x1   :  { %8 = vsyncpa [#allocation4], 0 }
   0x2   :  { %10 = vsyncpa [#allocation4 + $0x1], 0 }
   0x3   :  { %11 = vsyncpa [#allocation5], 0 }
   0x4   :  { %13 = vsyncpa [#allocation5 + $0x1], 0  ;;  %s2140_s9 = smov 0   ;;  %s2142_s10 = smov 0  }
   0x5   :  { %s2144_s11 = smov 0   ;;  %s2146_s12 = smov 0  }
   0x6   :  { %s2148_s13 = smov 0   ;;  %s2150_s14 = smov 0  }
   0x7 LB: > { %s1768_s15 = sadd.s32 4294967295, %s2108_s14   ;;  %s1769_s16 = sadd.s32 4294967294, %s2108_s14   ;;  %s2108_s14 = sphi %s2150_s14, %s19_s14   ;;  %s2104_s13 = sphi %s2148_s13, %s3034_s13   ;;  %s2100_s12 = sphi %s2146_s12, %s3033_s12   ;;  %s2096_s11 = sphi %s2144_s11, %s3032_s11   ;;  %s2092_s10 = sphi %s2142_s10, %s3031_s10   ;;  %s2088_s9 = sphi %s2140_s9, %s3030_s9  }
   0x8   : > { %s61_s17 = sadd.s32 1, %s2096_s11  ;;  %p68_p0 = scmp.ne.s32.totalorder %s2096_s11, %s2092_s10 }
   0x9   : > { %p69_p1 = scmp.eq.s32.totalorder %s2108_s14, 0  ;;  %p74_p2 = scmp.ne.s32.totalorder %s2092_s10, %s2088_s9 }
   0xa   : > { %p2178_p3 = scmp.eq.s32.totalorder %s1768_s15, 0  ;;  %p98_p4 = scmp.eq.s32.totalorder %s1768_s15, 1 }
   0xb   : > { %p70_p5 = por %p69_p1, %p68_p0  ;;  %p104_p6 = scmp.eq.s32.totalorder %s1769_s16, 1 }
   0xc   : > { %s3019_s18 = scalar_select %p2178_p3, 1, 0 }
   0xd   : > { %p2184_p7 = por %p2178_p3, %p74_p2  ;;  %p2188_p8 = por %p98_p4, %p68_p0 }
   0xe   : > { %p2192_p9 = por %p104_p6, %p74_p2  ;;  %p1770_p10 = scmp.ge.s32.totalorder %s2108_s14, 1 }
   0xf   : > { %s3020_s19 = scalar_select %p2184_p7, 1, 0 }
  0x10   : > { %s3021_s20 = scalar_select %p2188_p8, 1, 0 }
  0x11   : > { %s3022_s21 = scalar_select %p2192_p9, 1, 0 }
  0x12   : > { %p111_p11 = scmp.lt.s32.totalorder %s2108_s14, 3  ;;  %p1907_p1 = scmp.lt.s32.totalorder %s2108_s14, 2 }
  0x13   : > { %s133_s23 = sand.u32 1, %s2096_s11   ;;  %s31_s25 = sadd.s32 1, %s2104_s13 }
  0x14   : > { %p2199_p13 = pnand %p1770_p10, %p111_p11  ;;  %p2207_p0 = pnand %p1907_p1, %p70_p5 }
  0x15   : > { %s1773_s26 = sshll.u32 %s133_s23, 6  ;;  %p33_p4 = scmp.ge.s32.totalorder %s31_s25, 2 }
  0x16   : > { %p1894_p7 = pneg %p2199_p13  ;;  %s1979_s29 = scalar_lea.hbm %s3012_s0, 16 }
  0x17   : > { %p1980_p6 = scmp.ne.s32.totalorder %s3012_s0, %s1979_s29  ;;  %p1986_p5 = scmp.lt.u32.totalorder %s1979_s29, %s3012_s0 }
  0x18   : > { %p1895_p2 = pnand %p1894_p7, %p2178_p3 }
  0x1a   : > { %p1981_p10 = pneg %p1895_p2 }
  0x1c   : > { %p1982_p11 = pnand %p1981_p10, %p1980_p6 }
  0x1e   : > { %p1983_p12 = pneg %p1982_p11 }
  0x20   : > { %p1988_p1 = pnand %p1986_p5, %p1983_p12 }
  0x22   : > { %1991 = shalt.err (!%p1988_p1)
}
  0x23   : > { %s2110_s6 = smov [#allocation3]   ;;  %s3036_s25 = smov (%p33_p4, %s31_s25), 0 }
  0x24   : > { %1897 = dma.hbm_to_smem (!%p1895_p2), %s3012_s0, 16, %s2110_s6, [#allocation6]  }
  0x25   : > { %s1884_s15 = sshll.u32 %s2104_s13, 10  ;;  %s56_s16 = ssub.s32 %s2104_s13, %s3036_s25 }
  0x26   : > { %s2234_s29 = scalar_lea.hbm %s3013_s1, %s1884_s15  ;;  %p59_p7 = scmp.eq.s32.totalorder %s56_s16, 0 }
  0x27   : > { %s137_s30 = scalar_lea.vmem [#allocation7], %s1773_s26  ;;  %s2243_s5 = scalar_lea.sflag [#allocation4], %s133_s23 }
  0x28   : > { %s147_s3 = sshll.u32 %s137_s30, 4  ;;  %s1992_s6 = scalar_lea.hbm %s2234_s29, 1024  ;;  %s2236_s3 = int_to_ptr.vmem [resolvable:$true] %s147_s3 }
  0x29   : > { %s2241_s4 = scalar_select %p59_p7, %s2096_s11, %s61_s17  }
  0x2a   : > { %p1993_p12 = scmp.ne.s32.totalorder %s2234_s29, %s1992_s6  ;;  %p1994_p2 = pneg %p2207_p0 }
  0x2b   : > { %s1997_s26 = scalar_lea.hbm %s3013_s1, 2048  ;;  %p1998_p10 = scmp.lt.u32.totalorder %s2234_s29, %s3013_s1 }
  0x2c   : > { %p1995_p4 = pnand %p1994_p2, %p1993_p12  ;;  %p1999_p11 = scmp.lt.u32.totalorder %s1997_s26, %s1992_s6 }
  0x2d   : > { %p2001_p1 = scmp.lt.u32.totalorder %s1992_s6, %s2234_s29 }
  0x2e   : > { %p1996_p6 = pneg %p1995_p4  ;;  %p2000_p5 = por %p1999_p11, %p1998_p10 }
  0x30   : > { %p2002_p7 = por %p2001_p1, %p2000_p5 }
  0x32   : > { %p2003_p9 = pnand %p2002_p7, %p1996_p6 }
  0x34   : > { %2006 = shalt.err (!%p2003_p9)
}
  0x35   : > { %s2007_s17 = scalar_lea.vmem %s2236_s3, 1024  ;;  %s2111_s23 = smov [#allocation7]  }
  0x36   : > { %p2008_p12 = scmp.ne.s32.totalorder %s2236_s3, %s2007_s17  ;;  %s2012_s27 = sshll.u32 %s2111_s23, 4  ;;  %s2013_s27 = int_to_ptr.vmem [resolvable:$false] %s2012_s27 }
  0x37   : > { %s2014_s28 = scalar_lea.vmem %s2013_s27, 2048  ;;  %p2015_p3 = scmp.lt.s32.totalorder %s2236_s3, %s2013_s27 }
  0x38   : > { %p2010_p4 = pnand %p2008_p12, %p1994_p2  ;;  %p2016_p10 = scmp.lt.s32.totalorder %s2014_s28, %s2007_s17 }
  0x3a   : > { %p2011_p8 = pneg %p2010_p4  ;;  %p2017_p11 = por %p2016_p10, %p2015_p3 }
  0x3c   : > { %p2018_p5 = pnand %p2017_p11, %p2011_p8 }
  0x3e   : > { %2021 = shalt.err (!%p2018_p5)
}
  0x3f   : > { %s2112_s30 = smov 128   ;;  %s2113_s6 = smov 8  }
  0x40   : > { %1901 = dma.hbm_to_vmem [thread:$0]  (!%p2207_p0), %s2234_s29, 1024, %s2236_s3, %s2243_s5, %s2112_s30, %s2112_s30, %s2113_s6  }
  0x41   : > { %159 = sbr.rel (%p2199_p13) target bundleno = 710 (0x2c6), region = 28  ;;  %p3025_p9 = scmp.ne.s32.totalorder (!%p2199_p13), %s3019_s18, 0 }
  0x48   : > { %2075 = dma.done.wait (%p3025_p9), [#allocation6], 16  }
  0x49   : > { %2077 = vsyncadd (%p3025_p9), [#allocation6], 4294967280  ;;  %s2278_s7 = sand.u32 1, %s2092_s10   ;;  %p3026_p3 = scmp.ne.s32.totalorder %s3020_s19, 0 }
  0x4a   : > { %s1778_s8 = sshll.u32 %s2278_s7, 6  ;;  %s166_s26 = scalar_lea.sflag [#allocation4], %s2278_s7 }
  0x4b   : > { %s169_s15 = scalar_lea.vmem [#allocation7], %s1778_s8 }
  0x4c   : > { %2079 = dma.done.wait (%p3026_p3), %s166_s26, 1024  }
  0x4d   : > { %2081 = vsyncadd (%p3026_p3), %s166_s26, 4294966272 }
  0x4e   : > { %174 = sfence }
  0x4f   : > { %v192_v0 = vld [vmem:[%s169_s15] sm:$0xff]  ;;  %v194_v1 = vld [vmem:[%s169_s15 + $0x10] sm:$0xff]  ;;  %vm200_vm0 = vcmask 130048   ;;  %vm233_vm1 = vcmask 179200   ;;  %v193_v7 = vld [vmem:[%s169_s15 + $0x8] sm:$0xff]  ;;  %v2114_v19 = vmov 0.0  }
  0x50   : > { %v196_v2 = vld [vmem:[%s169_s15 + $0x20] sm:$0xff]  ;;  %v198_v3 = vld [vmem:[%s169_s15 + $0x30] sm:$0xff]  ;;  %v201_v4 = vsel %vm200_vm0, %v192_v0, 0.0  ;;  %v202_v5 = vsel %vm200_vm0, %v194_v1, 0.0  ;;  %v195_v8 = vld [vmem:[%s169_s15 + $0x18] sm:$0xff]  ;;  %v208_v12 = vsel %vm200_vm0, %v193_v7, 0.0 }
  0x51   : > { %v204_v6 = vsel %vm200_vm0, %v196_v2, 0.0  ;;  %v203_v9 = vadd.f32 %v202_v5, %v201_v4  ;;  %v197_v10 = vld [vmem:[%s169_s15 + $0x28] sm:$0xff]  ;;  %v199_v11 = vld [vmem:[%s169_s15 + $0x38] sm:$0xff]  ;;  %v209_v13 = vsel %vm200_vm0, %v195_v8, 0.0  ;;  %v206_v14 = vsel %vm200_vm0, %v198_v3, 0.0  ;;  %234 = vst.msk [vmem:[#allocation2] sm:$0xff] %vm233_vm1, %v2114_v19 }
  0x52   : > { %v210_v15 = vadd.f32 %v209_v13, %v208_v12  ;;  %v211_v16 = vsel %vm200_vm0, %v197_v10, 0.0  ;;  %v213_v18 = vsel %vm200_vm0, %v199_v11, 0.0  ;;  %235 = vst.msk [vmem:[#allocation2 + $0x8] sm:$0xff] %vm233_vm1, %v2114_v19  ;;  %238 = vst.msk [vmem:[#allocation2 + $0x18] sm:$0xff] %vm233_vm1, %v2114_v19  ;;  %v215_v20 = vsel %vm200_vm0, %v192_v0, -inf  ;;  %s2115_s18 = smov 3  }
  0x53   : > { %v205_v17 = vadd.f32 %v204_v6, %v203_v9  ;;  %239 = vst.msk [vmem:[#allocation2 + $0x20] sm:$0xff] %vm233_vm1, %v2114_v19  ;;  %v216_v21 = vsel %vm200_vm0, %v194_v1, -inf  ;;  %v217_v23 = vsel %vm200_vm0, %v196_v2, -inf  ;;  %v219_v24 = vsel %vm200_vm0, %v198_v3, -inf  ;;  %s1780_s19 = sld [smem:[#allocation3 + $0x1]]  ;;  %s1781_s22 = sld [smem:[#allocation3 + $0x2]] }
  0x54   : > { %v212_v22 = vadd.f32 %v211_v16, %v210_v15  ;;  %vm236_vm2 = vcmask 177152   ;;  %v218_v26 = vmax.f32 %v215_v20, %v217_v23  ;;  %v220_v27 = vmax.f32 %v216_v21, %v219_v24  ;;  %s1782_s29 = sld [smem:[#allocation3 + $0x3]]  ;;  %s1783_s5 = sld [smem:[#allocation3 + $0x4]] }
  0x55   : > { %v207_v25 = vadd.f32 %v206_v14, %v205_v17  ;;  %237 = vst.msk [vmem:[#allocation2 + $0x10] sm:$0x3f] %vm236_vm2, %v2114_v19  ;;  %240 = vst.msk [vmem:[#allocation2 + $0x28] sm:$0x3f] %vm236_vm2, %v2114_v19  ;;  %v222_v28 = vsel %vm200_vm0, %v193_v7, -inf  ;;  %v223_v29 = vsel %vm200_vm0, %v195_v8, -inf }
  0x56   : > { %v224_v30 = vsel %vm200_vm0, %v197_v10, -inf  ;;  %v226_v31 = vsel %vm200_vm0, %v199_v11, -inf  ;;  %v214_v32 = vadd.f32 %v213_v18, %v212_v22  ;;  %v221_v33 = vmax.f32 %v218_v26, %v220_v27  ;;  %s1784_s17 = sld [smem:[#allocation3 + $0x5]]  ;;  %s2116_s23 = smov 127  }
  0x57   : > { %243 = vrot.lane.b32.xlu0 %v207_v25, %s2115_s18  ;;  %v225_v34 = vmax.f32 %v222_v28, %v224_v30  ;;  %v227_v35 = vmax.f32 %v223_v29, %v226_v31  ;;  %vm249_vm3 = vcmask 154648   ;;  %s1785_s28 = sld [smem:[#allocation3 + $0x6]]  ;;  %s2117_s30 = smov 126  }
  0x58   : > { %254 = vrot.lane.b32.xlu1 %v221_v33, %s2115_s18  ;;  %s1787_s8 = sld [smem:[#allocation3 + $0x8]]  ;;  %s2118_s26 = smov 125  }
  0x59   : > { %v228_v36 = vmax.f32 %v225_v34, %v227_v35  ;;  %s406_s24 = smul.f32 0.25, %s1780_s19  ;;  %s2119_s19 = smov 124  }
  0x5a   : > { %s420_s3 = smul.f32 0.25, %s1781_s22  ;;  %p3027_p13 = scmp.ne.s32.totalorder %s3021_s20, 0 }
  0x5b   : > { %245 = vrot.lane.b32.xlu0 %v214_v32, %s2115_s18  ;;  %v407_v40 = vstv %s406_s24  ;;  %s434_s16 = smul.f32 0.25, %s1782_s29  ;;  %s1789_s24 = sld [smem:[#allocation3 + $0xa]] }
  0x5c   : > { %256 = vrot.lane.b32.xlu1 %v228_v36, %s2115_s18  ;;  %v421_v44 = vstv %s420_s3  ;;  %s448_s27 = smul.f32 0.25, %s1783_s5  ;;  %s1788_s18 = sld [smem:[#allocation3 + $0x9]] }
  0x5d   : > { %v435_v48 = vstv %s434_s16  ;;  %s462_s6 = smul.f32 0.25, %s1784_s17  ;;  %s2120_s29 = smov 123  }
  0x5e   : > { %v449_v51 = vstv %s448_s27  ;;  %s476_s15 = smul.f32 0.25, %s1785_s28  ;;  %s1790_s5 = sld [smem:[#allocation3 + $0xb]] }
  0x5f   : > { %v463_v54 = vstv %s462_s6  ;;  %s498_s22 = smul.f32 0.25, %s1787_s8  ;;  %s2121_s16 = smov 122  }
  0x60   : > { %v477_v57 = vstv %s476_s15  ;;  %s1791_s27 = sld [smem:[#allocation3 + $0xc]]  ;;  %s1792_s6 = sld [smem:[#allocation3 + $0xd]] }
  0x61   : > { %v499_v61 = vstv %s498_s22  ;;  %s526_s17 = smul.f32 0.25, %s1789_s24  ;;  %s1794_s15 = sld [smem:[#allocation3 + $0xf]] }
  0x62   : > { %s512_s3 = smul.f32 0.25, %s1788_s18  ;;  %s1795_s22 = sld [smem:[#allocation3 + $0x10]] }
  0x63   : > { %v527_v4 = vstv %s526_s17  ;;  %s1797_s17 = sld [smem:[#allocation3 + $0x12]] }
  0x64   : > { %v513_v0 = vstv %s512_s3  ;;  %s540_s28 = smul.f32 0.25, %s1790_s5  ;;  %s1796_s3 = sld [smem:[#allocation3 + $0x11]] }
  0x66   : > { %v541_v7 = vstv %s540_s28  ;;  %s554_s8 = smul.f32 0.25, %s1791_s27  ;;  %s1798_s28 = sld [smem:[#allocation3 + $0x13]] }
  0x67   : > { %s568_s18 = smul.f32 0.25, %s1792_s6 }
  0x68   : > { %v555_v10 = vstv %s554_s8  ;;  %s590_s24 = smul.f32 0.25, %s1794_s15  ;;  %s1799_s8 = sld [smem:[#allocation3 + $0x14]] }
  0x69   : > { %v569_v13 = vstv %s568_s18  ;;  %s604_s5 = smul.f32 0.25, %s1795_s22  ;;  %s1801_s18 = sld [smem:[#allocation3 + $0x16]] }
  0x6a   : > { %v591_v17 = vstv %s590_s24  ;;  %s618_s27 = smul.f32 0.25, %s1796_s3  ;;  %s1802_s24 = sld [smem:[#allocation3 + $0x17]] }
  0x6b   : > { %v605_v20 = vstv %s604_s5  ;;  %s632_s6 = smul.f32 0.25, %s1797_s17  ;;  %s1803_s5 = sld [smem:[#allocation3 + $0x18]] }
  0x6c   : > { %v619_v24 = vstv %s618_s27  ;;  %s646_s15 = smul.f32 0.25, %s1798_s28  ;;  %s1804_s27 = sld [smem:[#allocation3 + $0x19]] }
  0x6d   : > { %v633_v27 = vstv %s632_s6  ;;  %s1805_s6 = sld [smem:[#allocation3 + $0x1a]] }
  0x6e   : > { %v647_v30 = vstv %s646_s15  ;;  %s660_s22 = smul.f32 0.25, %s1799_s8  ;;  %s1806_s15 = sld [smem:[#allocation3 + $0x1b]] }
  0x6f   : > { %s682_s3 = smul.f32 0.25, %s1801_s18 }
  0x70   : > { %v661_v33 = vstv %s660_s22  ;;  %s696_s17 = smul.f32 0.25, %s1802_s24  ;;  %s1808_s22 = sld [smem:[#allocation3 + $0x1d]] }
  0x71   : > { %s710_s28 = smul.f32 0.25, %s1803_s5 }
  0x72   : > { %s724_s8 = smul.f32 0.25, %s1804_s27 }
  0x73   : > { %s738_s18 = smul.f32 0.25, %s1805_s6 }
  0x74   : > { %s752_s24 = smul.f32 0.25, %s1806_s15 }
  0x76   : > { %s774_s5 = smul.f32 0.25, %s1808_s22 }
  0xc9   : > { %v244_v37 = vpop.permute.xlu0 %243 }
  0xca   : > { %250 = vst.msk [vmem:[#allocation2 + $0x3] sm:$0xff] %vm249_vm3, %v244_v37  ;;  %v255_v38 = vpop.permute.xlu1 %254  ;;  %v683_v37 = vstv %s682_s3  ;;  %s1809_s3 = sld [smem:[#allocation3 + $0x1e]] }
  0xcb   : > { %261 = vst.msk [vmem:[#allocation2 + $0x1b] sm:$0xff] %vm249_vm3, %v255_v38 }
  0xcd   : > { %v246_v39 = vpop.permute.xlu0 %245 }
  0xce   : > { %251 = vst.msk [vmem:[#allocation2 + $0xb] sm:$0xff] %vm249_vm3, %v246_v39  ;;  %v257_v41 = vpop.permute.xlu1 %256 }
  0xcf   : > { %262 = vst.msk [vmem:[#allocation2 + $0x23] sm:$0xff] %vm249_vm3, %v257_v41 }
  0xd0   : > { %s788_s27 = smul.f32 0.25, %s1809_s3 }
  0xd1   : > { %v2306_v42 = vld [vmem:[#allocation2] sm:$0xff] }
  0xd2   : > { %v408_v43 = vmul.f32 %v407_v40, %v2306_v42  ;;  %v422_v46 = vmul.f32 %v421_v44, %v2306_v42  ;;  %v436_v49 = vmul.f32 %v435_v48, %v2306_v42  ;;  %v450_v52 = vmul.f32 %v449_v51, %v2306_v42  ;;  %v2330_v60 = vld [vmem:[#allocation2 + $0x1] sm:$0xff] }
  0xd3   : > { %v464_v55 = vmul.f32 %v463_v54, %v2306_v42  ;;  %v478_v58 = vmul.f32 %v477_v57, %v2306_v42  ;;  %v500_v62 = vmul.f32 %v499_v61, %v2330_v60  ;;  %v514_v2 = vmul.f32 %v513_v0, %v2330_v60  ;;  %v2358_v16 = vld [vmem:[#allocation2 + $0x2] sm:$0xff] }
  0xd4   : > { %412 = vrot.lane.b32.xlu0 %v408_v43, %s2116_s23  ;;  %v528_v5 = vmul.f32 %v527_v4, %v2330_v60  ;;  %v542_v8 = vmul.f32 %v541_v7, %v2330_v60  ;;  %v556_v11 = vmul.f32 %v555_v10, %v2330_v60  ;;  %v570_v14 = vmul.f32 %v569_v13, %v2330_v60  ;;  %v2386_v36 = vld [vmem:[#allocation2 + $0x3] sm:$0xff] }
  0xd5   : > { %v2310_v45 = vld [vmem:[#allocation2 + $0x8] sm:$0xff]  ;;  %v592_v18 = vmul.f32 %v591_v17, %v2358_v16  ;;  %v606_v22 = vmul.f32 %v605_v20, %v2358_v16  ;;  %v620_v25 = vmul.f32 %v619_v24, %v2358_v16  ;;  %v634_v28 = vmul.f32 %v633_v27, %v2358_v16 }
  0xd6   : > { %v409_v47 = vmul.f32 %v407_v40, %v2310_v45  ;;  %v423_v50 = vmul.f32 %v421_v44, %v2310_v45  ;;  %v437_v53 = vmul.f32 %v435_v48, %v2310_v45  ;;  %v451_v56 = vmul.f32 %v449_v51, %v2310_v45  ;;  %v2336_v1 = vld [vmem:[#allocation2 + $0x9] sm:$0xff] }
  0xd7   : > { %v465_v59 = vmul.f32 %v463_v54, %v2310_v45  ;;  %v479_v63 = vmul.f32 %v477_v57, %v2310_v45  ;;  %v501_v3 = vmul.f32 %v499_v61, %v2336_v1  ;;  %v515_v6 = vmul.f32 %v513_v0, %v2336_v1  ;;  %v2364_v21 = vld [vmem:[#allocation2 + $0xa] sm:$0xff] }
  0xd8   : > { %426 = vrot.lane.b32.xlu0 %v422_v46, %s2117_s30  ;;  %414 = vrot.lane.b32.xlu1 %v409_v47, %s2116_s23  ;;  %v529_v9 = vmul.f32 %v527_v4, %v2336_v1  ;;  %v543_v12 = vmul.f32 %v541_v7, %v2336_v1  ;;  %v557_v15 = vmul.f32 %v555_v10, %v2336_v1  ;;  %v697_v40 = vstv %s696_s17  ;;  %v2392_v41 = vld [vmem:[#allocation2 + $0xb] sm:$0xff]  ;;  %s1810_s17 = sld [smem:[#allocation3 + $0x1f]] }
  0xd9   : > { %v571_v19 = vmul.f32 %v569_v13, %v2336_v1  ;;  %v593_v23 = vmul.f32 %v591_v17, %v2364_v21  ;;  %v607_v26 = vmul.f32 %v605_v20, %v2364_v21  ;;  %v621_v29 = vmul.f32 %v619_v24, %v2364_v21  ;;  %v2420_v0 = vld [vmem:[#allocation2 + $0xc] sm:$0xff] }
  0xda   : > { %v648_v31 = vmul.f32 %v647_v30, %v2358_v16  ;;  %v635_v32 = vmul.f32 %v633_v27, %v2364_v21  ;;  %v662_v34 = vmul.f32 %v661_v33, %v2358_v16  ;;  %v649_v35 = vmul.f32 %v647_v30, %v2364_v21 }
  0xdb   : > { %v684_v38 = vmul.f32 %v683_v37, %v2386_v36  ;;  %v663_v39 = vmul.f32 %v661_v33, %v2364_v21  ;;  %v698_v43 = vmul.f32 %v697_v40, %v2386_v36  ;;  %v685_v44 = vmul.f32 %v683_v37, %v2392_v41 }
  0xdc   : > { %440 = vrot.lane.b32.xlu0 %v436_v49, %s2118_s26  ;;  %428 = vrot.lane.b32.xlu1 %v423_v50, %s2117_s30  ;;  %v711_v46 = vstv %s710_s28  ;;  %v699_v48 = vmul.f32 %v697_v40, %v2392_v41  ;;  %v725_v49 = vstv %s724_s8  ;;  %s1811_s28 = sld [smem:[#allocation3 + $0x20]]  ;;  %s1812_s8 = sld [smem:[#allocation3 + $0x21]] }
  0xdd   : > { %v712_v47 = vmul.f32 %v711_v46, %v2386_v36  ;;  %v726_v50 = vmul.f32 %v725_v49, %v2386_v36  ;;  %v713_v51 = vmul.f32 %v711_v46, %v2392_v41  ;;  %v727_v54 = vmul.f32 %v725_v49, %v2392_v41 }
  0xde   : > { %s802_s6 = smul.f32 0.25, %s1810_s17  ;;  %s300_s17 = sld [smem:[#allocation3]] }
  0xe0   : > { %454 = vrot.lane.b32.xlu0 %v450_v52, %s2119_s19  ;;  %442 = vrot.lane.b32.xlu1 %v437_v53, %s2118_s26  ;;  %v739_v52 = vstv %s738_s18  ;;  %v803_v4 = vstv %s802_s6  ;;  %s1813_s18 = sld [smem:[#allocation3 + $0x22]] }
  0xe1   : > { %v740_v53 = vmul.f32 %v739_v52, %v2386_v36  ;;  %v741_v57 = vmul.f32 %v739_v52, %v2392_v41 }
  0xe2   : > { %s816_s15 = smul.f32 0.25, %s1811_s28  ;;  %s2438_s28 = sld [smem:[#allocation3 + $0x26]] }
  0xe3   : > { %s830_s22 = smul.f32 0.25, %s1812_s8  ;;  %s2446_s8 = sld [smem:[#allocation3 + $0x27]] }
  0xe4   : > { %468 = vrot.lane.b32.xlu0 %v464_v55, %s2120_s29  ;;  %456 = vrot.lane.b32.xlu1 %v451_v56, %s2119_s19  ;;  %v753_v55 = vstv %s752_s24  ;;  %v817_v7 = vstv %s816_s15  ;;  %s1815_s24 = sld [smem:[#allocation3 + $0x24]]  ;;  %s398_s15 = smul.f32 0.25, %s300_s17 }
  0xe5   : > { %v754_v56 = vmul.f32 %v753_v55, %v2386_v36  ;;  %v831_v10 = vstv %s830_s22  ;;  %s2455_s22 = sld [smem:[#allocation3 + $0x28]] }
  0xe6   : > { %s844_s3 = smul.f32 0.25, %s1813_s18  ;;  %v833_v17 = vmul.f32 %v831_v10, %v2420_v0  ;;  %v401_v27 = vstv %s398_s15  ;;  %s2485_s15 = sld [smem:[#allocation3 + $0x7]] }
  0xe7   : > { %v403_v40 = vmul.f32 %v401_v27, %v2310_v45 }
  0xe8   : > { %482 = vrot.lane.b32.xlu0 %v478_v58, %s2121_s16  ;;  %470 = vrot.lane.b32.xlu1 %v465_v59, %s2120_s29  ;;  %v2414_v58 = vld [vmem:[#allocation2 + $0x4] sm:$0xff]  ;;  %v775_v59 = vstv %s774_s5  ;;  %s1816_s5 = sld [smem:[#allocation3 + $0x25]]  ;;  %v845_v13 = vstv %s844_s3  ;;  %s894_s18 = smul.f32 0.25, %s2438_s28 }
  0xe9   : > { %v776_v61 = vmul.f32 %v775_v59, %v2414_v58  ;;  %v847_v24 = vmul.f32 %v845_v13, %v2420_v0  ;;  %s908_s3 = smul.f32 0.25, %s2446_s8  ;;  %s2481_s8 = sld [smem:[#allocation3 + $0x2c]] }
  0xea   : > { %v895_v33 = vstv %s894_s18 }
  0xeb   : > { %s922_s17 = smul.f32 0.25, %s2455_s22  ;;  %s2490_s22 = sld [smem:[#allocation3 + $0x2d]] }
  0xec   : > { %504 = vrot.lane.b32.xlu0 %v500_v62, %s2116_s23  ;;  %484 = vrot.lane.b32.xlu1 %v479_v63, %s2121_s16  ;;  %v755_v62 = vmul.f32 %v753_v55, %v2392_v41  ;;  %v789_v63 = vstv %s788_s27  ;;  %s866_s27 = smul.f32 0.25, %s1815_s24  ;;  %s2459_s24 = sld [smem:[#allocation3 + $0xe]] }
  0xed   : > { %v923_v52 = vstv %s922_s17 }
  0xee   : > { %s880_s6 = smul.f32 0.25, %s1816_s5  ;;  %s2465_s5 = sld [smem:[#allocation3 + $0x29]] }
  0xf0   : > { %518 = vrot.lane.b32.xlu0 %v514_v2, %s2117_s30  ;;  %506 = vrot.lane.b32.xlu1 %v501_v3, %s2116_s23  ;;  %v790_v2 = vmul.f32 %v789_v63, %v2414_v58  ;;  %v777_v3 = vmul.f32 %v775_v59, %v2420_v0 }
  0xf1   : > { %s986_s17 = smul.f32 0.25, %s2490_s22 }
  0xf2   : > { %s582_s28 = smul.f32 0.25, %s2459_s24 }
  0xf3   : > { %s972_s24 = smul.f32 0.25, %s2481_s8  ;;  %s2525_s8 = sld [smem:[#allocation3 + $0x30]] }
  0xf4   : > { %532 = vrot.lane.b32.xlu0 %v528_v5, %s2118_s26  ;;  %520 = vrot.lane.b32.xlu1 %v515_v6, %s2117_s30  ;;  %v804_v5 = vmul.f32 %v803_v4, %v2414_v58  ;;  %v791_v6 = vmul.f32 %v789_v63, %v2420_v0 }
  0xf8   : > { %546 = vrot.lane.b32.xlu0 %v542_v8, %s2119_s19  ;;  %534 = vrot.lane.b32.xlu1 %v529_v9, %s2118_s26  ;;  %v818_v8 = vmul.f32 %v817_v7, %v2414_v58  ;;  %v805_v9 = vmul.f32 %v803_v4, %v2420_v0 }
  0xf9   : > { %s1028_s22 = smul.f32 0.25, %s2525_s8 }
  0xfc   : > { %560 = vrot.lane.b32.xlu0 %v556_v11, %s2120_s29  ;;  %548 = vrot.lane.b32.xlu1 %v543_v12, %s2119_s19  ;;  %v832_v11 = vmul.f32 %v831_v10, %v2414_v58  ;;  %v819_v12 = vmul.f32 %v817_v7, %v2420_v0 }
 0x100   : > { %574 = vrot.lane.b32.xlu0 %v570_v14, %s2121_s16  ;;  %562 = vrot.lane.b32.xlu1 %v557_v15, %s2120_s29  ;;  %v846_v15 = vmul.f32 %v845_v13, %v2414_v58 }
 0x104   : > { %596 = vrot.lane.b32.xlu0 %v592_v18, %s2116_s23  ;;  %576 = vrot.lane.b32.xlu1 %v571_v19, %s2121_s16  ;;  %v2444_v18 = vld [vmem:[#allocation2 + $0x5] sm:$0xff]  ;;  %v867_v19 = vstv %s866_s27  ;;  %s2473_s27 = sld [smem:[#allocation3 + $0x2b]] }
 0x105   : > { %v924_v59 = vmul.f32 %v923_v52, %v2444_v18 }
 0x108   : > { %610 = vrot.lane.b32.xlu0 %v606_v22, %s2117_s30  ;;  %598 = vrot.lane.b32.xlu1 %v593_v23, %s2116_s23  ;;  %v868_v23 = vmul.f32 %v867_v19, %v2444_v18 }
 0x10a   : > { %s958_s18 = smul.f32 0.25, %s2473_s27  ;;  %s2515_s27 = sld [smem:[#allocation3 + $0x2f]] }
 0x10c   : > { %624 = vrot.lane.b32.xlu0 %v620_v25, %s2118_s26  ;;  %612 = vrot.lane.b32.xlu1 %v607_v26, %s2117_s30  ;;  %v881_v25 = vstv %s880_s6  ;;  %v2452_v26 = vld [vmem:[#allocation2 + $0xd] sm:$0xff]  ;;  %s936_s6 = smul.f32 0.25, %s2465_s5 }
 0x10d   : > { %v882_v30 = vmul.f32 %v881_v25, %v2444_v18  ;;  %s490_s5 = smul.f32 0.25, %s2485_s15 }
 0x110   : > { %638 = vrot.lane.b32.xlu0 %v634_v28, %s2119_s19  ;;  %626 = vrot.lane.b32.xlu1 %v621_v29, %s2118_s26  ;;  %s1014_s15 = smul.f32 0.25, %s2515_s27  ;;  %s2573_s27 = sld [smem:[#allocation3 + $0x1c]] }
 0x114   : > { %652 = vrot.lane.b32.xlu0 %v648_v31, %s2120_s29  ;;  %640 = vrot.lane.b32.xlu1 %v635_v32, %s2119_s19  ;;  %v869_v31 = vmul.f32 %v867_v19, %v2452_v26  ;;  %v402_v32 = vmul.f32 %v401_v27, %v2306_v42  ;;  %v909_v42 = vstv %s908_s3  ;;  %s2502_s3 = sld [smem:[#allocation3 + $0x2e]] }
 0x115   : > { %v910_v49 = vmul.f32 %v909_v42, %v2444_v18 }
 0x116   : > { %s766_s8 = smul.f32 0.25, %s2573_s27 }
 0x118   : > { %666 = vrot.lane.b32.xlu0 %v662_v34, %s2121_s16  ;;  %654 = vrot.lane.b32.xlu1 %v649_v35, %s2120_s29 }
 0x11c   : > { %688 = vrot.lane.b32.xlu0 %v684_v38, %s2116_s23  ;;  %668 = vrot.lane.b32.xlu1 %v663_v39, %s2121_s16  ;;  %v896_v38 = vmul.f32 %v895_v33, %v2444_v18  ;;  %v883_v39 = vmul.f32 %v881_v25, %v2452_v26 }
 0x120   : > { %702 = vrot.lane.b32.xlu0 %v698_v43, %s2117_s30  ;;  %690 = vrot.lane.b32.xlu1 %v685_v44, %s2116_s23 }
 0x124   : > { %716 = vrot.lane.b32.xlu0 %v712_v47, %s2118_s26  ;;  %704 = vrot.lane.b32.xlu1 %v699_v48, %s2117_s30 }
 0x128   : > { %730 = vrot.lane.b32.xlu0 %v726_v50, %s2119_s19  ;;  %718 = vrot.lane.b32.xlu1 %v713_v51, %s2118_s26  ;;  %v897_v50 = vmul.f32 %v895_v33, %v2452_v26 }
 0x12c   : > { %744 = vrot.lane.b32.xlu0 %v740_v53, %s2120_s29  ;;  %732 = vrot.lane.b32.xlu1 %v727_v54, %s2119_s19  ;;  %v585_v53 = vstv %s582_s28  ;;  %s2519_s28 = sld [smem:[#allocation3 + $0x15]] }
 0x130   : > { %758 = vrot.lane.b32.xlu0 %v754_v56, %s2121_s16  ;;  %746 = vrot.lane.b32.xlu1 %v741_v57, %s2120_s29 }
 0x134   : > { %780 = vrot.lane.b32.xlu0 %v776_v61, %s2116_s23  ;;  %760 = vrot.lane.b32.xlu1 %v755_v62, %s2121_s16  ;;  %v911_v61 = vmul.f32 %v909_v42, %v2452_v26 }
 0x138   : > { %794 = vrot.lane.b32.xlu0 %v790_v2, %s2117_s30  ;;  %782 = vrot.lane.b32.xlu1 %v777_v3, %s2116_s23  ;;  %v937_v2 = vstv %s936_s6  ;;  %v586_v3 = vmul.f32 %v585_v53, %v2358_v16  ;;  %v587_v16 = vmul.f32 %v585_v53, %v2364_v21  ;;  %v493_v21 = vstv %s490_s5  ;;  %s1000_s6 = smul.f32 0.25, %s2502_s3  ;;  %s2545_s3 = sld [smem:[#allocation3 + $0x33]] }
 0x139   : > { %v939_v19 = vmul.f32 %v937_v2, %v2452_v26  ;;  %s2557_s5 = sld [smem:[#allocation3 + $0x34]] }
 0x13c   : > { %808 = vrot.lane.b32.xlu0 %v804_v5, %s2118_s26  ;;  %796 = vrot.lane.b32.xlu1 %v791_v6, %s2117_s30 }
 0x140   : > { %822 = vrot.lane.b32.xlu0 %v818_v8, %s2119_s19  ;;  %810 = vrot.lane.b32.xlu1 %v805_v9, %s2118_s26  ;;  %v938_v8 = vmul.f32 %v937_v2, %v2444_v18  ;;  %v925_v9 = vmul.f32 %v923_v52, %v2452_v26 }
 0x144   : > { %836 = vrot.lane.b32.xlu0 %v832_v11, %s2120_s29  ;;  %824 = vrot.lane.b32.xlu1 %v819_v12, %s2119_s19  ;;  %v2499_v11 = vld [vmem:[#allocation2 + $0x6] sm:$0xff]  ;;  %v959_v12 = vstv %s958_s18  ;;  %s674_s18 = smul.f32 0.25, %s2519_s28  ;;  %s2578_s28 = sld [smem:[#allocation3 + $0x36]] }
 0x146   : > { %v413_v14 = vpop.permute.xlu0 %412 }
 0x147   : > { %v418_v34 = vadd.f32 %v413_v14, %v402_v32 }
 0x148   : > { %850 = vrot.lane.b32.xlu0 %v846_v15, %s2121_s16  ;;  %838 = vrot.lane.b32.xlu1 %v833_v17, %s2120_s29  ;;  %v960_v17 = vmul.f32 %v959_v12, %v2499_v11 }
 0x14a   : > { %v415_v20 = vpop.permute.xlu1 %414  ;;  %v427_v22 = vpop.permute.xlu0 %426 }
 0x14b   : > { %v432_v43 = vadd.f32 %v427_v22, %v418_v34  ;;  %v419_v44 = vadd.f32 %v415_v20, %v403_v40  ;;  %v973_v20 = vstv %s972_s24  ;;  %v2512_v22 = vld [vmem:[#allocation2 + $0xe] sm:$0xff]  ;;  %s2539_s24 = sld [smem:[#allocation3 + $0x32]] }
 0x14c   : > { %872 = vrot.lane.b32.xlu0 %v868_v23, %s2116_s23  ;;  %852 = vrot.lane.b32.xlu1 %v847_v24, %s2121_s16  ;;  %v974_v25 = vmul.f32 %v973_v20, %v2499_v11  ;;  %v961_v27 = vmul.f32 %v959_v12, %v2512_v22  ;;  %v975_v34 = vmul.f32 %v973_v20, %v2512_v22 }
 0x14e   : > { %v429_v28 = vpop.permute.xlu1 %428  ;;  %v441_v29 = vpop.permute.xlu0 %440 }
 0x14f   : > { %v446_v46 = vadd.f32 %v441_v29, %v432_v43  ;;  %v433_v45 = vadd.f32 %v429_v28, %v419_v44  ;;  %v494_v28 = vmul.f32 %v493_v21, %v2330_v60  ;;  %v987_v29 = vstv %s986_s17  ;;  %s2569_s17 = sld [smem:[#allocation3 + $0x35]] }
 0x150   : > { %886 = vrot.lane.b32.xlu0 %v882_v30, %s2117_s30  ;;  %874 = vrot.lane.b32.xlu1 %v869_v31, %s2116_s23  ;;  %v988_v33 = vmul.f32 %v987_v29, %v2499_v11  ;;  %v989_v44 = vmul.f32 %v987_v29, %v2512_v22 }
 0x152   : > { %v443_v35 = vpop.permute.xlu1 %442  ;;  %v455_v37 = vpop.permute.xlu0 %454 }
 0x153   : > { %v460_v51 = vadd.f32 %v455_v37, %v446_v46  ;;  %v447_v54 = vadd.f32 %v443_v35, %v433_v45  ;;  %v495_v35 = vmul.f32 %v493_v21, %v2336_v1  ;;  %v1001_v37 = vstv %s1000_s6  ;;  %s2586_s6 = sld [smem:[#allocation3 + $0x37]] }
 0x154   : > { %900 = vrot.lane.b32.xlu0 %v896_v38, %s2118_s26  ;;  %888 = vrot.lane.b32.xlu1 %v883_v39, %s2117_s30  ;;  %v1002_v42 = vmul.f32 %v1001_v37, %v2499_v11  ;;  %v1015_v1 = vstv %s1014_s15  ;;  %v1003_v53 = vmul.f32 %v1001_v37, %v2512_v22  ;;  %v1076_v21 = vstv %s2557_s5  ;;  %s2595_s15 = sld [smem:[#allocation3 + $0x39]]  ;;  %s2635_s5 = sld [smem:[#allocation3 + $0x40]] }
 0x155   : > { %v1016_v52 = vmul.f32 %v1015_v1, %v2499_v11 }
 0x156   : > { %v457_v47 = vpop.permute.xlu1 %456  ;;  %v469_v48 = vpop.permute.xlu0 %468 }
 0x157   : > { %v474_v55 = vadd.f32 %v469_v48, %v460_v51  ;;  %v461_v62 = vadd.f32 %v457_v47, %v447_v54  ;;  %v677_v48 = vstv %s674_s18  ;;  %s2602_s18 = sld [smem:[#allocation3 + $0x3a]] }
 0x158   : > { %914 = vrot.lane.b32.xlu0 %v910_v49, %s2119_s19  ;;  %902 = vrot.lane.b32.xlu1 %v897_v50, %s2118_s26 }
 0x15a   : > { %v471_v56 = vpop.permute.xlu1 %470  ;;  %v483_v57 = vpop.permute.xlu0 %482 }
 0x15b   : > { %v488_v63 = vadd.f32 %v483_v57, %v474_v55  ;;  %v475_v4 = vadd.f32 %v471_v56, %v461_v62  ;;  %v1029_v56 = vstv %s1028_s22  ;;  %v678_v57 = vmul.f32 %v677_v48, %v2386_v36  ;;  %s2614_s22 = sld [smem:[#allocation3 + $0x3b]] }
 0x15c   : > { %928 = vrot.lane.b32.xlu0 %v924_v59, %s2120_s29  ;;  %916 = vrot.lane.b32.xlu1 %v911_v61, %s2119_s19  ;;  %v1030_v2 = vmul.f32 %v1029_v56, %v2499_v11  ;;  %v679_v36 = vmul.f32 %v677_v48, %v2392_v41  ;;  %v1115_v48 = vstv %s2586_s6  ;;  %s2663_s6 = sld [smem:[#allocation3 + $0x43]] }
 0x15d   : > { %v2495_v5 = vadd.f32 %v586_v3, %v488_v63  ;;  %v1017_v3 = vmul.f32 %v1015_v1, %v2512_v22 }
 0x15e   : > { %v485_v6 = vpop.permute.xlu1 %484  ;;  %v505_v7 = vpop.permute.xlu0 %504 }
 0x15f   : > { %v489_v10 = vadd.f32 %v485_v6, %v475_v4  ;;  %v510_v30 = vadd.f32 %v505_v7, %v494_v28  ;;  %v2554_v6 = vld [vmem:[#allocation2 + $0x18] sm:$0xff]  ;;  %v1050_v7 = vstv %s2539_s24  ;;  %s2626_s24 = sld [smem:[#allocation3 + $0x3c]] }
 0x160   : > { %942 = vrot.lane.b32.xlu0 %v938_v8, %s2121_s16  ;;  %930 = vrot.lane.b32.xlu1 %v925_v9, %s2120_s29  ;;  %v1051_v12 = vmul.f32 %v1050_v7, %v2554_v6 }
 0x161   : > { %v2508_v13 = vadd.f32 %v587_v16, %v489_v10  ;;  %v1031_v16 = vmul.f32 %v1029_v56, %v2512_v22  ;;  %v2611_v56 = vld [vmem:[#allocation2 + $0x19] sm:$0xff] }
 0x162   : > { %v507_v14 = vpop.permute.xlu1 %506  ;;  %v519_v15 = vpop.permute.xlu0 %518 }
 0x163   : > { %v524_v60 = vadd.f32 %v519_v15, %v510_v30  ;;  %v511_v38 = vadd.f32 %v507_v14, %v495_v35  ;;  %v1063_v14 = vstv %s2545_s3  ;;  %v2567_v15 = vld [vmem:[#allocation2 + $0x20] sm:$0xff]  ;;  %v1089_v30 = vstv %s2569_s17  ;;  %s2630_s3 = sld [smem:[#allocation3 + $0x23]]  ;;  %s2643_s17 = sld [smem:[#allocation3 + $0x41]] }
 0x164   : > { %964 = vrot.lane.b32.xlu0 %v960_v17, %s2116_s23  ;;  %944 = vrot.lane.b32.xlu1 %v939_v19, %s2121_s16  ;;  %v1064_v19 = vmul.f32 %v1063_v14, %v2554_v6  ;;  %v1052_v20 = vmul.f32 %v1050_v7, %v2567_v15  ;;  %v1065_v28 = vmul.f32 %v1063_v14, %v2567_v15  ;;  %v1148_v7 = vstv %s2602_s18  ;;  %s2687_s18 = sld [smem:[#allocation3 + $0x2a]] }
 0x165   : > { %v1078_v35 = vmul.f32 %v1076_v21, %v2567_v15 }
 0x166   : > { %v521_v23 = vpop.permute.xlu1 %520  ;;  %v533_v24 = vpop.permute.xlu0 %532 }
 0x167   : > { %v538_v39 = vadd.f32 %v533_v24, %v524_v60  ;;  %v525_v46 = vadd.f32 %v521_v23, %v511_v38  ;;  %v1102_v38 = vstv %s2578_s28  ;;  %s2654_s28 = sld [smem:[#allocation3 + $0x42]] }
 0x168   : > { %978 = vrot.lane.b32.xlu0 %v974_v25, %s2117_s30  ;;  %966 = vrot.lane.b32.xlu1 %v961_v27, %s2116_s23  ;;  %v1077_v27 = vmul.f32 %v1076_v21, %v2554_v6  ;;  %v1174_v21 = vstv %s2626_s24  ;;  %s2700_s24 = sld [smem:[#allocation3 + $0x45]] }
 0x169   : > { %s858_s27 = smul.f32 0.25, %s2630_s3 }
 0x16a   : > { %v535_v31 = vpop.permute.xlu1 %534  ;;  %v547_v32 = vpop.permute.xlu0 %546  ;;  %s950_s3 = smul.f32 0.25, %s2687_s18  ;;  %s2776_s18 = sld [smem:[#allocation3 + $0x51]] }
 0x16b   : > { %v552_v47 = vadd.f32 %v547_v32, %v538_v39  ;;  %v539_v49 = vadd.f32 %v535_v31, %v525_v46  ;;  %v769_v39 = vstv %s766_s8  ;;  %v1091_v46 = vmul.f32 %v1089_v30, %v2567_v15  ;;  %s2673_s8 = sld [smem:[#allocation3 + $0x3d]] }
 0x16c   : > { %992 = vrot.lane.b32.xlu0 %v988_v33, %s2118_s26  ;;  %980 = vrot.lane.b32.xlu1 %v975_v34, %s2117_s30  ;;  %v1090_v34 = vmul.f32 %v1089_v30, %v2554_v6 }
 0x16e   : > { %v549_v40 = vpop.permute.xlu1 %548  ;;  %v561_v43 = vpop.permute.xlu0 %560 }
 0x16f   : > { %v566_v50 = vadd.f32 %v561_v43, %v552_v47  ;;  %v553_v54 = vadd.f32 %v549_v40, %v539_v49  ;;  %v770_v49 = vmul.f32 %v769_v39, %v2414_v58  ;;  %v771_v58 = vmul.f32 %v769_v39, %v2420_v0 }
 0x170   : > { %1006 = vrot.lane.b32.xlu0 %v1002_v42, %s2119_s19  ;;  %994 = vrot.lane.b32.xlu1 %v989_v44, %s2118_s26  ;;  %v1103_v44 = vmul.f32 %v1102_v38, %v2554_v6 }
 0x172   : > { %v563_v45 = vpop.permute.xlu1 %562  ;;  %v575_v51 = vpop.permute.xlu0 %574 }
 0x173   : > { %v580_v55 = vadd.f32 %v575_v51, %v566_v50  ;;  %v567_v59 = vadd.f32 %v563_v45, %v553_v54  ;;  %v1104_v54 = vmul.f32 %v1102_v38, %v2567_v15 }
 0x174   : > { %1020 = vrot.lane.b32.xlu0 %v1016_v52, %s2120_s29  ;;  %1008 = vrot.lane.b32.xlu1 %v1003_v53, %s2119_s19  ;;  %v1116_v53 = vmul.f32 %v1115_v48, %v2554_v6 }
 0x175   : > { %v2550_v61 = vadd.f32 %v678_v57, %v580_v55  ;;  %v1135_v57 = vstv %s2595_s15  ;;  %s2683_s15 = sld [smem:[#allocation3 + $0x44]] }
 0x176   : > { %v577_v62 = vpop.permute.xlu1 %576  ;;  %v597_v63 = vpop.permute.xlu0 %596 }
 0x177   : > { %v581_v4 = vadd.f32 %v577_v62, %v567_v59  ;;  %v602_v23 = vadd.f32 %v597_v63, %v2495_v5 }
 0x178   : > { %1034 = vrot.lane.b32.xlu0 %v1030_v2, %s2121_s16  ;;  %1022 = vrot.lane.b32.xlu1 %v1017_v3, %s2120_s29  ;;  %v1136_v2 = vmul.f32 %v1135_v57, %v2611_v56  ;;  %v1117_v3 = vmul.f32 %v1115_v48, %v2567_v15 }
 0x179   : > { %v2562_v8 = vadd.f32 %v679_v36, %v581_v4  ;;  %v2623_v4 = vld [vmem:[#allocation2 + $0x21] sm:$0xff] }
 0x17a   : > { %v599_v9 = vpop.permute.xlu1 %598  ;;  %v611_v10 = vpop.permute.xlu0 %610 }
 0x17b   : > { %v616_v29 = vadd.f32 %v611_v10, %v602_v23  ;;  %v603_v31 = vadd.f32 %v599_v9, %v2508_v13  ;;  %v1137_v9 = vmul.f32 %v1135_v57, %v2623_v4  ;;  %v1149_v10 = vmul.f32 %v1148_v7, %v2611_v56 }
 0x17c   : > { %1055 = vrot.lane.b32.xlu0 %v1051_v12, %s2116_s23  ;;  %1036 = vrot.lane.b32.xlu1 %v1031_v16, %s2121_s16  ;;  %v1161_v12 = vstv %s2614_s22  ;;  %v1259_v57 = vstv %s2663_s6  ;;  %s2692_s22 = sld [smem:[#allocation3 + $0x3e]]  ;;  %s2751_s6 = sld [smem:[#allocation3 + $0x49]] }
 0x17e   : > { %v613_v41 = vpop.permute.xlu1 %612  ;;  %v625_v17 = vpop.permute.xlu0 %624 }
 0x17f   : > { %v630_v32 = vadd.f32 %v625_v17, %v616_v29  ;;  %v617_v60 = vadd.f32 %v613_v41, %v603_v31  ;;  %v1150_v17 = vmul.f32 %v1148_v7, %v2623_v4  ;;  %v2651_v31 = vld [vmem:[#allocation2 + $0x1a] sm:$0xff] }
 0x180   : > { %1068 = vrot.lane.b32.xlu0 %v1064_v19, %s2117_s30  ;;  %1057 = vrot.lane.b32.xlu1 %v1052_v20, %s2116_s23  ;;  %v1162_v19 = vmul.f32 %v1161_v12, %v2611_v56 }
 0x182   : > { %v627_v24 = vpop.permute.xlu1 %626  ;;  %v639_v25 = vpop.permute.xlu0 %638 }
 0x183   : > { %v644_v37 = vadd.f32 %v639_v25, %v630_v32  ;;  %v631_v40 = vadd.f32 %v627_v24, %v617_v60  ;;  %v1220_v32 = vstv %s2635_s5  ;;  %v1176_v60 = vmul.f32 %v1174_v21, %v2623_v4  ;;  %s2709_s5 = sld [smem:[#allocation3 + $0x47]] }
 0x184   : > { %1081 = vrot.lane.b32.xlu0 %v1077_v27, %s2118_s26  ;;  %1070 = vrot.lane.b32.xlu1 %v1065_v28, %s2117_s30  ;;  %v1163_v27 = vmul.f32 %v1161_v12, %v2623_v4  ;;  %v1175_v28 = vmul.f32 %v1174_v21, %v2611_v56  ;;  %v1272_v12 = vstv %s2683_s15  ;;  %s2767_s15 = sld [smem:[#allocation3 + $0x4a]] }
 0x186   : > { %v641_v5 = vpop.permute.xlu1 %640  ;;  %v653_v33 = vpop.permute.xlu0 %652 }
 0x187   : > { %v658_v13 = vadd.f32 %v653_v33, %v644_v37  ;;  %v645_v47 = vadd.f32 %v641_v5, %v631_v40  ;;  %v1221_v37 = vmul.f32 %v1220_v32, %v2651_v31  ;;  %v2660_v40 = vld [vmem:[#allocation2 + $0x22] sm:$0xff] }
 0x188   : > { %1094 = vrot.lane.b32.xlu0 %v1090_v34, %s2119_s19  ;;  %1083 = vrot.lane.b32.xlu1 %v1078_v35, %s2118_s26 }
 0x18a   : > { %v655_v43 = vpop.permute.xlu1 %654  ;;  %v667_v42 = vpop.permute.xlu0 %666 }
 0x18b   : > { %v672_v1 = vadd.f32 %v667_v42, %v658_v13  ;;  %v659_v50 = vadd.f32 %v655_v43, %v645_v47  ;;  %v1233_v13 = vstv %s2643_s17  ;;  %s2716_s17 = sld [smem:[#allocation3 + $0x4e]] }
 0x18c   : > { %1107 = vrot.lane.b32.xlu0 %v1103_v44, %s2120_s29  ;;  %1096 = vrot.lane.b32.xlu1 %v1091_v46, %s2119_s19  ;;  %v1234_v48 = vmul.f32 %v1233_v13, %v2651_v31 }
 0x18d   : > { %v2607_v45 = vadd.f32 %v770_v49, %v672_v1  ;;  %v1222_v1 = vmul.f32 %v1220_v32, %v2660_v40 }
 0x18e   : > { %v669_v51 = vpop.permute.xlu1 %668  ;;  %v689_v52 = vpop.permute.xlu0 %688 }
 0x18f   : > { %v673_v55 = vadd.f32 %v669_v51, %v659_v50  ;;  %v694_v16 = vadd.f32 %v689_v52, %v2550_v61  ;;  %v1246_v50 = vstv %s2654_s28  ;;  %s2742_s28 = sld [smem:[#allocation3 + $0x4f]] }
 0x190   : > { %1120 = vrot.lane.b32.xlu0 %v1116_v53, %s2121_s16  ;;  %1109 = vrot.lane.b32.xlu1 %v1104_v54, %s2120_s29  ;;  %v1235_v54 = vmul.f32 %v1233_v13, %v2660_v40  ;;  %v2725_v13 = vld [vmem:[#allocation2 + $0x1b] sm:$0xff] }
 0x191   : > { %v2619_v59 = vadd.f32 %v771_v58, %v673_v55  ;;  %v1247_v55 = vmul.f32 %v1246_v50, %v2651_v31 }
 0x192   : > { %v691_v62 = vpop.permute.xlu1 %690  ;;  %v703_v63 = vpop.permute.xlu0 %702 }
 0x193   : > { %v708_v20 = vadd.f32 %v703_v63, %v694_v16  ;;  %v695_v23 = vadd.f32 %v691_v62, %v2562_v8  ;;  %v861_v8 = vstv %s858_s27  ;;  %v1248_v62 = vmul.f32 %v1246_v50, %v2660_v40  ;;  %s2728_s27 = sld [smem:[#allocation3 + $0x48]]  ;;  %v2739_v50 = vld [vmem:[#allocation2 + $0x1c] sm:$0xff] }
 0x194   : > { %1140 = vrot.lane.b32.xlu0 %v1136_v2, %s2116_s23  ;;  %1122 = vrot.lane.b32.xlu1 %v1117_v3, %s2121_s16  ;;  %v862_v43 = vmul.f32 %v861_v8, %v2444_v18  ;;  %v863_v18 = vmul.f32 %v861_v8, %v2452_v26  ;;  %v1260_v63 = vmul.f32 %v1259_v57, %v2651_v31  ;;  %v1187_v2 = vstv %s2673_s8  ;;  %s2759_s8 = sld [smem:[#allocation3 + $0x50]] }
 0x195   : > { %v1285_v8 = vstv %s2700_s24  ;;  %s2794_s24 = sld [smem:[#allocation3 + $0x52]] }
 0x196   : > { %v705_v0 = vpop.permute.xlu1 %704  ;;  %v717_v36 = vpop.permute.xlu0 %716 }
 0x197   : > { %v722_v24 = vadd.f32 %v717_v36, %v708_v20  ;;  %v709_v29 = vadd.f32 %v705_v0, %v695_v23  ;;  %v1261_v36 = vmul.f32 %v1259_v57, %v2660_v40  ;;  %v1200_v23 = vstv %s2692_s22  ;;  %s2786_s22 = sld [smem:[#allocation3 + $0x4b]] }
 0x198   : > { %1142 = vrot.lane.b32.xlu1 %v1137_v9, %s2116_s23  ;;  %1153 = vrot.lane.b32.xlu0 %v1149_v10, %s2117_s30  ;;  %v1188_v9 = vmul.f32 %v1187_v2, %v2611_v56 }
 0x199   : > { %v1318_v57 = vstv %s2728_s27  ;;  %s2817_s27 = sld [smem:[#allocation3 + $0x55]] }
 0x19a   : > { %v719_v14 = vpop.permute.xlu1 %718  ;;  %v731_v41 = vpop.permute.xlu0 %730 }
 0x19b   : > { %v736_v30 = vadd.f32 %v731_v41, %v722_v24  ;;  %v723_v5 = vadd.f32 %v719_v14, %v709_v29  ;;  %v953_v24 = vstv %s950_s3  ;;  %v1201_v29 = vmul.f32 %v1200_v23, %v2611_v56  ;;  %s2801_s3 = sld [smem:[#allocation3 + $0x4c]] }
 0x19c   : > { %1155 = vrot.lane.b32.xlu1 %v1150_v17, %s2117_s30  ;;  %1166 = vrot.lane.b32.xlu0 %v1162_v19, %s2118_s26  ;;  %v1189_v17 = vmul.f32 %v1187_v2, %v2623_v4  ;;  %v1273_v19 = vmul.f32 %v1272_v12, %v2651_v31  ;;  %v1319_v2 = vmul.f32 %v1318_v57, %v2725_v13 }
 0x19e   : > { %v733_v61 = vpop.permute.xlu1 %732  ;;  %v745_v25 = vpop.permute.xlu0 %744 }
 0x19f   : > { %v750_v33 = vadd.f32 %v745_v25, %v736_v30  ;;  %v737_v38 = vadd.f32 %v733_v61, %v723_v5  ;;  %v954_v5 = vmul.f32 %v953_v24, %v2499_v11  ;;  %v955_v11 = vmul.f32 %v953_v24, %v2512_v22 }
 0x1a0   : > { %1168 = vrot.lane.b32.xlu1 %v1163_v27, %s2118_s26  ;;  %1179 = vrot.lane.b32.xlu0 %v1175_v28, %s2119_s19  ;;  %v1274_v28 = vmul.f32 %v1272_v12, %v2660_v40 }
 0x1a2   : > { %v747_v34 = vpop.permute.xlu1 %746  ;;  %v759_v35 = vpop.permute.xlu0 %758 }
 0x1a3   : > { %v764_v39 = vadd.f32 %v759_v35, %v750_v33  ;;  %v751_v42 = vadd.f32 %v747_v34, %v737_v38  ;;  %v1286_v38 = vmul.f32 %v1285_v8, %v2651_v31 }
 0x1a4   : > { %1181 = vrot.lane.b32.xlu1 %v1176_v60, %s2119_s19  ;;  %1225 = vrot.lane.b32.xlu0 %v1221_v37, %s2116_s23  ;;  %v1202_v37 = vmul.f32 %v1200_v23, %v2623_v4 }
 0x1a5   : > { %v2668_v44 = vadd.f32 %v862_v43, %v764_v39  ;;  %v1305_v43 = vstv %s2709_s5  ;;  %s2807_s5 = sld [smem:[#allocation3 + $0x31]] }
 0x1a6   : > { %v761_v46 = vpop.permute.xlu1 %760  ;;  %v781_v47 = vpop.permute.xlu0 %780 }
 0x1a7   : > { %v765_v49 = vadd.f32 %v761_v46, %v751_v42  ;;  %v786_v3 = vadd.f32 %v781_v47, %v2607_v45 }
 0x1a8   : > { %1227 = vrot.lane.b32.xlu1 %v1222_v1, %s2116_s23  ;;  %1238 = vrot.lane.b32.xlu0 %v1234_v48, %s2117_s30  ;;  %v1287_v1 = vmul.f32 %v1285_v8, %v2660_v40  ;;  %v1306_v48 = vmul.f32 %v1305_v43, %v2725_v13  ;;  %v1344_v8 = vstv %s2767_s15  ;;  %s2862_s15 = sld [smem:[#allocation3 + $0x57]] }
 0x1a9   : > { %v2678_v51 = vadd.f32 %v863_v18, %v765_v49  ;;  %v2737_v49 = vld [vmem:[#allocation2 + $0x23] sm:$0xff]  ;;  %v1390_v18 = vstv %s2716_s17  ;;  %s2810_s17 = sld [smem:[#allocation3 + $0x53]] }
 0x1aa   : > { %v783_v52 = vpop.permute.xlu1 %782  ;;  %v795_v53 = vpop.permute.xlu0 %794 }
 0x1ab   : > { %v800_v10 = vadd.f32 %v795_v53, %v786_v3  ;;  %v787_v16 = vadd.f32 %v783_v52, %v2619_v59  ;;  %v1307_v53 = vmul.f32 %v1305_v43, %v2737_v49 }
 0x1ac   : > { %1240 = vrot.lane.b32.xlu1 %v1235_v54, %s2117_s30  ;;  %1251 = vrot.lane.b32.xlu0 %v1247_v55, %s2118_s26  ;;  %v1391_v54 = vmul.f32 %v1390_v18, %v2739_v50  ;;  %v2748_v55 = vld [vmem:[#allocation2 + $0x24] sm:$0xff] }
 0x1ae   : > { %v797_v26 = vpop.permute.xlu1 %796  ;;  %v809_v58 = vpop.permute.xlu0 %808 }
 0x1af   : > { %v814_v14 = vadd.f32 %v809_v58, %v800_v10  ;;  %v801_v20 = vadd.f32 %v797_v26, %v787_v16  ;;  %v1320_v10 = vmul.f32 %v1318_v57, %v2737_v49  ;;  %v1442_v57 = vstv %s2794_s24  ;;  %s2873_s24 = sld [smem:[#allocation3 + $0x5e]] }
 0x1b0   : > { %1253 = vrot.lane.b32.xlu1 %v1248_v62, %s2118_s26  ;;  %1264 = vrot.lane.b32.xlu0 %v1260_v63, %s2119_s19  ;;  %v1392_v63 = vmul.f32 %v1390_v18, %v2748_v55 }
 0x1b2   : > { %v811_v7 = vpop.permute.xlu1 %810  ;;  %v823_v0 = vpop.permute.xlu0 %822 }
 0x1b3   : > { %v828_v21 = vadd.f32 %v823_v0, %v814_v14  ;;  %v815_v61 = vadd.f32 %v811_v7, %v801_v20  ;;  %v1403_v7 = vstv %s2742_s28  ;;  %s2825_s28 = sld [smem:[#allocation3 + $0x5c]] }
 0x1b4   : > { %1266 = vrot.lane.b32.xlu1 %v1261_v36, %s2119_s19  ;;  %1192 = vrot.lane.b32.xlu0 %v1188_v9, %s2120_s29  ;;  %v1404_v12 = vmul.f32 %v1403_v7, %v2739_v50  ;;  %v1405_v20 = vmul.f32 %v1403_v7, %v2748_v55  ;;  %v1370_v7 = vstv %s2801_s3  ;;  %s2880_s3 = sld [smem:[#allocation3 + $0x58]] }
 0x1b6   : > { %v825_v45 = vpop.permute.xlu1 %824  ;;  %v837_v41 = vpop.permute.xlu0 %836 }
 0x1b7   : > { %v842_v59 = vadd.f32 %v837_v41, %v828_v21  ;;  %v829_v30 = vadd.f32 %v825_v45, %v815_v61  ;;  %v1331_v45 = vstv %s2751_s6  ;;  %v1416_v61 = vstv %s2759_s8  ;;  %s2838_s6 = sld [smem:[#allocation3 + $0x56]]  ;;  %s2853_s8 = sld [smem:[#allocation3 + $0x5d]] }
 0x1b8   : > { %1194 = vrot.lane.b32.xlu1 %v1189_v17, %s2120_s29  ;;  %1277 = vrot.lane.b32.xlu0 %v1273_v19, %s2120_s29  ;;  %v1332_v21 = vmul.f32 %v1331_v45, %v2725_v13 }
 0x1ba   : > { %v839_v25 = vpop.permute.xlu1 %838  ;;  %v851_v27 = vpop.permute.xlu0 %850 }
 0x1bb   : > { %v856_v32 = vadd.f32 %v851_v27, %v842_v59  ;;  %v843_v33 = vadd.f32 %v839_v25, %v829_v30 }
 0x1bc   : > { %1279 = vrot.lane.b32.xlu1 %v1274_v28, %s2120_s29  ;;  %1205 = vrot.lane.b32.xlu0 %v1201_v29, %s2121_s16  ;;  %v1333_v28 = vmul.f32 %v1331_v45, %v2737_v49  ;;  %v1417_v29 = vmul.f32 %v1416_v61, %v2739_v50 }
 0x1bd   : > { %v2721_v34 = vadd.f32 %v954_v5, %v856_v32 }
 0x1be   : > { %v853_v35 = vpop.permute.xlu1 %852  ;;  %v873_v60 = vpop.permute.xlu0 %872 }
 0x1bf   : > { %v857_v39 = vadd.f32 %v853_v35, %v843_v33  ;;  %v878_v26 = vadd.f32 %v873_v60, %v2668_v44  ;;  %v1418_v35 = vmul.f32 %v1416_v61, %v2748_v55  ;;  %v1345_v60 = vmul.f32 %v1344_v8, %v2725_v13  ;;  %v2835_v61 = vld [vmem:[#allocation2 + $0x1d] sm:$0xff] }
 0x1c0   : > { %1207 = vrot.lane.b32.xlu1 %v1202_v37, %s2121_s16  ;;  %1290 = vrot.lane.b32.xlu0 %v1286_v38, %s2121_s16 }
 0x1c1   : > { %v2733_v42 = vadd.f32 %v955_v11, %v857_v39  ;;  %v1429_v39 = vstv %s2776_s18  ;;  %v1346_v11 = vmul.f32 %v1344_v8, %v2737_v49  ;;  %s2866_s18 = sld [smem:[#allocation3 + $0x3f]] }
 0x1c2   : > { %v875_v46 = vpop.permute.xlu1 %874  ;;  %v887_v47 = vpop.permute.xlu0 %886 }
 0x1c3   : > { %v892_v3 = vadd.f32 %v887_v47, %v878_v26  ;;  %v879_v0 = vadd.f32 %v875_v46, %v2678_v51  ;;  %v1430_v46 = vmul.f32 %v1429_v39, %v2739_v50 }
 0x1c4   : > { %1292 = vrot.lane.b32.xlu1 %v1287_v1, %s2121_s16  ;;  %1310 = vrot.lane.b32.xlu0 %v1306_v48, %s2116_s23  ;;  %v1357_v48 = vstv %s2786_s22  ;;  %s2870_s22 = sld [smem:[#allocation3 + $0x38]] }
 0x1c6   : > { %v889_v22 = vpop.permute.xlu1 %888  ;;  %v901_v52 = vpop.permute.xlu0 %900 }
 0x1c7   : > { %v906_v36 = vadd.f32 %v901_v52, %v892_v3  ;;  %v893_v16 = vadd.f32 %v889_v22, %v879_v0  ;;  %v1431_v22 = vmul.f32 %v1429_v39, %v2748_v55  ;;  %v1358_v52 = vmul.f32 %v1357_v48, %v2725_v13 }
 0x1c8   : > { %1312 = vrot.lane.b32.xlu1 %v1307_v53, %s2116_s23  ;;  %1395 = vrot.lane.b32.xlu0 %v1391_v54, %s2116_s23 }
 0x1ca   : > { %v903_v58 = vpop.permute.xlu1 %902  ;;  %v915_v62 = vpop.permute.xlu0 %914 }
 0x1cb   : > { %v920_v14 = vadd.f32 %v915_v62, %v906_v36  ;;  %v907_v41 = vadd.f32 %v903_v58, %v893_v16  ;;  %v1359_v62 = vmul.f32 %v1357_v48, %v2737_v49 }
 0x1cc   : > { %1397 = vrot.lane.b32.xlu1 %v1392_v63, %s2116_s23  ;;  %1323 = vrot.lane.b32.xlu0 %v1319_v2, %s2117_s30  ;;  %v1443_v63 = vmul.f32 %v1442_v57, %v2739_v50 }
 0x1ce   : > { %v917_v9 = vpop.permute.xlu1 %916  ;;  %v929_v44 = vpop.permute.xlu0 %928 }
 0x1cf   : > { %v934_v17 = vadd.f32 %v929_v44, %v920_v14  ;;  %v921_v23 = vadd.f32 %v917_v9, %v907_v41  ;;  %v1444_v9 = vmul.f32 %v1442_v57, %v2748_v55  ;;  %v1371_v44 = vmul.f32 %v1370_v7, %v2725_v13 }
 0x1d0   : > { %1325 = vrot.lane.b32.xlu1 %v1320_v10, %s2117_s30  ;;  %1408 = vrot.lane.b32.xlu0 %v1404_v12, %s2117_s30  ;;  %v1045_v10 = vstv %s2807_s5  ;;  %v1455_v14 = vstv %s2810_s17  ;;  %s2898_s5 = sld [smem:[#allocation3 + $0x59]]  ;;  %s2914_s17 = sld [smem:[#allocation3 + $0x5a]] }
 0x1d1   : > { %v1046_v41 = vmul.f32 %v1045_v10, %v2554_v6 }
 0x1d2   : > { %v931_v51 = vpop.permute.xlu1 %930  ;;  %v943_v19 = vpop.permute.xlu0 %942 }
 0x1d3   : > { %v2773_v24 = vadd.f32 %v943_v19, %v934_v17  ;;  %v935_v59 = vadd.f32 %v931_v51, %v921_v23  ;;  %v1372_v19 = vmul.f32 %v1370_v7, %v2737_v49 }
 0x1d4   : > { %1410 = vrot.lane.b32.xlu1 %v1405_v20, %s2117_s30  ;;  %1336 = vrot.lane.b32.xlu0 %v1332_v21, %s2118_s26  ;;  %v1456_v20 = vmul.f32 %v1455_v14, %v2739_v50 }
 0x1d6   : > { %v945_v25 = vpop.permute.xlu1 %944  ;;  %v965_v27 = vpop.permute.xlu0 %964 }
 0x1d7   : > { %v2782_v30 = vadd.f32 %v945_v25, %v935_v59  ;;  %v970_v32 = vadd.f32 %v965_v27, %v2721_v34  ;;  %v1475_v59 = vstv %s2817_s27  ;;  %s2945_s27 = sld [smem:[#allocation3 + $0x5b]] }
 0x1d8   : > { %1338 = vrot.lane.b32.xlu1 %v1333_v28, %s2118_s26  ;;  %1421 = vrot.lane.b32.xlu0 %v1417_v29, %s2118_s26  ;;  %v1457_v28 = vmul.f32 %v1455_v14, %v2748_v55  ;;  %v1476_v29 = vmul.f32 %v1475_v59, %v2835_v61 }
 0x1da   : > { %v967_v5 = vpop.permute.xlu1 %966  ;;  %v979_v33 = vpop.permute.xlu0 %978 }
 0x1db   : > { %v971_v37 = vadd.f32 %v967_v5, %v2733_v42  ;;  %v984_v38 = vadd.f32 %v979_v33, %v970_v32  ;;  %v2848_v5 = vld [vmem:[#allocation2 + $0x25] sm:$0xff] }
 0x1dc   : > { %1423 = vrot.lane.b32.xlu1 %v1418_v35, %s2118_s26  ;;  %1349 = vrot.lane.b32.xlu0 %v1345_v60, %s2119_s19  ;;  %v2850_v33 = vld [vmem:[#allocation2 + $0x1e] sm:$0xff]  ;;  %v1560_v35 = vstv %s2825_s28  ;;  %v1477_v60 = vmul.f32 %v1475_v59, %v2848_v5  ;;  %s1779_s28 = sshll.u32 %s2278_s7, 4 }
 0x1de   : > { %v981_v34 = vpop.permute.xlu1 %980  ;;  %v993_v43 = vpop.permute.xlu0 %992 }
 0x1df   : > { %v985_v47 = vadd.f32 %v981_v34, %v971_v37  ;;  %v998_v1 = vadd.f32 %v993_v43, %v984_v38  ;;  %v1561_v37 = vmul.f32 %v1560_v35, %v2850_v33  ;;  %v2859_v34 = vld [vmem:[#allocation2 + $0x26] sm:$0xff]  ;;  %v1488_v43 = vstv %s2838_s6  ;;  %s1885_s6 = sshll.u32 %s2100_s12, 8 }
 0x1e0   : > { %1351 = vrot.lane.b32.xlu1 %v1346_v11, %s2119_s19  ;;  %1434 = vrot.lane.b32.xlu0 %v1430_v46, %s2119_s19 }
 0x1e2   : > { %v995_v42 = vpop.permute.xlu1 %994  ;;  %v1007_v18 = vpop.permute.xlu0 %1006 }
 0x1e3   : > { %v999_v53 = vadd.f32 %v995_v42, %v985_v47  ;;  %v1012_v54 = vadd.f32 %v1007_v18, %v998_v1  ;;  %v1562_v47 = vmul.f32 %v1560_v35, %v2859_v34  ;;  %v1489_v1 = vmul.f32 %v1488_v43, %v2835_v61 }
 0x1e4   : > { %1436 = vrot.lane.b32.xlu1 %v1431_v22, %s2119_s19  ;;  %1362 = vrot.lane.b32.xlu0 %v1358_v52, %s2120_s29  ;;  %v1573_v18 = vstv %s2853_s8  ;;  %s190_s8 = scalar_lea.vmem [#allocation8], %s1779_s28 }
 0x1e6   : > { %v1009_v26 = vpop.permute.xlu1 %1008  ;;  %v1021_v58 = vpop.permute.xlu0 %1020 }
 0x1e7   : > { %v1013_v2 = vadd.f32 %v1009_v26, %v999_v53  ;;  %v1026_v3 = vadd.f32 %v1021_v58, %v1012_v54  ;;  %v1490_v53 = vmul.f32 %v1488_v43, %v2848_v5  ;;  %v1574_v54 = vmul.f32 %v1573_v18, %v2850_v33 }
 0x1e8   : > { %1364 = vrot.lane.b32.xlu1 %v1359_v62, %s2120_s29  ;;  %1447 = vrot.lane.b32.xlu0 %v1443_v63, %s2120_s29  ;;  %v1501_v58 = vstv %s2862_s15  ;;  %v1215_v62 = vstv %s2866_s18  ;;  %s1672_s15 = sshll.u32 %s190_s8, 4  ;;  %s2962_s15 = int_to_ptr.vmem [resolvable:$true] %s1672_s15 }
 0x1e9   : > { %v1502_v7 = vmul.f32 %v1501_v58, %v2835_v61  ;;  %s2022_s12 = scalar_lea.vmem %s2962_s15, 256 }
 0x1ea   : > { %v1023_v0 = vpop.permute.xlu1 %1022  ;;  %v1035_v36 = vpop.permute.xlu0 %1034  ;;  %p2023_p8 = scmp.ne.s32.totalorder %s2962_s15, %s2022_s12 }
 0x1eb   : > { %v1027_v12 = vadd.f32 %v1023_v0, %v1013_v2  ;;  %v1040_v16 = vadd.f32 %v1035_v36, %v1026_v3  ;;  %v1575_v3 = vmul.f32 %v1573_v18, %v2859_v34  ;;  %v1130_v0 = vstv %s2870_s22 }
 0x1ec   : > { %1449 = vrot.lane.b32.xlu1 %v1444_v9, %s2120_s29  ;;  %1375 = vrot.lane.b32.xlu0 %v1371_v44, %s2121_s16  ;;  %v1586_v44 = vstv %s2873_s24  ;;  %s2960_s24 = scalar_lea.hbm %s3014_s2, %s1885_s6  ;;  %p2024_p0 = pnand %p2023_p8, %p3027_p13 }
 0x1ed   : > { %v2830_v45 = vadd.f32 %v1040_v16, %v2773_v24  ;;  %v1047_v24 = vmul.f32 %v1045_v10, %v2567_v15  ;;  %v1216_v10 = vmul.f32 %v1215_v62, %v2651_v31  ;;  %v1217_v31 = vmul.f32 %v1215_v62, %v2660_v40 }
 0x1ee   : > { %v1037_v17 = vpop.permute.xlu1 %1036  ;;  %v1056_v51 = vpop.permute.xlu0 %1055  ;;  %p2025_p2 = pneg %p2024_p0 }
 0x1ef   : > { %v1041_v21 = vadd.f32 %v1037_v17, %v1027_v12  ;;  %v1061_v23 = vadd.f32 %v1056_v51, %v1046_v41  ;;  %v1131_v12 = vmul.f32 %v1130_v0, %v2611_v56  ;;  %v1503_v17 = vmul.f32 %v1501_v58, %v2848_v5 }
 0x1f0   : > { %1377 = vrot.lane.b32.xlu1 %v1372_v19, %s2121_s16  ;;  %1460 = vrot.lane.b32.xlu0 %v1456_v20, %s2121_s16  ;;  %v1587_v51 = vmul.f32 %v1586_v44, %v2850_v33  ;;  %v1132_v56 = vmul.f32 %v1130_v0, %v2623_v4 }
 0x1f1   : > { %v2843_v6 = vadd.f32 %v1041_v21, %v2782_v30  ;;  %v1514_v21 = vstv %s2880_s3  ;;  %s1659_s3 = scalar_lea.sflag [#allocation5], %s2278_s7 }
 0x1f2   : > { %v1058_v25 = vpop.permute.xlu1 %1057  ;;  %v1069_v27 = vpop.permute.xlu0 %1068 }
 0x1f3   : > { %v1062_v32 = vadd.f32 %v1058_v25, %v1047_v24  ;;  %v1074_v8 = vadd.f32 %v1069_v27, %v1061_v23  ;;  %v1588_v25 = vmul.f32 %v1586_v44, %v2859_v34  ;;  %v1515_v27 = vmul.f32 %v1514_v21, %v2835_v61 }
 0x1f4   : > { %1462 = vrot.lane.b32.xlu1 %v1457_v28, %s2121_s16  ;;  %1480 = vrot.lane.b32.xlu0 %v1476_v29, %s2116_s23 }
 0x1f6   : > { %v1071_v15 = vpop.permute.xlu1 %1070  ;;  %v1082_v30 = vpop.permute.xlu0 %1081 }
 0x1f7   : > { %v1075_v38 = vadd.f32 %v1071_v15, %v1062_v32  ;;  %v1087_v39 = vadd.f32 %v1082_v30, %v1074_v8  ;;  %v1516_v8 = vmul.f32 %v1514_v21, %v2848_v5 }
 0x1f8   : > { %1482 = vrot.lane.b32.xlu1 %v1477_v60, %s2116_s23  ;;  %1565 = vrot.lane.b32.xlu0 %v1561_v37, %s2116_s23  ;;  %v1527_v60 = vstv %s2898_s5 }
 0x1f9   : > { %v1528_v43 = vmul.f32 %v1527_v60, %v2835_v61 }
 0x1fa   : > { %v1084_v11 = vpop.permute.xlu1 %1083  ;;  %v1095_v46 = vpop.permute.xlu0 %1094 }
 0x1fb   : > { %v1088_v48 = vadd.f32 %v1084_v11, %v1075_v38  ;;  %v1100_v42 = vadd.f32 %v1095_v46, %v1087_v39 }
 0x1fc   : > { %1567 = vrot.lane.b32.xlu1 %v1562_v47, %s2116_s23  ;;  %1493 = vrot.lane.b32.xlu0 %v1489_v1, %s2117_s30  ;;  %s2889_s23 = sld [smem:[#allocation3 + $0x5f]] }
 0x1fe   : > { %v1097_v22 = vpop.permute.xlu1 %1096  ;;  %v1108_v52 = vpop.permute.xlu0 %1107 }
 0x1ff   : > { %v1101_v57 = vadd.f32 %v1097_v22, %v1088_v48  ;;  %v1113_v26 = vadd.f32 %v1108_v52, %v1100_v42  ;;  %v1529_v42 = vmul.f32 %v1527_v60, %v2848_v5 }
 0x200   : > { %1495 = vrot.lane.b32.xlu1 %v1490_v53, %s2117_s30  ;;  %1578 = vrot.lane.b32.xlu0 %v1574_v54, %s2117_s30  ;;  %v1540_v53 = vstv %s2914_s17 }
 0x201   : > { %v1541_v58 = vmul.f32 %v1540_v53, %v2835_v61  ;;  %v1542_v0 = vmul.f32 %v1540_v53, %v2848_v5 }
 0x202   : > { %v1110_v63 = vpop.permute.xlu1 %1109  ;;  %v1121_v2 = vpop.permute.xlu0 %1120  ;;  %v1599_v32 = vstv %s2889_s23  ;;  %s2122_s23 = smov [#allocation8]  }
 0x203   : > { %v1114_v36 = vadd.f32 %v1110_v63, %v1101_v57  ;;  %v1126_v9 = vadd.f32 %v1121_v2, %v1113_v26  ;;  %v1600_v35 = vmul.f32 %v1599_v32, %v2850_v33  ;;  %v1601_v39 = vmul.f32 %v1599_v32, %v2859_v34  ;;  %s2026_s5 = sshll.u32 %s2122_s23, 4  ;;  %s2027_s5 = int_to_ptr.vmem [resolvable:$false] %s2026_s5 }
 0x204   : > { %1580 = vrot.lane.b32.xlu1 %v1575_v3, %s2117_s30  ;;  %1506 = vrot.lane.b32.xlu0 %v1502_v7, %s2118_s26  ;;  %s2907_s30 = sld [smem:[#allocation3 + $0x60]]  ;;  %p2029_p6 = scmp.lt.s32.totalorder %s2962_s15, %s2027_s5 }
 0x205   : > { %v1218_v16 = vadd.f32 %v1216_v10, %v1126_v9 }
 0x206   : > { %v1123_v14 = vpop.permute.xlu1 %1122  ;;  %v1141_v41 = vpop.permute.xlu0 %1140 }
 0x207   : > { %v1127_v19 = vadd.f32 %v1123_v14, %v1114_v36  ;;  %v1146_v20 = vadd.f32 %v1141_v41, %v1131_v12 }
 0x208   : > { %1508 = vrot.lane.b32.xlu1 %v1503_v17, %s2118_s26  ;;  %1591 = vrot.lane.b32.xlu0 %v1587_v51, %s2118_s26 }
 0x209   : > { %v1219_v23 = vadd.f32 %v1217_v31, %v1127_v19 }
 0x20a   : > { %v1143_v59 = vpop.permute.xlu1 %1142  ;;  %v1154_v24 = vpop.permute.xlu0 %1153  ;;  %v1612_v47 = vstv %s2907_s30  ;;  %s2028_s30 = scalar_lea.vmem %s2027_s5, 512 }
 0x20b   : > { %v1147_v28 = vadd.f32 %v1143_v59, %v1132_v56  ;;  %v1159_v29 = vadd.f32 %v1154_v24, %v1146_v20  ;;  %v1613_v18 = vmul.f32 %v1612_v47, %v2850_v33  ;;  %v1614_v26 = vmul.f32 %v1612_v47, %v2859_v34  ;;  %p2030_p1 = scmp.lt.s32.totalorder %s2028_s30, %s2022_s12 }
 0x20c   : > { %1593 = vrot.lane.b32.xlu1 %v1588_v25, %s2118_s26  ;;  %1519 = vrot.lane.b32.xlu0 %v1515_v27, %s2119_s19  ;;  %s2921_s26 = sld [smem:[#allocation3 + $0x61]] }
 0x20d   : > { %p2031_p7 = por %p2030_p1, %p2029_p6 }
 0x20e   : > { %v1156_v40 = vpop.permute.xlu1 %1155  ;;  %v1167_v4 = vpop.permute.xlu0 %1166 }
 0x20f   : > { %v1160_v15 = vadd.f32 %v1156_v40, %v1147_v28  ;;  %v1172_v30 = vadd.f32 %v1167_v4, %v1159_v29  ;;  %p2032_p12 = pnand %p2031_p7, %p2025_p2 }
 0x210   : > { %1521 = vrot.lane.b32.xlu1 %v1516_v8, %s2119_s19  ;;  %1604 = vrot.lane.b32.xlu0 %v1600_v35, %s2119_s19 }
 0x212   : > { %v1169_v37 = vpop.permute.xlu1 %1168  ;;  %v1180_v38 = vpop.permute.xlu0 %1179  ;;  %v1625_v2 = vstv %s2921_s26 }
 0x213   : > { %v1173_v11 = vadd.f32 %v1169_v37, %v1160_v15  ;;  %v1185_v46 = vadd.f32 %v1180_v38, %v1172_v30  ;;  %v1626_v36 = vmul.f32 %v1625_v2, %v2850_v33 }
 0x214   : > { %1606 = vrot.lane.b32.xlu1 %v1601_v39, %s2119_s19  ;;  %1532 = vrot.lane.b32.xlu0 %v1528_v43, %s2120_s29  ;;  %s1849_s19 = sld [smem:[#allocation3 + $0x46]] }
 0x216   : > { %v1182_v1 = vpop.permute.xlu1 %1181  ;;  %v1226_v48 = vpop.permute.xlu0 %1225 }
 0x217   : > { %v1186_v22 = vadd.f32 %v1182_v1, %v1173_v11  ;;  %v1231_v52 = vadd.f32 %v1226_v48, %v1218_v16  ;;  %v1627_v16 = vmul.f32 %v1625_v2, %v2859_v34 }
 0x218   : > { %1534 = vrot.lane.b32.xlu1 %v1529_v42, %s2120_s29  ;;  %1617 = vrot.lane.b32.xlu0 %v1613_v18, %s2120_s29 }
 0x21a   : > { %v1228_v54 = vpop.permute.xlu1 %1227  ;;  %v1239_v57 = vpop.permute.xlu0 %1238  ;;  %v1300_v59 = vstv %s1849_s19 }
 0x21b   : > { %v1232_v62 = vadd.f32 %v1228_v54, %v1219_v23  ;;  %v1244_v63 = vadd.f32 %v1239_v57, %v1231_v52  ;;  %v1301_v29 = vmul.f32 %v1300_v59, %v2725_v13  ;;  %v1302_v30 = vmul.f32 %v1300_v59, %v2737_v49 }
 0x21c   : > { %1619 = vrot.lane.b32.xlu1 %v1614_v26, %s2120_s29  ;;  %1545 = vrot.lane.b32.xlu0 %v1541_v58, %s2121_s16  ;;  %s1856_s29 = sld [smem:[#allocation3 + $0x4d]] }
 0x21e   : > { %v1241_v3 = vpop.permute.xlu1 %1240  ;;  %v1252_v7 = vpop.permute.xlu0 %1251 }
 0x21f   : > { %v1245_v9 = vadd.f32 %v1241_v3, %v1232_v62  ;;  %v1257_v44 = vadd.f32 %v1252_v7, %v1244_v63 }
 0x220   : > { %1547 = vrot.lane.b32.xlu1 %v1542_v0, %s2121_s16  ;;  %1630 = vrot.lane.b32.xlu0 %v1626_v36, %s2121_s16 }
 0x222   : > { %v1254_v10 = vpop.permute.xlu1 %1253  ;;  %v1265_v12 = vpop.permute.xlu0 %1264  ;;  %v1385_v32 = vstv %s1856_s29 }
 0x223   : > { %v1258_v14 = vadd.f32 %v1254_v10, %v1245_v9  ;;  %v1270_v41 = vadd.f32 %v1265_v12, %v1257_v44  ;;  %v1386_v60 = vmul.f32 %v1385_v32, %v2739_v50  ;;  %v1387_v47 = vmul.f32 %v1385_v32, %v2748_v55 }
 0x224   : > { %1632 = vrot.lane.b32.xlu1 %v1627_v16, %s2121_s16  ;;  %s1863_s16 = sld [smem:[#allocation3 + $0x54]] }
 0x226   : > { %v1267_v17 = vpop.permute.xlu1 %1266  ;;  %v1193_v51 = vpop.permute.xlu0 %1192 }
 0x227   : > { %v1271_v19 = vadd.f32 %v1267_v17, %v1258_v14  ;;  %v1198_v20 = vadd.f32 %v1193_v51, %v1185_v46 }
 0x22a   : > { %v1195_v21 = vpop.permute.xlu1 %1194  ;;  %v1278_v31 = vpop.permute.xlu0 %1277  ;;  %v1470_v14 = vstv %s1863_s16 }
 0x22b   : > { %v1199_v56 = vadd.f32 %v1195_v21, %v1186_v22  ;;  %v1283_v23 = vadd.f32 %v1278_v31, %v1270_v41  ;;  %v1471_v21 = vmul.f32 %v1470_v14, %v2835_v61 }
 0x22e   : > { %v1280_v24 = vpop.permute.xlu1 %1279  ;;  %v1206_v25 = vpop.permute.xlu0 %1205 }
 0x22f   : > { %v1284_v27 = vadd.f32 %v1280_v24, %v1271_v19  ;;  %v1211_v28 = vadd.f32 %v1206_v25, %v1198_v20  ;;  %v1555_v24 = vstv %s2945_s27 }
 0x231   : > { %v1303_v40 = vadd.f32 %v1301_v29, %v1211_v28 }
 0x232   : > { %v1208_v4 = vpop.permute.xlu1 %1207  ;;  %v1291_v8 = vpop.permute.xlu0 %1290 }
 0x233   : > { %v1212_v35 = vadd.f32 %v1208_v4, %v1199_v56  ;;  %v1296_v15 = vadd.f32 %v1291_v8, %v1283_v23  ;;  %v1472_v4 = vmul.f32 %v1470_v14, %v2848_v5 }
 0x235   : > { %v1304_v37 = vadd.f32 %v1302_v30, %v1212_v35  ;;  %v1388_v38 = vadd.f32 %v1386_v60, %v1296_v15  ;;  %v1556_v30 = vmul.f32 %v1555_v24, %v2850_v33 }
 0x236   : > { %v1293_v39 = vpop.permute.xlu1 %1292  ;;  %v1311_v43 = vpop.permute.xlu0 %1310 }
 0x237   : > { %v1297_v11 = vadd.f32 %v1293_v39, %v1284_v27  ;;  %v1316_v46 = vadd.f32 %v1311_v43, %v1303_v40 }
 0x239   : > { %v1389_v1 = vadd.f32 %v1387_v47, %v1297_v11  ;;  %v1557_v11 = vmul.f32 %v1555_v24, %v2859_v34 }
 0x23a   : > { %v1313_v13 = vpop.permute.xlu1 %1312  ;;  %v1396_v48 = vpop.permute.xlu0 %1395 }
 0x23b   : > { %v1317_v42 = vadd.f32 %v1313_v13, %v1304_v37  ;;  %v1401_v18 = vadd.f32 %v1396_v48, %v1388_v38 }
 0x23e   : > { %v1398_v22 = vpop.permute.xlu1 %1397  ;;  %v1324_v52 = vpop.permute.xlu0 %1323 }
 0x23f   : > { %v1402_v53 = vadd.f32 %v1398_v22, %v1389_v1  ;;  %v1329_v0 = vadd.f32 %v1324_v52, %v1316_v46 }
 0x242   : > { %v1326_v54 = vpop.permute.xlu1 %1325  ;;  %v1409_v49 = vpop.permute.xlu0 %1408 }
 0x243   : > { %v1330_v10 = vadd.f32 %v1326_v54, %v1317_v42  ;;  %v1414_v12 = vadd.f32 %v1409_v49, %v1401_v18 }
 0x246   : > { %v1411_v57 = vpop.permute.xlu1 %1410  ;;  %v1337_v50 = vpop.permute.xlu0 %1336 }
 0x247   : > { %v1342_v36 = vadd.f32 %v1337_v50, %v1329_v0  ;;  %v1415_v31 = vadd.f32 %v1411_v57, %v1402_v53 }
 0x24a   : > { %v1339_v26 = vpop.permute.xlu1 %1338  ;;  %v1422_v58 = vpop.permute.xlu0 %1421 }
 0x24b   : > { %v1343_v41 = vadd.f32 %v1339_v26, %v1330_v10  ;;  %v1427_v17 = vadd.f32 %v1422_v58, %v1414_v12 }
 0x24e   : > { %v1424_v62 = vpop.permute.xlu1 %1423  ;;  %v1350_v63 = vpop.permute.xlu0 %1349 }
 0x24f   : > { %v1355_v16 = vadd.f32 %v1350_v63, %v1342_v36  ;;  %v1428_v25 = vadd.f32 %v1424_v62, %v1415_v31 }
 0x252   : > { %v1352_v2 = vpop.permute.xlu1 %1351  ;;  %v1435_v3 = vpop.permute.xlu0 %1434 }
 0x253   : > { %v1356_v56 = vadd.f32 %v1352_v2, %v1343_v41  ;;  %v1440_v23 = vadd.f32 %v1435_v3, %v1427_v17 }
 0x256   : > { %v1437_v55 = vpop.permute.xlu1 %1436  ;;  %v1363_v7 = vpop.permute.xlu0 %1362 }
 0x257   : > { %v1368_v51 = vadd.f32 %v1363_v7, %v1355_v16  ;;  %v1441_v8 = vadd.f32 %v1437_v55, %v1428_v25 }
 0x25a   : > { %v1365_v9 = vpop.permute.xlu1 %1364  ;;  %v1448_v44 = vpop.permute.xlu0 %1447 }
 0x25b   : > { %v1369_v27 = vadd.f32 %v1365_v9, %v1356_v56  ;;  %v1453_v28 = vadd.f32 %v1448_v44, %v1440_v23 }
 0x25e   : > { %v1450_v19 = vpop.permute.xlu1 %1449  ;;  %v1376_v20 = vpop.permute.xlu0 %1375 }
 0x25f   : > { %v1381_v59 = vadd.f32 %v1376_v20, %v1368_v51  ;;  %v1454_v60 = vadd.f32 %v1450_v19, %v1441_v8 }
 0x261   : > { %v1473_v29 = vadd.f32 %v1471_v21, %v1381_v59 }
 0x262   : > { %v1378_v32 = vpop.permute.xlu1 %1377  ;;  %v1461_v40 = vpop.permute.xlu0 %1460 }
 0x263   : > { %v1382_v35 = vadd.f32 %v1378_v32, %v1369_v27  ;;  %v1466_v15 = vadd.f32 %v1461_v40, %v1453_v28 }
 0x265   : > { %v1474_v61 = vadd.f32 %v1472_v4, %v1382_v35  ;;  %v1558_v37 = vadd.f32 %v1556_v30, %v1466_v15 }
 0x266   : > { %v1463_v38 = vpop.permute.xlu1 %1462  ;;  %v1481_v39 = vpop.permute.xlu0 %1480 }
 0x267   : > { %v1467_v43 = vadd.f32 %v1463_v38, %v1454_v60  ;;  %v1486_v58 = vadd.f32 %v1481_v39, %v1473_v29 }
 0x269   : > { %v1559_v46 = vadd.f32 %v1557_v11, %v1467_v43 }
 0x26a   : > { %v1483_v47 = vpop.permute.xlu1 %1482  ;;  %v1566_v1 = vpop.permute.xlu0 %1565 }
 0x26b   : > { %v1571_v62 = vadd.f32 %v1566_v1, %v1558_v37  ;;  %v1487_v55 = vadd.f32 %v1483_v47, %v1474_v61 }
 0x26e   : > { %v1568_v13 = vpop.permute.xlu1 %1567  ;;  %v1494_v48 = vpop.permute.xlu0 %1493 }
 0x26f   : > { %v1499_v2 = vadd.f32 %v1494_v48, %v1486_v58  ;;  %v1572_v7 = vadd.f32 %v1568_v13, %v1559_v46 }
 0x272   : > { %v1496_v42 = vpop.permute.xlu1 %1495  ;;  %v1579_v5 = vpop.permute.xlu0 %1578 }
 0x273   : > { %v1584_v3 = vadd.f32 %v1579_v5, %v1571_v62  ;;  %v1500_v10 = vadd.f32 %v1496_v42, %v1487_v55 }
 0x276   : > { %v1581_v18 = vpop.permute.xlu1 %1580  ;;  %v1507_v22 = vpop.permute.xlu0 %1506 }
 0x277   : > { %v1512_v0 = vadd.f32 %v1507_v22, %v1499_v2  ;;  %v1585_v12 = vadd.f32 %v1581_v18, %v1572_v7 }
 0x27a   : > { %v1509_v52 = vpop.permute.xlu1 %1508  ;;  %v1592_v53 = vpop.permute.xlu0 %1591 }
 0x27b   : > { %v1597_v36 = vadd.f32 %v1592_v53, %v1584_v3  ;;  %v1513_v41 = vadd.f32 %v1509_v52, %v1500_v10 }
 0x27e   : > { %v1594_v33 = vpop.permute.xlu1 %1593  ;;  %v1520_v54 = vpop.permute.xlu0 %1519 }
 0x27f   : > { %v1525_v16 = vadd.f32 %v1520_v54, %v1512_v0  ;;  %v1598_v17 = vadd.f32 %v1594_v33, %v1585_v12 }
 0x282   : > { %v1522_v49 = vpop.permute.xlu1 %1521  ;;  %v1605_v57 = vpop.permute.xlu0 %1604 }
 0x283   : > { %v1610_v14 = vadd.f32 %v1605_v57, %v1597_v36  ;;  %v1526_v31 = vadd.f32 %v1522_v49, %v1513_v41 }
 0x286   : > { %v1607_v50 = vpop.permute.xlu1 %1606  ;;  %v1533_v26 = vpop.permute.xlu0 %1532 }
 0x287   : > { %v1538_v51 = vadd.f32 %v1533_v26, %v1525_v16  ;;  %v1611_v56 = vadd.f32 %v1607_v50, %v1598_v17 }
 0x28a   : > { %v1535_v34 = vpop.permute.xlu1 %1534  ;;  %v1618_v63 = vpop.permute.xlu0 %1617 }
 0x28b   : > { %v1623_v19 = vadd.f32 %v1618_v63, %v1610_v14  ;;  %v1539_v24 = vadd.f32 %v1535_v34, %v1526_v31 }
 0x28e   : > { %v1620_v9 = vpop.permute.xlu1 %1619  ;;  %v1546_v44 = vpop.permute.xlu0 %1545 }
 0x28f   : > { %v1551_v23 = vadd.f32 %v1546_v44, %v1538_v51  ;;  %v1624_v25 = vadd.f32 %v1620_v9, %v1611_v56 }
 0x292   : > { %v1548_v20 = vpop.permute.xlu1 %1547  ;;  %v1631_v21 = vpop.permute.xlu0 %1630 }
 0x293   : > { %v1636_v59 = vadd.f32 %v1631_v21, %v1623_v19  ;;  %v1552_v29 = vadd.f32 %v1548_v20, %v1539_v24 }
 0x295   : > { %v1640_v27 = vadd.f32 %v1636_v59, %v1551_v23 }
 0x296   : > { %v1633_v28 = vpop.permute.xlu1 %1632 }
 0x297   : > { %v1642_v32 = vadd.f32 %v1640_v27, %v2830_v45  ;;  %v1637_v40 = vadd.f32 %v1633_v28, %v1624_v25 }
 0x299   : > { %v1877_v4 = vmul.f32 -1.442695, %v1642_v32  ;;  %v1641_v8 = vadd.f32 %v1637_v40, %v1552_v29 }
 0x29b   : > { %1971 = vpow2.f32 %v1877_v4  ;;  %v1643_v35 = vadd.f32 %v1641_v8, %v2843_v6 }
 0x29d   : > { %v1878_v15 = vmul.f32 -1.442695, %v1643_v35 }
 0x29f   : > { %1973 = vpow2.f32 %v1878_v15 }
 0x2a5   : > { %v1972_v30 = vpop.eup %1971 }
 0x2a6   : > { %v1650_v60 = vadd.f32 1.0, %v1972_v30 }
 0x2a8   : > { %1975 = vrcp.f32 %v1650_v60 }
 0x2a9   : > { %v1974_v61 = vpop.eup %1973 }
 0x2aa   : > { %v1651_v37 = vadd.f32 1.0, %v1974_v61 }
 0x2ac   : > { %1977 = vrcp.f32 %v1651_v37 }
 0x2b2   : > { %v1976_v45 = vpop.eup %1975 }
 0x2b3   : > { %1656 = vst.msk [vmem:[%s190_s8] sm:$0xff] %vm200_vm0, %v1976_v45 }
 0x2b6   : > { %v1978_v6 = vpop.eup %1977 }
 0x2b7   : > { %1657 = vst.msk [vmem:[%s190_s8 + $0x8] sm:$0xff] %vm200_vm0, %v1978_v6 }
 0x2b8   : > { %2035 = shalt.err (!%p2032_p12)
}
 0x2b9   : > { %s2036_s17 = scalar_lea.hbm %s2960_s24, 256  ;;  %s2040_s29 = scalar_lea.hbm %s3014_s2, 512 }
 0x2ba   : > { %p2037_p4 = scmp.ne.s32.totalorder %s2960_s24, %s2036_s17  ;;  %p2041_p5 = scmp.lt.u32.totalorder %s2960_s24, %s3014_s2 }
 0x2bb   : > { %p2042_p9 = scmp.lt.u32.totalorder %s2040_s29, %s2036_s17  ;;  %p2044_p8 = scmp.lt.u32.totalorder %s2036_s17, %s2960_s24 }
 0x2bc   : > { %p2038_p10 = pnand %p2037_p4, %p3027_p13 }
 0x2bd   : > { %p2043_p3 = por %p2042_p9, %p2041_p5 }
 0x2be   : > { %p2039_p11 = pneg %p2038_p10 }
 0x2bf   : > { %p2045_p0 = por %p2044_p8, %p2043_p3 }
 0x2c1   : > { %p2046_p2 = pnand %p2045_p0, %p2039_p11 }
 0x2c3   : > { %2049 = shalt.err (!%p2046_p2)
}
 0x2c4   : > { %s2123_s28 = smov 128   ;;  %s2124_s6 = smov 8  }
 0x2c5   : > { %1892 = dma.vmem_to_hbm [thread:$0]  (%p3027_p13), %s2962_s15, 256, %s2960_s24, %s1659_s3, %s2123_s28, %s2123_s28, %s2124_s6  }
 0x2c6 PF: > { %s1687_s8 = sand.u32 1, %s2088_s9   ;;  %p3028_p6 = scmp.ne.s32.totalorder %s3022_s21, 0 }
 0x2c7   : > { %p3029_p1 = scmp.ge.s32.totalorder %s2108_s14, 2  ;;  %s1688_s18 = scalar_lea.sflag [#allocation5], %s1687_s8 }
 0x2c9   : > { %p1903_p7 = pnand %p3029_p1, %p3028_p6 }
 0x2cb   : > { %2083 = dma.done.wait (!%p1903_p7), %s1688_s18, 256  }
 0x2cc   : > { %2085 = vsyncadd (!%p1903_p7), %s1688_s18, 4294967040  ;;  %s19_s14 = sadd.s32 1, %s2108_s14   ;;  %s3030_s9 = smov %s2092_s10 }
 0x2cd   : > { %p16_p12 = scmp.ge.s32.totalorder %s19_s14, 4   ;;  %s3031_s10 = smov %s2096_s11 }
 0x2ce   : > { %s3032_s11 = smov %s2241_s4  ;;  %s3033_s12 = smov %s2104_s13 }
 0x2cf   : > { %s3034_s13 = smov %s3036_s25  ;;  %18 = sbr.rel (!%p16_p12) target bundleno = 7 (0x7), region = 93 }
 0x2d6   :  { %1693 = vsyncpa [#allocation4], 1 }
 0x2d7   :  { %1695 = vsyncpa [#allocation4 + $0x1], 1 }
 0x2d8   :  { %1696 = vsyncpa [#allocation5], 1 }
 0x2d9   :  { %1698 = vsyncpa [#allocation5 + $0x1], 1 }
 0x2da   :  { %1699 = vsyncpa [#allocation6], 1 }
 0x2db   :  { %1701 = vsyncpa [#allocation6 + $0x1], 1 }

</bundles_post_ra>
